<compile_context>
chip_gen: v5e
topology: v5e:2x2
jax: 0.10.0
libtpu: 0.0.40
codegen_flags: <defaults>
</compile_context>

<pallas_src>
import math

import jax
import jax.numpy as jnp
from jax.experimental import pallas as pl
from jax.experimental.pallas import tpu as pltpu

# ----------------------------- hyper-params ------------------------------------
SRC_VOCAB = 32
TGT_VOCAB = 32
VOCAB_ALL = SRC_VOCAB + TGT_VOCAB
D_MODEL = 64
NHEAD = 4
DH = D_MODEL // NHEAD
NUM_ENC_LAYERS = 2
NUM_DEC_LAYERS = 2
FF_DIM = 128
MAX_LEN = 128
LN_EPS = 1e-5
ATTN_SCALE = 1.0 / math.sqrt(DH)

B = 2          # batch
S_SRC = 8      # source sequence length
S_TGT = 8      # target sequence length (== S_SRC, see TODO above)

R_SRC = B * S_SRC          # batch-folded encoder rows
R_TGT = B * S_TGT          # batch-folded decoder rows
R_ALL = R_SRC + R_TGT
LANE_OUT = 128             # lane-dense (>=128, multiple of 128) padded logit width


# ----------------------------- fused Pallas kernel -----------------------------
def _transformer_kernel(ids_ref, bias_ref, emb_ref, pos_ref,
                        attn_w_ref, attn_b_ref,
                        ff_w1_ref, ff_b1_ref, ff_w2_ref, ff_b2_ref,
                        ln_ref, fc_w_ref, fc_b_ref, out_ref):
    bf16 = jnp.bfloat16

    # per-head lane masks, computed once and reused by all 6 attention blocks
    lane = jax.lax.broadcasted_iota(jnp.int32, (1, D_MODEL), 1)
    head_masks = [((lane >= h * DH) & (lane < (h + 1) * DH)).astype(jnp.float32)
                  for h in range(NHEAD)]

    def layer_norm(x, ln_idx):                         # x: [R, D] f32
        g = ln_ref[pl.ds(2 * ln_idx, 1), :]            # [1, D]
        b = ln_ref[pl.ds(2 * ln_idx + 1, 1), :]
        mu = jnp.mean(x, axis=-1, keepdims=True)
        var = jnp.mean((x - mu) ** 2, axis=-1, keepdims=True)
        return (x - mu) * jax.lax.rsqrt(var + LN_EPS) * g + b

    def mha(a_idx, q_in, kv_in, bias):
        # weights row-stacked per attention block: [Wq; Wk; Wv; Wo] @ 4*D rows
        base = a_idx * 4 * D_MODEL
        wq = attn_w_ref[pl.ds(base, D_MODEL), :]
        wk = attn_w_ref[pl.ds(base + D_MODEL, D_MODEL), :]
        wv = attn_w_ref[pl.ds(base + 2 * D_MODEL, D_MODEL), :]
        wo = attn_w_ref[pl.ds(base + 3 * D_MODEL, D_MODEL), :]
        bq = attn_b_ref[pl.ds(4 * a_idx, 1), :]
        bk = attn_b_ref[pl.ds(4 * a_idx + 1, 1), :]
        bv = attn_b_ref[pl.ds(4 * a_idx + 2, 1), :]
        bo = attn_b_ref[pl.ds(4 * a_idx + 3, 1), :]

        q_b = q_in.astype(bf16)
        kv_b = kv_in.astype(bf16)
        q = jnp.dot(q_b, wq, preferred_element_type=jnp.float32) + bq
        k = jnp.dot(kv_b, wk, preferred_element_type=jnp.float32) + bk
        v = jnp.dot(kv_b, wv, preferred_element_type=jnp.float32) + bv
        q_s = (q * ATTN_SCALE).astype(bf16)

        # per-head attention without any lane slicing: mask K/V lanes per head;
        # the p@v_masked sums reconstruct the head-concat directly.
        concat = jnp.zeros((q_in.shape[0], D_MODEL), jnp.float32)
        for h in range(NHEAD):
            kh = (k * head_masks[h]).astype(bf16)
            vh = (v * head_masks[h]).astype(bf16)
            s = jax.lax.dot_general(q_s, kh, (((1,), (1,)), ((), ())),
                                    preferred_element_type=jnp.float32)
            s = s + bias                                  # additive 0 / -1e9 mask
            s = s - jnp.max(s, axis=-1, keepdims=True)
            p = jnp.exp(s)
            p = p * pl.reciprocal(jnp.sum(p, axis=-1, keepdims=True), approx=True)
            concat = concat + jnp.dot(p.astype(bf16), vh,
                                      preferred_element_type=jnp.float32)
        return jnp.dot(concat.astype(bf16), wo,
                       preferred_element_type=jnp.float32) + bo

    def feed_forward(f_idx, x):
        w1 = ff_w1_ref[pl.ds(f_idx * D_MODEL, D_MODEL), :]    # [D, FF] bf16
        b1 = ff_b1_ref[pl.ds(f_idx, 1), :]                    # [1, FF]
        w2 = ff_w2_ref[pl.ds(f_idx * FF_DIM, FF_DIM), :]      # [FF, D] bf16
        b2 = ff_b2_ref[pl.ds(f_idx, 1), :]                    # [1, D]
        h = jnp.dot(x.astype(bf16), w1, preferred_element_type=jnp.float32) + b1
        h = jnp.maximum(h, 0.0)
        return jnp.dot(h.astype(bf16), w2, preferred_element_type=jnp.float32) + b2

    # ---- embedding: src+tgt ids in one one-hot matmul (table pre-scaled) ------
    ids = ids_ref[...]                                          # [R_ALL, 1] int32
    viota = jax.lax.broadcasted_iota(jnp.int32, (R_ALL, VOCAB_ALL), 1)
    onehot = (viota == ids).astype(bf16)                        # [R_ALL, VOCAB_ALL]
    xy = jnp.dot(onehot, emb_ref[...],
                 preferred_element_type=jnp.float32) + pos_ref[...]   # [R_ALL, D]

    bias_all = bias_ref[...]                                    # [3*R, R] f32
    enc_bias = bias_all[0:R_SRC, :]
    dec_bias = bias_all[R_SRC:R_SRC + R_TGT, :]
    cross_bias = bias_all[R_SRC + R_TGT:R_SRC + 2 * R_TGT, :]

    # ---- encoder ---------------------------------------------------------------
    x = xy[0:R_SRC, :]
    for l in range(NUM_ENC_LAYERS):
        x2 = layer_norm(x, 2 * l)
        x = x + mha(l, x2, x2, enc_bias)                # dropout1 = identity
        x2 = layer_norm(x, 2 * l + 1)
        x = x + feed_forward(l, x2)                     # dropout2 = identity
    memory = layer_norm(x, 2 * NUM_ENC_LAYERS)

    # ---- decoder ---------------------------------------------------------------
    y = xy[R_SRC:R_ALL, :]
    for l in range(NUM_DEC_LAYERS):
        ln0 = 2 * NUM_ENC_LAYERS + 1 + 3 * l
        y2 = layer_norm(y, ln0)
        y = y + mha(NUM_ENC_LAYERS + 2 * l, y2, y2, dec_bias)
        y2 = layer_norm(y, ln0 + 1)
        y = y + mha(NUM_ENC_LAYERS + 2 * l + 1, y2, memory, cross_bias)
        y2 = layer_norm(y, ln0 + 2)
        y = y + feed_forward(NUM_ENC_LAYERS + l, y2)
    y = layer_norm(y, 2 * NUM_ENC_LAYERS + 1 + 3 * NUM_DEC_LAYERS)

    # ---- output projection, lane-dense (128-wide, zero-padded) store ----------
    logits = jnp.dot(y.astype(bf16), fc_w_ref[...],
                     preferred_element_type=jnp.float32) + fc_b_ref[...]
    out_ref[...] = logits


# ----------------------------- wrapper ------------------------------------------
def _full_spec(shape):
    nd = len(shape)
    return pl.BlockSpec(shape, lambda i, _nd=nd: (0,) * _nd)


def _block_diag_bias(mask):
    """[B, Sq, Sk] {0.,1.} -> [B*Sq, B*Sk] additive bias (0 keep / -1e9 drop),
    block-diagonal in batch (cross-batch entries are masked)."""
    b, sq, sk = mask.shape
    eye = jnp.eye(b, dtype=mask.dtype)
    big = jnp.einsum("bc,bij->bicj", eye, mask).reshape(b * sq, b * sk)
    return (big - 1.0) * 1e9


def transformer_forward(packed, src, tgt, src_mask, tgt_mask):
    """src/tgt: [B, S] int ids; masks: [B, Sq, Sk] float {0.,1.} -> [B, S_tgt, V]."""
    b, ss = src.shape
    st = tgt.shape[1]
    assert (b, ss, st) == (B, S_SRC, S_TGT)

    # fold batch into rows; shift tgt ids into the packed [src|tgt] vocab table
    ids_all = jnp.concatenate(
        [src.reshape(-1).astype(jnp.int32),
         tgt.reshape(-1).astype(jnp.int32) + SRC_VOCAB], axis=0).reshape(R_ALL, 1)

    bias_all = jnp.concatenate(
        [_block_diag_bias(src_mask.astype(jnp.float32)),    # encoder self-attn
         _block_diag_bias(tgt_mask.astype(jnp.float32)),    # decoder self-attn
         _block_diag_bias(src_mask.astype(jnp.float32))],   # decoder cross-attn
        axis=0)                                             # [3*R, R]

    operands = [ids_all, bias_all,
                packed["emb_table"], packed["pos_all"],
                packed["attn_w"], packed["attn_b"],
                packed["ff_w1"], packed["ff_b1"], packed["ff_w2"], packed["ff_b2"],
                packed["ln_gb"], packed["fc_w"], packed["fc_b"]]

    out = pl.pallas_call(
        _transformer_kernel,
        out_shape=jax.ShapeDtypeStruct((R_TGT, LANE_OUT), jnp.float32),
        grid=(1,),                                   # single program, no batch grid
        in_specs=[_full_spec(op.shape) for op in operands],
        out_specs=_full_spec((R_TGT, LANE_OUT)),
        compiler_params=pltpu.CompilerParams(dimension_semantics=("arbitrary",)),
    )(*operands)

    return out[:, :TGT_VOCAB].reshape(B, S_TGT, TGT_VOCAB)


# ----------------------------- parameter init & packing -------------------------
def _init_linear(key, din, dout, scale=0.05):
    kw, kb = jax.random.split(key)
    w = jax.random.normal(kw, (din, dout), jnp.float32) * scale
    b = jax.random.normal(kb, (dout,), jnp.float32) * scale
    return w, b


def _init_mha(key, d):
    kq, kk, kv, ko = jax.random.split(key, 4)
    wq, bq = _init_linear(kq, d, d)
    wk, bk = _init_linear(kk, d, d)
    wv, bv = _init_linear(kv, d, d)
    wo, bo = _init_linear(ko, d, d)
    return dict(wq=wq, bq=bq, wk=wk, bk=bk, wv=wv, bv=bv, wo=wo, bo=bo)


def _init_enc_layer(key, d, ff):
    k1, k2, k3 = jax.random.split(key, 3)
    w1, b1 = _init_linear(k2, d, ff)
    w2, b2 = _init_linear(k3, ff, d)
    return dict(attn=_init_mha(k1, d),
                ff_w1=w1, ff_b1=b1, ff_w2=w2, ff_b2=b2,
                ln1_g=jnp.ones((d,)), ln1_b=jnp.zeros((d,)),
                ln2_g=jnp.ones((d,)), ln2_b=jnp.zeros((d,)))


def _init_dec_layer(key, d, ff):
    k1, k2, k3, k4 = jax.random.split(key, 4)
    w1, b1 = _init_linear(k3, d, ff)
    w2, b2 = _init_linear(k4, ff, d)
    return dict(self_attn=_init_mha(k1, d), cross_attn=_init_mha(k2, d),
                ff_w1=w1, ff_b1=b1, ff_w2=w2, ff_b2=b2,
                ln1_g=jnp.ones((d,)), ln1_b=jnp.zeros((d,)),
                ln2_g=jnp.ones((d,)), ln2_b=jnp.zeros((d,)),
                ln3_g=jnp.ones((d,)), ln3_b=jnp.zeros((d,)))


def make_positional_encoding(max_len, d_model):
    pos = jnp.arange(max_len, dtype=jnp.float32)[:, None]
    div = jnp.exp(jnp.arange(0, d_model, 2, dtype=jnp.float32)
                  * (-math.log(10000.0) / d_model))
    pe = jnp.zeros((max_len, d_model), dtype=jnp.float32)
    pe = pe.at[:, 0::2].set(jnp.sin(pos * div))
    pe = pe.at[:, 1::2].set(jnp.cos(pos * div))
    return pe


def init_params(key):
    keys = jax.random.split(key, 6 + NUM_ENC_LAYERS + NUM_DEC_LAYERS)
    src_embed = jax.random.normal(keys[0], (SRC_VOCAB, D_MODEL), jnp.float32) * 0.05
    tgt_embed = jax.random.normal(keys[1], (TGT_VOCAB, D_MODEL), jnp.float32) * 0.05
    fc_w, fc_b = _init_linear(keys[2], D_MODEL, TGT_VOCAB)
    enc_layers = [_init_enc_layer(keys[6 + i], D_MODEL, FF_DIM)
                  for i in range(NUM_ENC_LAYERS)]
    dec_layers = [_init_dec_layer(keys[6 + NUM_ENC_LAYERS + i], D_MODEL, FF_DIM)
                  for i in range(NUM_DEC_LAYERS)]
    return dict(
        src_embed=src_embed, tgt_embed=tgt_embed,
        pos_enc=make_positional_encoding(MAX_LEN, D_MODEL),
        enc_layers=enc_layers, dec_layers=dec_layers,
        enc_norm_g=jnp.ones((D_MODEL,)), enc_norm_b=jnp.zeros((D_MODEL,)),
        dec_norm_g=jnp.ones((D_MODEL,)), dec_norm_b=jnp.zeros((D_MODEL,)),
        fc_w=fc_w, fc_b=fc_b,
    )


def pack_params(params):
    """One-time host-side packing into a handful of lane-aligned VMEM slabs."""
    bf16, f32 = jnp.bfloat16, jnp.float32

    emb_table = (jnp.concatenate([params["src_embed"], params["tgt_embed"]], axis=0)
                 * math.sqrt(D_MODEL)).astype(bf16)                       # [2V, D]
    pe = params["pos_enc"]
    pos_all = jnp.concatenate([jnp.tile(pe[:S_SRC], (B, 1)),
                               jnp.tile(pe[:S_TGT], (B, 1))], axis=0).astype(f32)

    attn_ps = [params["enc_layers"][l]["attn"] for l in range(NUM_ENC_LAYERS)]
    for l in range(NUM_DEC_LAYERS):
        attn_ps += [params["dec_layers"][l]["self_attn"],
                    params["dec_layers"][l]["cross_attn"]]
    attn_w = jnp.concatenate(
        [jnp.concatenate([p["wq"], p["wk"], p["wv"], p["wo"]], axis=0)
         for p in attn_ps], axis=0).astype(bf16)                          # [6*4D, D]
    attn_b = jnp.concatenate(
        [jnp.stack([p["bq"], p["bk"], p["bv"], p["bo"]], axis=0)
         for p in attn_ps], axis=0).astype(f32)                           # [6*4, D]

    ff_ps = ([params["enc_layers"][l] for l in range(NUM_ENC_LAYERS)] +
             [params["dec_layers"][l] for l in range(NUM_DEC_LAYERS)])
    ff_w1 = jnp.concatenate([p["ff_w1"] for p in ff_ps], axis=0).astype(bf16)  # [4D, FF]
    ff_b1 = jnp.stack([p["ff_b1"] for p in ff_ps], axis=0).astype(f32)         # [4, FF]
    ff_w2 = jnp.concatenate([p["ff_w2"] for p in ff_ps], axis=0).astype(bf16)  # [4FF, D]
    ff_b2 = jnp.stack([p["ff_b2"] for p in ff_ps], axis=0).astype(f32)         # [4, D]

    ln_rows = []
    for l in range(NUM_ENC_LAYERS):
        lp = params["enc_layers"][l]
        ln_rows += [lp["ln1_g"], lp["ln1_b"], lp["ln2_g"], lp["ln2_b"]]
    ln_rows += [params["enc_norm_g"], params["enc_norm_b"]]
    for l in range(NUM_DEC_LAYERS):
        lp = params["dec_layers"][l]
        ln_rows += [lp["ln1_g"], lp["ln1_b"], lp["ln2_g"], lp["ln2_b"],
                    lp["ln3_g"], lp["ln3_b"]]
    ln_rows += [params["dec_norm_g"], params["dec_norm_b"]]
    ln_gb = jnp.stack(ln_rows, axis=0).astype(f32)                        # [24, D]

    # output projection padded to 128 output lanes (lane-dense store)
    fc_w = jnp.zeros((D_MODEL, LANE_OUT), f32).at[:, :TGT_VOCAB].set(
        params["fc_w"]).astype(bf16)
    fc_b = jnp.zeros((1, LANE_OUT), f32).at[0, :TGT_VOCAB].set(params["fc_b"])

    return dict(emb_table=emb_table, pos_all=pos_all, attn_w=attn_w, attn_b=attn_b,
                ff_w1=ff_w1, ff_b1=ff_b1, ff_w2=ff_w2, ff_b2=ff_b2,
                ln_gb=ln_gb, fc_w=fc_w, fc_b=fc_b)


# ----------------------------- pure-JAX reference (for validation) -------------
def _reference_forward(params, src, tgt, src_mask, tgt_mask):
    D = D_MODEL

    def ln(x, g, b):
        mu = jnp.mean(x, -1, keepdims=True)
        var = jnp.mean((x - mu) ** 2, -1, keepdims=True)
        return (x - mu) * jax.lax.rsqrt(var + LN_EPS) * g + b

    def mha(p, q_in, kv_in, mask):
        Bq, Sq, _ = q_in.shape
        Sk = kv_in.shape[1]
        q = q_in @ p["wq"] + p["bq"]
        k = kv_in @ p["wk"] + p["bk"]
        v = kv_in @ p["wv"] + p["bv"]
        q = q.reshape(Bq, Sq, NHEAD, DH).transpose(0, 2, 1, 3)
        k = k.reshape(Bq, Sk, NHEAD, DH).transpose(0, 2, 1, 3)
        v = v.reshape(Bq, Sk, NHEAD, DH).transpose(0, 2, 1, 3)
        s = jnp.einsum("bhqd,bhkd->bhqk", q / math.sqrt(DH), k)
        s = jnp.where(mask[:, None, :, :] == 0.0, -1000000000.0, s)
        a = jax.nn.softmax(s, axis=-1)
        o = jnp.einsum("bhqk,bhkd->bhqd", a, v)
        o = o.transpose(0, 2, 1, 3).reshape(Bq, Sq, D)
        return o @ p["wo"] + p["bo"]

    def ff(p, x):
        return jnp.maximum(x @ p["ff_w1"] + p["ff_b1"], 0.0) @ p["ff_w2"] + p["ff_b2"]

    pe = params["pos_enc"]
    x = jnp.take(params["src_embed"], src, axis=0) * math.sqrt(D) + pe[None, :src.shape[1]]
    for lp in params["enc_layers"]:
        x2 = ln(x, lp["ln1_g"], lp["ln1_b"]); x = x + mha(lp["attn"], x2, x2, src_mask)
        x2 = ln(x, lp["ln2_g"], lp["ln2_b"]); x = x + ff(lp, x2)
    memory = ln(x, params["enc_norm_g"], params["enc_norm_b"])

    y = jnp.take(params["tgt_embed"], tgt, axis=0) * math.sqrt(D) + pe[None, :tgt.shape[1]]
    for lp in params["dec_layers"]:
        y2 = ln(y, lp["ln1_g"], lp["ln1_b"]); y = y + mha(lp["self_attn"], y2, y2, tgt_mask)
        y2 = ln(y, lp["ln2_g"], lp["ln2_b"]); y = y + mha(lp["cross_attn"], y2, memory, src_mask)
        y2 = ln(y, lp["ln3_g"], lp["ln3_b"]); y = y + ff(lp, y2)
    y = ln(y, params["dec_norm_g"], params["dec_norm_b"])
    return y @ params["fc_w"] + params["fc_b"]


# ----------------------------- driver -------------------------------------------
if __name__ == "__main__":
    key = jax.random.PRNGKey(0)
    k_param, k_src, k_tgt = jax.random.split(key, 3)

    params = init_params(k_param)
    packed = pack_params(params)

    src = jax.random.randint(k_src, (B, S_SRC), 0, SRC_VOCAB, dtype=jnp.int32)
    tgt = jax.random.randint(k_tgt, (B, S_TGT), 0, TGT_VOCAB, dtype=jnp.int32)

    # src_mask: all-ones (no masking); tgt_mask: causal lower-triangular.
    src_mask = jnp.ones((B, S_SRC, S_SRC), jnp.float32)
    tgt_mask = jnp.tril(jnp.ones((S_TGT, S_TGT), jnp.float32))[None].repeat(B, axis=0)

    fwd = jax.jit(transformer_forward)
    out = jax.block_until_ready(fwd(packed, src, tgt, src_mask, tgt_mask))

    assert out.shape == (B, S_TGT, TGT_VOCAB), out.shape
    assert bool(jnp.all(jnp.isfinite(out)))

    # validate against a pure-JAX (non-Pallas, f32) reference of the same module;
    # tolerance accounts for bf16 MXU operands + approx reciprocal in softmax.
    with jax.default_matmul_precision("highest"):
        ref = jax.jit(_reference_forward)(params, src, tgt, src_mask, tgt_mask)
    ref = jax.block_until_ready(ref)
    max_err = float(jnp.max(jnp.abs(out - ref)))
    assert jnp.allclose(out, ref, rtol=5e-2, atol=5e-2), max_err

    print("KERNEL_OK")
</pallas_src>

<mosaic_0001>
module attributes {stable_mosaic.version = 11 : i64} {
  func.func @_transformer_kernel(%arg0: i32, %arg1: memref<32x1xi32, #tpu.memory_space<vmem>>, %arg2: memref<48x16xf32, #tpu.memory_space<vmem>>, %arg3: memref<64x64xbf16, #tpu.memory_space<vmem>>, %arg4: memref<32x64xf32, #tpu.memory_space<vmem>>, %arg5: memref<1536x64xbf16, #tpu.memory_space<vmem>>, %arg6: memref<24x64xf32, #tpu.memory_space<vmem>>, %arg7: memref<256x128xbf16, #tpu.memory_space<vmem>>, %arg8: memref<4x128xf32, #tpu.memory_space<vmem>>, %arg9: memref<512x64xbf16, #tpu.memory_space<vmem>>, %arg10: memref<4x64xf32, #tpu.memory_space<vmem>>, %arg11: memref<24x64xf32, #tpu.memory_space<vmem>>, %arg12: memref<64x128xbf16, #tpu.memory_space<vmem>>, %arg13: memref<1x128xf32, #tpu.memory_space<vmem>>, %arg14: memref<16x128xf32, #tpu.memory_space<vmem>>) attributes {dimension_semantics = [#tpu.dimension_semantics<arbitrary>], iteration_bounds = array<i64: 1>, scalar_prefetch = 0 : i64, scratch_operands = 0 : i64, tpu.core_type = #tpu.core_type<tc>, window_params = [{pipeline_mode = #tpu.pipeline_mode<synchronous>, transform_indices = @transform_0, window_bounds = array<i64: 32, 1>}, {pipeline_mode = #tpu.pipeline_mode<synchronous>, transform_indices = @transform_1, window_bounds = array<i64: 48, 16>}, {pipeline_mode = #tpu.pipeline_mode<synchronous>, transform_indices = @transform_2, window_bounds = array<i64: 64, 64>}, {pipeline_mode = #tpu.pipeline_mode<synchronous>, transform_indices = @transform_3, window_bounds = array<i64: 32, 64>}, {pipeline_mode = #tpu.pipeline_mode<synchronous>, transform_indices = @transform_4, window_bounds = array<i64: 1536, 64>}, {pipeline_mode = #tpu.pipeline_mode<synchronous>, transform_indices = @transform_5, window_bounds = array<i64: 24, 64>}, {pipeline_mode = #tpu.pipeline_mode<synchronous>, transform_indices = @transform_6, window_bounds = array<i64: 256, 128>}, {pipeline_mode = #tpu.pipeline_mode<synchronous>, transform_indices = @transform_7, window_bounds = array<i64: 4, 128>}, {pipeline_mode = #tpu.pipeline_mode<synchronous>, transform_indices = @transform_8, window_bounds = array<i64: 512, 64>}, {pipeline_mode = #tpu.pipeline_mode<synchronous>, transform_indices = @transform_9, window_bounds = array<i64: 4, 64>}, {pipeline_mode = #tpu.pipeline_mode<synchronous>, transform_indices = @transform_10, window_bounds = array<i64: 24, 64>}, {pipeline_mode = #tpu.pipeline_mode<synchronous>, transform_indices = @transform_11, window_bounds = array<i64: 64, 128>}, {pipeline_mode = #tpu.pipeline_mode<synchronous>, transform_indices = @transform_12, window_bounds = array<i64: 1, 128>}, {pipeline_mode = #tpu.pipeline_mode<synchronous>, transform_indices = @transform_13, window_bounds = array<i64: 16, 128>}]} {
    %0 = tpu.iota {dimensions = array<i32: 1>} : vector<1x64xi32>
    %c0_i32 = arith.constant 0 : i32
    %1 = vector.broadcast %c0_i32 : i32 to vector<1x64xi32>
    %2 = arith.cmpi sge, %0, %1 : vector<1x64xi32>
    %c16_i32 = arith.constant 16 : i32
    %3 = vector.broadcast %c16_i32 : i32 to vector<1x64xi32>
    %4 = arith.cmpi slt, %0, %3 : vector<1x64xi32>
    %5 = arith.andi %2, %4 : vector<1x64xi1>
    %6 = arith.extui %5 : vector<1x64xi1> to vector<1x64xi32>
    %7 = arith.sitofp %6 : vector<1x64xi32> to vector<1x64xf32>
    %c16_i32_0 = arith.constant 16 : i32
    %8 = vector.broadcast %c16_i32_0 : i32 to vector<1x64xi32>
    %9 = arith.cmpi sge, %0, %8 : vector<1x64xi32>
    %c32_i32 = arith.constant 32 : i32
    %10 = vector.broadcast %c32_i32 : i32 to vector<1x64xi32>
    %11 = arith.cmpi slt, %0, %10 : vector<1x64xi32>
    %12 = arith.andi %9, %11 : vector<1x64xi1>
    %13 = arith.extui %12 : vector<1x64xi1> to vector<1x64xi32>
    %14 = arith.sitofp %13 : vector<1x64xi32> to vector<1x64xf32>
    %c32_i32_1 = arith.constant 32 : i32
    %15 = vector.broadcast %c32_i32_1 : i32 to vector<1x64xi32>
    %16 = arith.cmpi sge, %0, %15 : vector<1x64xi32>
    %c48_i32 = arith.constant 48 : i32
    %17 = vector.broadcast %c48_i32 : i32 to vector<1x64xi32>
    %18 = arith.cmpi slt, %0, %17 : vector<1x64xi32>
    %19 = arith.andi %16, %18 : vector<1x64xi1>
    %20 = arith.extui %19 : vector<1x64xi1> to vector<1x64xi32>
    %21 = arith.sitofp %20 : vector<1x64xi32> to vector<1x64xf32>
    %c48_i32_2 = arith.constant 48 : i32
    %22 = vector.broadcast %c48_i32_2 : i32 to vector<1x64xi32>
    %23 = arith.cmpi sge, %0, %22 : vector<1x64xi32>
    %c64_i32 = arith.constant 64 : i32
    %24 = vector.broadcast %c64_i32 : i32 to vector<1x64xi32>
    %25 = arith.cmpi slt, %0, %24 : vector<1x64xi32>
    %26 = arith.andi %23, %25 : vector<1x64xi1>
    %27 = arith.extui %26 : vector<1x64xi1> to vector<1x64xi32>
    %28 = arith.sitofp %27 : vector<1x64xi32> to vector<1x64xf32>
    %c0 = arith.constant 0 : index
    %c0_3 = arith.constant 0 : index
    %29 = vector.load %arg1[%c0, %c0_3] : memref<32x1xi32, #tpu.memory_space<vmem>>, vector<32x1xi32>
    %30 = tpu.iota {dimensions = array<i32: 1>} : vector<32x64xi32>
    %31 = vector.broadcast %29 : vector<32x1xi32> to vector<32x64xi32>
    %32 = arith.cmpi eq, %30, %31 : vector<32x64xi32>
    %33 = arith.extui %32 : vector<32x64xi1> to vector<32x64xi32>
    %34 = arith.sitofp %33 : vector<32x64xi32> to vector<32x64xf32>
    %35 = arith.truncf %34 : vector<32x64xf32> to vector<32x64xbf16>
    %c0_4 = arith.constant 0 : index
    %c0_5 = arith.constant 0 : index
    %36 = vector.load %arg3[%c0_4, %c0_5] : memref<64x64xbf16, #tpu.memory_space<vmem>>, vector<64x64xbf16>
    %cst = arith.constant dense<0.000000e+00> : vector<32x64xf32>
    %37 = tpu.matmul %35, %36, %cst {dimension_numbers = #tpu.dot_dimension_numbers<[1], [0], [0], [1], [0, 0, 1, 1], [], []>} : vector<32x64xbf16>, vector<64x64xbf16>, vector<32x64xf32> -> vector<32x64xf32>
    %c0_6 = arith.constant 0 : index
    %c0_7 = arith.constant 0 : index
    %38 = vector.load %arg4[%c0_6, %c0_7] : memref<32x64xf32, #tpu.memory_space<vmem>>, vector<32x64xf32>
    %39 = arith.addf %37, %38 : vector<32x64xf32>
    %c0_8 = arith.constant 0 : index
    %c0_9 = arith.constant 0 : index
    %40 = vector.load %arg2[%c0_8, %c0_9] : memref<48x16xf32, #tpu.memory_space<vmem>>, vector<48x16xf32>
    %41 = vector.extract_strided_slice %40 {offsets = [0, 0], sizes = [16, 16], strides = [1, 1]} : vector<48x16xf32> to vector<16x16xf32>
    %42 = vector.extract_strided_slice %40 {offsets = [16, 0], sizes = [16, 16], strides = [1, 1]} : vector<48x16xf32> to vector<16x16xf32>
    %43 = vector.extract_strided_slice %40 {offsets = [32, 0], sizes = [16, 16], strides = [1, 1]} : vector<48x16xf32> to vector<16x16xf32>
    %44 = vector.extract_strided_slice %39 {offsets = [0, 0], sizes = [16, 64], strides = [1, 1]} : vector<32x64xf32> to vector<16x64xf32>
    %c0_10 = arith.constant 0 : index
    %c0_11 = arith.constant 0 : index
    %45 = vector.load %arg11[%c0_10, %c0_11] : memref<24x64xf32, #tpu.memory_space<vmem>>, vector<1x64xf32>
    %c1 = arith.constant 1 : index
    %c0_12 = arith.constant 0 : index
    %46 = vector.load %arg11[%c1, %c0_12] : memref<24x64xf32, #tpu.memory_space<vmem>>, vector<1x64xf32>
    %cst_13 = arith.constant dense<0.000000e+00> : vector<16xf32>
    %47 = vector.multi_reduction <add>, %44, %cst_13 [1] : vector<16x64xf32> to vector<16xf32>
    %48 = vector.shape_cast %47 : vector<16xf32> to vector<16x1xf32>
    %cst_14 = arith.constant 6.400000e+01 : f32
    %49 = vector.broadcast %cst_14 : f32 to vector<16x1xf32>
    %50 = arith.divf %48, %49 : vector<16x1xf32>
    %51 = vector.broadcast %50 : vector<16x1xf32> to vector<16x64xf32>
    %52 = arith.subf %44, %51 : vector<16x64xf32>
    %53 = arith.mulf %52, %52 : vector<16x64xf32>
    %cst_15 = arith.constant dense<0.000000e+00> : vector<16xf32>
    %54 = vector.multi_reduction <add>, %53, %cst_15 [1] : vector<16x64xf32> to vector<16xf32>
    %55 = vector.shape_cast %54 : vector<16xf32> to vector<16x1xf32>
    %cst_16 = arith.constant 6.400000e+01 : f32
    %56 = vector.broadcast %cst_16 : f32 to vector<16x1xf32>
    %57 = arith.divf %55, %56 : vector<16x1xf32>
    %58 = vector.broadcast %50 : vector<16x1xf32> to vector<16x64xf32>
    %59 = arith.subf %44, %58 : vector<16x64xf32>
    %cst_17 = arith.constant 9.99999974E-6 : f32
    %60 = vector.broadcast %cst_17 : f32 to vector<16x1xf32>
    %61 = arith.addf %57, %60 : vector<16x1xf32>
    %62 = math.rsqrt %61 : vector<16x1xf32>
    %63 = vector.broadcast %62 : vector<16x1xf32> to vector<16x64xf32>
    %64 = arith.mulf %59, %63 : vector<16x64xf32>
    %65 = vector.broadcast %45 : vector<1x64xf32> to vector<16x64xf32>
    %66 = arith.mulf %64, %65 : vector<16x64xf32>
    %67 = vector.broadcast %46 : vector<1x64xf32> to vector<16x64xf32>
    %68 = arith.addf %66, %67 : vector<16x64xf32>
    %c0_18 = arith.constant 0 : index
    %c0_19 = arith.constant 0 : index
    %69 = vector.load %arg5[%c0_18, %c0_19] : memref<1536x64xbf16, #tpu.memory_space<vmem>>, vector<64x64xbf16>
    %c64 = arith.constant 64 : index
    %c0_20 = arith.constant 0 : index
    %70 = vector.load %arg5[%c64, %c0_20] : memref<1536x64xbf16, #tpu.memory_space<vmem>>, vector<64x64xbf16>
    %c128 = arith.constant 128 : index
    %c0_21 = arith.constant 0 : index
    %71 = vector.load %arg5[%c128, %c0_21] : memref<1536x64xbf16, #tpu.memory_space<vmem>>, vector<64x64xbf16>
    %c192 = arith.constant 192 : index
    %c0_22 = arith.constant 0 : index
    %72 = vector.load %arg5[%c192, %c0_22] : memref<1536x64xbf16, #tpu.memory_space<vmem>>, vector<64x64xbf16>
    %c0_23 = arith.constant 0 : index
    %c0_24 = arith.constant 0 : index
    %73 = vector.load %arg6[%c0_23, %c0_24] : memref<24x64xf32, #tpu.memory_space<vmem>>, vector<1x64xf32>
    %c1_25 = arith.constant 1 : index
    %c0_26 = arith.constant 0 : index
    %74 = vector.load %arg6[%c1_25, %c0_26] : memref<24x64xf32, #tpu.memory_space<vmem>>, vector<1x64xf32>
    %c2 = arith.constant 2 : index
    %c0_27 = arith.constant 0 : index
    %75 = vector.load %arg6[%c2, %c0_27] : memref<24x64xf32, #tpu.memory_space<vmem>>, vector<1x64xf32>
    %c3 = arith.constant 3 : index
    %c0_28 = arith.constant 0 : index
    %76 = vector.load %arg6[%c3, %c0_28] : memref<24x64xf32, #tpu.memory_space<vmem>>, vector<1x64xf32>
    %77 = arith.truncf %68 : vector<16x64xf32> to vector<16x64xbf16>
    %78 = arith.truncf %68 : vector<16x64xf32> to vector<16x64xbf16>
    %cst_29 = arith.constant dense<0.000000e+00> : vector<16x64xf32>
    %79 = tpu.matmul %77, %69, %cst_29 {dimension_numbers = #tpu.dot_dimension_numbers<[1], [0], [0], [1], [0, 0, 1, 1], [], []>} : vector<16x64xbf16>, vector<64x64xbf16>, vector<16x64xf32> -> vector<16x64xf32>
    %80 = vector.broadcast %73 : vector<1x64xf32> to vector<16x64xf32>
    %81 = arith.addf %79, %80 : vector<16x64xf32>
    %cst_30 = arith.constant dense<0.000000e+00> : vector<16x64xf32>
    %82 = tpu.matmul %78, %70, %cst_30 {dimension_numbers = #tpu.dot_dimension_numbers<[1], [0], [0], [1], [0, 0, 1, 1], [], []>} : vector<16x64xbf16>, vector<64x64xbf16>, vector<16x64xf32> -> vector<16x64xf32>
    %83 = vector.broadcast %74 : vector<1x64xf32> to vector<16x64xf32>
    %84 = arith.addf %82, %83 : vector<16x64xf32>
    %cst_31 = arith.constant dense<0.000000e+00> : vector<16x64xf32>
    %85 = tpu.matmul %78, %71, %cst_31 {dimension_numbers = #tpu.dot_dimension_numbers<[1], [0], [0], [1], [0, 0, 1, 1], [], []>} : vector<16x64xbf16>, vector<64x64xbf16>, vector<16x64xf32> -> vector<16x64xf32>
    %86 = vector.broadcast %75 : vector<1x64xf32> to vector<16x64xf32>
    %87 = arith.addf %85, %86 : vector<16x64xf32>
    %cst_32 = arith.constant 2.500000e-01 : f32
    %88 = vector.broadcast %cst_32 : f32 to vector<16x64xf32>
    %89 = arith.mulf %81, %88 : vector<16x64xf32>
    %90 = arith.truncf %89 : vector<16x64xf32> to vector<16x64xbf16>
    %cst_33 = arith.constant 0.000000e+00 : f32
    %91 = vector.broadcast %cst_33 : f32 to vector<16x64xf32>
    %92 = vector.broadcast %7 : vector<1x64xf32> to vector<16x64xf32>
    %93 = arith.mulf %84, %92 : vector<16x64xf32>
    %94 = arith.truncf %93 : vector<16x64xf32> to vector<16x64xbf16>
    %95 = vector.broadcast %7 : vector<1x64xf32> to vector<16x64xf32>
    %96 = arith.mulf %87, %95 : vector<16x64xf32>
    %97 = arith.truncf %96 : vector<16x64xf32> to vector<16x64xbf16>
    %cst_34 = arith.constant dense<0.000000e+00> : vector<16x16xf32>
    %98 = tpu.matmul %90, %94, %cst_34 {dimension_numbers = #tpu.dot_dimension_numbers<[1], [1], [0], [0], [0, 0, 1, 0], [], []>} : vector<16x64xbf16>, vector<16x64xbf16>, vector<16x16xf32> -> vector<16x16xf32>
    %99 = arith.addf %98, %41 : vector<16x16xf32>
    %cst_35 = arith.constant dense<0xFF800000> : vector<16xf32>
    %100 = vector.multi_reduction <maximumf>, %99, %cst_35 [1] : vector<16x16xf32> to vector<16xf32>
    %101 = vector.shape_cast %100 : vector<16xf32> to vector<16x1xf32>
    %102 = vector.broadcast %101 : vector<16x1xf32> to vector<16x16xf32>
    %103 = arith.subf %99, %102 : vector<16x16xf32>
    %104 = math.exp %103 : vector<16x16xf32>
    %cst_36 = arith.constant dense<0.000000e+00> : vector<16xf32>
    %105 = vector.multi_reduction <add>, %104, %cst_36 [1] : vector<16x16xf32> to vector<16xf32>
    %106 = vector.shape_cast %105 : vector<16xf32> to vector<16x1xf32>
    %107 = tpu.reciprocal %106 {approx = true} : vector<16x1xf32> -> vector<16x1xf32>
    %108 = vector.broadcast %107 : vector<16x1xf32> to vector<16x16xf32>
    %109 = arith.mulf %104, %108 : vector<16x16xf32>
    %110 = arith.truncf %109 : vector<16x16xf32> to vector<16x16xbf16>
    %cst_37 = arith.constant dense<0.000000e+00> : vector<16x64xf32>
    %111 = tpu.matmul %110, %97, %cst_37 {dimension_numbers = #tpu.dot_dimension_numbers<[1], [0], [0], [1], [0, 0, 1, 1], [], []>} : vector<16x16xbf16>, vector<16x64xbf16>, vector<16x64xf32> -> vector<16x64xf32>
    %112 = arith.addf %91, %111 : vector<16x64xf32>
    %113 = vector.broadcast %14 : vector<1x64xf32> to vector<16x64xf32>
    %114 = arith.mulf %84, %113 : vector<16x64xf32>
    %115 = arith.truncf %114 : vector<16x64xf32> to vector<16x64xbf16>
    %116 = vector.broadcast %14 : vector<1x64xf32> to vector<16x64xf32>
    %117 = arith.mulf %87, %116 : vector<16x64xf32>
    %118 = arith.truncf %117 : vector<16x64xf32> to vector<16x64xbf16>
    %cst_38 = arith.constant dense<0.000000e+00> : vector<16x16xf32>
    %119 = tpu.matmul %90, %115, %cst_38 {dimension_numbers = #tpu.dot_dimension_numbers<[1], [1], [0], [0], [0, 0, 1, 0], [], []>} : vector<16x64xbf16>, vector<16x64xbf16>, vector<16x16xf32> -> vector<16x16xf32>
    %120 = arith.addf %119, %41 : vector<16x16xf32>
    %cst_39 = arith.constant dense<0xFF800000> : vector<16xf32>
    %121 = vector.multi_reduction <maximumf>, %120, %cst_39 [1] : vector<16x16xf32> to vector<16xf32>
    %122 = vector.shape_cast %121 : vector<16xf32> to vector<16x1xf32>
    %123 = vector.broadcast %122 : vector<16x1xf32> to vector<16x16xf32>
    %124 = arith.subf %120, %123 : vector<16x16xf32>
    %125 = math.exp %124 : vector<16x16xf32>
    %cst_40 = arith.constant dense<0.000000e+00> : vector<16xf32>
    %126 = vector.multi_reduction <add>, %125, %cst_40 [1] : vector<16x16xf32> to vector<16xf32>
    %127 = vector.shape_cast %126 : vector<16xf32> to vector<16x1xf32>
    %128 = tpu.reciprocal %127 {approx = true} : vector<16x1xf32> -> vector<16x1xf32>
    %129 = vector.broadcast %128 : vector<16x1xf32> to vector<16x16xf32>
    %130 = arith.mulf %125, %129 : vector<16x16xf32>
    %131 = arith.truncf %130 : vector<16x16xf32> to vector<16x16xbf16>
    %cst_41 = arith.constant dense<0.000000e+00> : vector<16x64xf32>
    %132 = tpu.matmul %131, %118, %cst_41 {dimension_numbers = #tpu.dot_dimension_numbers<[1], [0], [0], [1], [0, 0, 1, 1], [], []>} : vector<16x16xbf16>, vector<16x64xbf16>, vector<16x64xf32> -> vector<16x64xf32>
    %133 = arith.addf %112, %132 : vector<16x64xf32>
    %134 = vector.broadcast %21 : vector<1x64xf32> to vector<16x64xf32>
    %135 = arith.mulf %84, %134 : vector<16x64xf32>
    %136 = arith.truncf %135 : vector<16x64xf32> to vector<16x64xbf16>
    %137 = vector.broadcast %21 : vector<1x64xf32> to vector<16x64xf32>
    %138 = arith.mulf %87, %137 : vector<16x64xf32>
    %139 = arith.truncf %138 : vector<16x64xf32> to vector<16x64xbf16>
    %cst_42 = arith.constant dense<0.000000e+00> : vector<16x16xf32>
    %140 = tpu.matmul %90, %136, %cst_42 {dimension_numbers = #tpu.dot_dimension_numbers<[1], [1], [0], [0], [0, 0, 1, 0], [], []>} : vector<16x64xbf16>, vector<16x64xbf16>, vector<16x16xf32> -> vector<16x16xf32>
    %141 = arith.addf %140, %41 : vector<16x16xf32>
    %cst_43 = arith.constant dense<0xFF800000> : vector<16xf32>
    %142 = vector.multi_reduction <maximumf>, %141, %cst_43 [1] : vector<16x16xf32> to vector<16xf32>
    %143 = vector.shape_cast %142 : vector<16xf32> to vector<16x1xf32>
    %144 = vector.broadcast %143 : vector<16x1xf32> to vector<16x16xf32>
    %145 = arith.subf %141, %144 : vector<16x16xf32>
    %146 = math.exp %145 : vector<16x16xf32>
    %cst_44 = arith.constant dense<0.000000e+00> : vector<16xf32>
    %147 = vector.multi_reduction <add>, %146, %cst_44 [1] : vector<16x16xf32> to vector<16xf32>
    %148 = vector.shape_cast %147 : vector<16xf32> to vector<16x1xf32>
    %149 = tpu.reciprocal %148 {approx = true} : vector<16x1xf32> -> vector<16x1xf32>
    %150 = vector.broadcast %149 : vector<16x1xf32> to vector<16x16xf32>
    %151 = arith.mulf %146, %150 : vector<16x16xf32>
    %152 = arith.truncf %151 : vector<16x16xf32> to vector<16x16xbf16>
    %cst_45 = arith.constant dense<0.000000e+00> : vector<16x64xf32>
    %153 = tpu.matmul %152, %139, %cst_45 {dimension_numbers = #tpu.dot_dimension_numbers<[1], [0], [0], [1], [0, 0, 1, 1], [], []>} : vector<16x16xbf16>, vector<16x64xbf16>, vector<16x64xf32> -> vector<16x64xf32>
    %154 = arith.addf %133, %153 : vector<16x64xf32>
    %155 = vector.broadcast %28 : vector<1x64xf32> to vector<16x64xf32>
    %156 = arith.mulf %84, %155 : vector<16x64xf32>
    %157 = arith.truncf %156 : vector<16x64xf32> to vector<16x64xbf16>
    %158 = vector.broadcast %28 : vector<1x64xf32> to vector<16x64xf32>
    %159 = arith.mulf %87, %158 : vector<16x64xf32>
    %160 = arith.truncf %159 : vector<16x64xf32> to vector<16x64xbf16>
    %cst_46 = arith.constant dense<0.000000e+00> : vector<16x16xf32>
    %161 = tpu.matmul %90, %157, %cst_46 {dimension_numbers = #tpu.dot_dimension_numbers<[1], [1], [0], [0], [0, 0, 1, 0], [], []>} : vector<16x64xbf16>, vector<16x64xbf16>, vector<16x16xf32> -> vector<16x16xf32>
    %162 = arith.addf %161, %41 : vector<16x16xf32>
    %cst_47 = arith.constant dense<0xFF800000> : vector<16xf32>
    %163 = vector.multi_reduction <maximumf>, %162, %cst_47 [1] : vector<16x16xf32> to vector<16xf32>
    %164 = vector.shape_cast %163 : vector<16xf32> to vector<16x1xf32>
    %165 = vector.broadcast %164 : vector<16x1xf32> to vector<16x16xf32>
    %166 = arith.subf %162, %165 : vector<16x16xf32>
    %167 = math.exp %166 : vector<16x16xf32>
    %cst_48 = arith.constant dense<0.000000e+00> : vector<16xf32>
    %168 = vector.multi_reduction <add>, %167, %cst_48 [1] : vector<16x16xf32> to vector<16xf32>
    %169 = vector.shape_cast %168 : vector<16xf32> to vector<16x1xf32>
    %170 = tpu.reciprocal %169 {approx = true} : vector<16x1xf32> -> vector<16x1xf32>
    %171 = vector.broadcast %170 : vector<16x1xf32> to vector<16x16xf32>
    %172 = arith.mulf %167, %171 : vector<16x16xf32>
    %173 = arith.truncf %172 : vector<16x16xf32> to vector<16x16xbf16>
    %cst_49 = arith.constant dense<0.000000e+00> : vector<16x64xf32>
    %174 = tpu.matmul %173, %160, %cst_49 {dimension_numbers = #tpu.dot_dimension_numbers<[1], [0], [0], [1], [0, 0, 1, 1], [], []>} : vector<16x16xbf16>, vector<16x64xbf16>, vector<16x64xf32> -> vector<16x64xf32>
    %175 = arith.addf %154, %174 : vector<16x64xf32>
    %176 = arith.truncf %175 : vector<16x64xf32> to vector<16x64xbf16>
    %cst_50 = arith.constant dense<0.000000e+00> : vector<16x64xf32>
    %177 = tpu.matmul %176, %72, %cst_50 {dimension_numbers = #tpu.dot_dimension_numbers<[1], [0], [0], [1], [0, 0, 1, 1], [], []>} : vector<16x64xbf16>, vector<64x64xbf16>, vector<16x64xf32> -> vector<16x64xf32>
    %178 = vector.broadcast %76 : vector<1x64xf32> to vector<16x64xf32>
    %179 = arith.addf %177, %178 : vector<16x64xf32>
    %180 = arith.addf %44, %179 : vector<16x64xf32>
    %c2_51 = arith.constant 2 : index
    %c0_52 = arith.constant 0 : index
    %181 = vector.load %arg11[%c2_51, %c0_52] : memref<24x64xf32, #tpu.memory_space<vmem>>, vector<1x64xf32>
    %c3_53 = arith.constant 3 : index
    %c0_54 = arith.constant 0 : index
    %182 = vector.load %arg11[%c3_53, %c0_54] : memref<24x64xf32, #tpu.memory_space<vmem>>, vector<1x64xf32>
    %cst_55 = arith.constant dense<0.000000e+00> : vector<16xf32>
    %183 = vector.multi_reduction <add>, %180, %cst_55 [1] : vector<16x64xf32> to vector<16xf32>
    %184 = vector.shape_cast %183 : vector<16xf32> to vector<16x1xf32>
    %cst_56 = arith.constant 6.400000e+01 : f32
    %185 = vector.broadcast %cst_56 : f32 to vector<16x1xf32>
    %186 = arith.divf %184, %185 : vector<16x1xf32>
    %187 = vector.broadcast %186 : vector<16x1xf32> to vector<16x64xf32>
    %188 = arith.subf %180, %187 : vector<16x64xf32>
    %189 = arith.mulf %188, %188 : vector<16x64xf32>
    %cst_57 = arith.constant dense<0.000000e+00> : vector<16xf32>
    %190 = vector.multi_reduction <add>, %189, %cst_57 [1] : vector<16x64xf32> to vector<16xf32>
    %191 = vector.shape_cast %190 : vector<16xf32> to vector<16x1xf32>
    %cst_58 = arith.constant 6.400000e+01 : f32
    %192 = vector.broadcast %cst_58 : f32 to vector<16x1xf32>
    %193 = arith.divf %191, %192 : vector<16x1xf32>
    %194 = vector.broadcast %186 : vector<16x1xf32> to vector<16x64xf32>
    %195 = arith.subf %180, %194 : vector<16x64xf32>
    %cst_59 = arith.constant 9.99999974E-6 : f32
    %196 = vector.broadcast %cst_59 : f32 to vector<16x1xf32>
    %197 = arith.addf %193, %196 : vector<16x1xf32>
    %198 = math.rsqrt %197 : vector<16x1xf32>
    %199 = vector.broadcast %198 : vector<16x1xf32> to vector<16x64xf32>
    %200 = arith.mulf %195, %199 : vector<16x64xf32>
    %201 = vector.broadcast %181 : vector<1x64xf32> to vector<16x64xf32>
    %202 = arith.mulf %200, %201 : vector<16x64xf32>
    %203 = vector.broadcast %182 : vector<1x64xf32> to vector<16x64xf32>
    %204 = arith.addf %202, %203 : vector<16x64xf32>
    %c0_60 = arith.constant 0 : index
    %c0_61 = arith.constant 0 : index
    %205 = vector.load %arg7[%c0_60, %c0_61] : memref<256x128xbf16, #tpu.memory_space<vmem>>, vector<64x128xbf16>
    %c0_62 = arith.constant 0 : index
    %c0_63 = arith.constant 0 : index
    %206 = vector.load %arg8[%c0_62, %c0_63] : memref<4x128xf32, #tpu.memory_space<vmem>>, vector<1x128xf32>
    %c0_64 = arith.constant 0 : index
    %c0_65 = arith.constant 0 : index
    %207 = vector.load %arg9[%c0_64, %c0_65] : memref<512x64xbf16, #tpu.memory_space<vmem>>, vector<128x64xbf16>
    %c0_66 = arith.constant 0 : index
    %c0_67 = arith.constant 0 : index
    %208 = vector.load %arg10[%c0_66, %c0_67] : memref<4x64xf32, #tpu.memory_space<vmem>>, vector<1x64xf32>
    %209 = arith.truncf %204 : vector<16x64xf32> to vector<16x64xbf16>
    %cst_68 = arith.constant dense<0.000000e+00> : vector<16x128xf32>
    %210 = tpu.matmul %209, %205, %cst_68 {dimension_numbers = #tpu.dot_dimension_numbers<[1], [0], [0], [1], [0, 0, 1, 1], [], []>} : vector<16x64xbf16>, vector<64x128xbf16>, vector<16x128xf32> -> vector<16x128xf32>
    %211 = vector.broadcast %206 : vector<1x128xf32> to vector<16x128xf32>
    %212 = arith.addf %210, %211 : vector<16x128xf32>
    %cst_69 = arith.constant 0.000000e+00 : f32
    %213 = vector.broadcast %cst_69 : f32 to vector<16x128xf32>
    %214 = arith.maximumf %212, %213 : vector<16x128xf32>
    %215 = arith.truncf %214 : vector<16x128xf32> to vector<16x128xbf16>
    %cst_70 = arith.constant dense<0.000000e+00> : vector<16x64xf32>
    %216 = tpu.matmul %215, %207, %cst_70 {dimension_numbers = #tpu.dot_dimension_numbers<[1], [0], [0], [1], [0, 0, 1, 1], [], []>} : vector<16x128xbf16>, vector<128x64xbf16>, vector<16x64xf32> -> vector<16x64xf32>
    %217 = vector.broadcast %208 : vector<1x64xf32> to vector<16x64xf32>
    %218 = arith.addf %216, %217 : vector<16x64xf32>
    %219 = arith.addf %180, %218 : vector<16x64xf32>
    %c4 = arith.constant 4 : index
    %c0_71 = arith.constant 0 : index
    %220 = vector.load %arg11[%c4, %c0_71] : memref<24x64xf32, #tpu.memory_space<vmem>>, vector<1x64xf32>
    %c5 = arith.constant 5 : index
    %c0_72 = arith.constant 0 : index
    %221 = vector.load %arg11[%c5, %c0_72] : memref<24x64xf32, #tpu.memory_space<vmem>>, vector<1x64xf32>
    %cst_73 = arith.constant dense<0.000000e+00> : vector<16xf32>
    %222 = vector.multi_reduction <add>, %219, %cst_73 [1] : vector<16x64xf32> to vector<16xf32>
    %223 = vector.shape_cast %222 : vector<16xf32> to vector<16x1xf32>
    %cst_74 = arith.constant 6.400000e+01 : f32
    %224 = vector.broadcast %cst_74 : f32 to vector<16x1xf32>
    %225 = arith.divf %223, %224 : vector<16x1xf32>
    %226 = vector.broadcast %225 : vector<16x1xf32> to vector<16x64xf32>
    %227 = arith.subf %219, %226 : vector<16x64xf32>
    %228 = arith.mulf %227, %227 : vector<16x64xf32>
    %cst_75 = arith.constant dense<0.000000e+00> : vector<16xf32>
    %229 = vector.multi_reduction <add>, %228, %cst_75 [1] : vector<16x64xf32> to vector<16xf32>
    %230 = vector.shape_cast %229 : vector<16xf32> to vector<16x1xf32>
    %cst_76 = arith.constant 6.400000e+01 : f32
    %231 = vector.broadcast %cst_76 : f32 to vector<16x1xf32>
    %232 = arith.divf %230, %231 : vector<16x1xf32>
    %233 = vector.broadcast %225 : vector<16x1xf32> to vector<16x64xf32>
    %234 = arith.subf %219, %233 : vector<16x64xf32>
    %cst_77 = arith.constant 9.99999974E-6 : f32
    %235 = vector.broadcast %cst_77 : f32 to vector<16x1xf32>
    %236 = arith.addf %232, %235 : vector<16x1xf32>
    %237 = math.rsqrt %236 : vector<16x1xf32>
    %238 = vector.broadcast %237 : vector<16x1xf32> to vector<16x64xf32>
    %239 = arith.mulf %234, %238 : vector<16x64xf32>
    %240 = vector.broadcast %220 : vector<1x64xf32> to vector<16x64xf32>
    %241 = arith.mulf %239, %240 : vector<16x64xf32>
    %242 = vector.broadcast %221 : vector<1x64xf32> to vector<16x64xf32>
    %243 = arith.addf %241, %242 : vector<16x64xf32>
    %c256 = arith.constant 256 : index
    %c0_78 = arith.constant 0 : index
    %244 = vector.load %arg5[%c256, %c0_78] : memref<1536x64xbf16, #tpu.memory_space<vmem>>, vector<64x64xbf16>
    %c320 = arith.constant 320 : index
    %c0_79 = arith.constant 0 : index
    %245 = vector.load %arg5[%c320, %c0_79] : memref<1536x64xbf16, #tpu.memory_space<vmem>>, vector<64x64xbf16>
    %c384 = arith.constant 384 : index
    %c0_80 = arith.constant 0 : index
    %246 = vector.load %arg5[%c384, %c0_80] : memref<1536x64xbf16, #tpu.memory_space<vmem>>, vector<64x64xbf16>
    %c448 = arith.constant 448 : index
    %c0_81 = arith.constant 0 : index
    %247 = vector.load %arg5[%c448, %c0_81] : memref<1536x64xbf16, #tpu.memory_space<vmem>>, vector<64x64xbf16>
    %c4_82 = arith.constant 4 : index
    %c0_83 = arith.constant 0 : index
    %248 = vector.load %arg6[%c4_82, %c0_83] : memref<24x64xf32, #tpu.memory_space<vmem>>, vector<1x64xf32>
    %c5_84 = arith.constant 5 : index
    %c0_85 = arith.constant 0 : index
    %249 = vector.load %arg6[%c5_84, %c0_85] : memref<24x64xf32, #tpu.memory_space<vmem>>, vector<1x64xf32>
    %c6 = arith.constant 6 : index
    %c0_86 = arith.constant 0 : index
    %250 = vector.load %arg6[%c6, %c0_86] : memref<24x64xf32, #tpu.memory_space<vmem>>, vector<1x64xf32>
    %c7 = arith.constant 7 : index
    %c0_87 = arith.constant 0 : index
    %251 = vector.load %arg6[%c7, %c0_87] : memref<24x64xf32, #tpu.memory_space<vmem>>, vector<1x64xf32>
    %252 = arith.truncf %243 : vector<16x64xf32> to vector<16x64xbf16>
    %253 = arith.truncf %243 : vector<16x64xf32> to vector<16x64xbf16>
    %cst_88 = arith.constant dense<0.000000e+00> : vector<16x64xf32>
    %254 = tpu.matmul %252, %244, %cst_88 {dimension_numbers = #tpu.dot_dimension_numbers<[1], [0], [0], [1], [0, 0, 1, 1], [], []>} : vector<16x64xbf16>, vector<64x64xbf16>, vector<16x64xf32> -> vector<16x64xf32>
    %255 = vector.broadcast %248 : vector<1x64xf32> to vector<16x64xf32>
    %256 = arith.addf %254, %255 : vector<16x64xf32>
    %cst_89 = arith.constant dense<0.000000e+00> : vector<16x64xf32>
    %257 = tpu.matmul %253, %245, %cst_89 {dimension_numbers = #tpu.dot_dimension_numbers<[1], [0], [0], [1], [0, 0, 1, 1], [], []>} : vector<16x64xbf16>, vector<64x64xbf16>, vector<16x64xf32> -> vector<16x64xf32>
    %258 = vector.broadcast %249 : vector<1x64xf32> to vector<16x64xf32>
    %259 = arith.addf %257, %258 : vector<16x64xf32>
    %cst_90 = arith.constant dense<0.000000e+00> : vector<16x64xf32>
    %260 = tpu.matmul %253, %246, %cst_90 {dimension_numbers = #tpu.dot_dimension_numbers<[1], [0], [0], [1], [0, 0, 1, 1], [], []>} : vector<16x64xbf16>, vector<64x64xbf16>, vector<16x64xf32> -> vector<16x64xf32>
    %261 = vector.broadcast %250 : vector<1x64xf32> to vector<16x64xf32>
    %262 = arith.addf %260, %261 : vector<16x64xf32>
    %cst_91 = arith.constant 2.500000e-01 : f32
    %263 = vector.broadcast %cst_91 : f32 to vector<16x64xf32>
    %264 = arith.mulf %256, %263 : vector<16x64xf32>
    %265 = arith.truncf %264 : vector<16x64xf32> to vector<16x64xbf16>
    %cst_92 = arith.constant 0.000000e+00 : f32
    %266 = vector.broadcast %cst_92 : f32 to vector<16x64xf32>
    %267 = vector.broadcast %7 : vector<1x64xf32> to vector<16x64xf32>
    %268 = arith.mulf %259, %267 : vector<16x64xf32>
    %269 = arith.truncf %268 : vector<16x64xf32> to vector<16x64xbf16>
    %270 = vector.broadcast %7 : vector<1x64xf32> to vector<16x64xf32>
    %271 = arith.mulf %262, %270 : vector<16x64xf32>
    %272 = arith.truncf %271 : vector<16x64xf32> to vector<16x64xbf16>
    %cst_93 = arith.constant dense<0.000000e+00> : vector<16x16xf32>
    %273 = tpu.matmul %265, %269, %cst_93 {dimension_numbers = #tpu.dot_dimension_numbers<[1], [1], [0], [0], [0, 0, 1, 0], [], []>} : vector<16x64xbf16>, vector<16x64xbf16>, vector<16x16xf32> -> vector<16x16xf32>
    %274 = arith.addf %273, %41 : vector<16x16xf32>
    %cst_94 = arith.constant dense<0xFF800000> : vector<16xf32>
    %275 = vector.multi_reduction <maximumf>, %274, %cst_94 [1] : vector<16x16xf32> to vector<16xf32>
    %276 = vector.shape_cast %275 : vector<16xf32> to vector<16x1xf32>
    %277 = vector.broadcast %276 : vector<16x1xf32> to vector<16x16xf32>
    %278 = arith.subf %274, %277 : vector<16x16xf32>
    %279 = math.exp %278 : vector<16x16xf32>
    %cst_95 = arith.constant dense<0.000000e+00> : vector<16xf32>
    %280 = vector.multi_reduction <add>, %279, %cst_95 [1] : vector<16x16xf32> to vector<16xf32>
    %281 = vector.shape_cast %280 : vector<16xf32> to vector<16x1xf32>
    %282 = tpu.reciprocal %281 {approx = true} : vector<16x1xf32> -> vector<16x1xf32>
    %283 = vector.broadcast %282 : vector<16x1xf32> to vector<16x16xf32>
    %284 = arith.mulf %279, %283 : vector<16x16xf32>
    %285 = arith.truncf %284 : vector<16x16xf32> to vector<16x16xbf16>
    %cst_96 = arith.constant dense<0.000000e+00> : vector<16x64xf32>
    %286 = tpu.matmul %285, %272, %cst_96 {dimension_numbers = #tpu.dot_dimension_numbers<[1], [0], [0], [1], [0, 0, 1, 1], [], []>} : vector<16x16xbf16>, vector<16x64xbf16>, vector<16x64xf32> -> vector<16x64xf32>
    %287 = arith.addf %266, %286 : vector<16x64xf32>
    %288 = vector.broadcast %14 : vector<1x64xf32> to vector<16x64xf32>
    %289 = arith.mulf %259, %288 : vector<16x64xf32>
    %290 = arith.truncf %289 : vector<16x64xf32> to vector<16x64xbf16>
    %291 = vector.broadcast %14 : vector<1x64xf32> to vector<16x64xf32>
    %292 = arith.mulf %262, %291 : vector<16x64xf32>
    %293 = arith.truncf %292 : vector<16x64xf32> to vector<16x64xbf16>
    %cst_97 = arith.constant dense<0.000000e+00> : vector<16x16xf32>
    %294 = tpu.matmul %265, %290, %cst_97 {dimension_numbers = #tpu.dot_dimension_numbers<[1], [1], [0], [0], [0, 0, 1, 0], [], []>} : vector<16x64xbf16>, vector<16x64xbf16>, vector<16x16xf32> -> vector<16x16xf32>
    %295 = arith.addf %294, %41 : vector<16x16xf32>
    %cst_98 = arith.constant dense<0xFF800000> : vector<16xf32>
    %296 = vector.multi_reduction <maximumf>, %295, %cst_98 [1] : vector<16x16xf32> to vector<16xf32>
    %297 = vector.shape_cast %296 : vector<16xf32> to vector<16x1xf32>
    %298 = vector.broadcast %297 : vector<16x1xf32> to vector<16x16xf32>
    %299 = arith.subf %295, %298 : vector<16x16xf32>
    %300 = math.exp %299 : vector<16x16xf32>
    %cst_99 = arith.constant dense<0.000000e+00> : vector<16xf32>
    %301 = vector.multi_reduction <add>, %300, %cst_99 [1] : vector<16x16xf32> to vector<16xf32>
    %302 = vector.shape_cast %301 : vector<16xf32> to vector<16x1xf32>
    %303 = tpu.reciprocal %302 {approx = true} : vector<16x1xf32> -> vector<16x1xf32>
    %304 = vector.broadcast %303 : vector<16x1xf32> to vector<16x16xf32>
    %305 = arith.mulf %300, %304 : vector<16x16xf32>
    %306 = arith.truncf %305 : vector<16x16xf32> to vector<16x16xbf16>
    %cst_100 = arith.constant dense<0.000000e+00> : vector<16x64xf32>
    %307 = tpu.matmul %306, %293, %cst_100 {dimension_numbers = #tpu.dot_dimension_numbers<[1], [0], [0], [1], [0, 0, 1, 1], [], []>} : vector<16x16xbf16>, vector<16x64xbf16>, vector<16x64xf32> -> vector<16x64xf32>
    %308 = arith.addf %287, %307 : vector<16x64xf32>
    %309 = vector.broadcast %21 : vector<1x64xf32> to vector<16x64xf32>
    %310 = arith.mulf %259, %309 : vector<16x64xf32>
    %311 = arith.truncf %310 : vector<16x64xf32> to vector<16x64xbf16>
    %312 = vector.broadcast %21 : vector<1x64xf32> to vector<16x64xf32>
    %313 = arith.mulf %262, %312 : vector<16x64xf32>
    %314 = arith.truncf %313 : vector<16x64xf32> to vector<16x64xbf16>
    %cst_101 = arith.constant dense<0.000000e+00> : vector<16x16xf32>
    %315 = tpu.matmul %265, %311, %cst_101 {dimension_numbers = #tpu.dot_dimension_numbers<[1], [1], [0], [0], [0, 0, 1, 0], [], []>} : vector<16x64xbf16>, vector<16x64xbf16>, vector<16x16xf32> -> vector<16x16xf32>
    %316 = arith.addf %315, %41 : vector<16x16xf32>
    %cst_102 = arith.constant dense<0xFF800000> : vector<16xf32>
    %317 = vector.multi_reduction <maximumf>, %316, %cst_102 [1] : vector<16x16xf32> to vector<16xf32>
    %318 = vector.shape_cast %317 : vector<16xf32> to vector<16x1xf32>
    %319 = vector.broadcast %318 : vector<16x1xf32> to vector<16x16xf32>
    %320 = arith.subf %316, %319 : vector<16x16xf32>
    %321 = math.exp %320 : vector<16x16xf32>
    %cst_103 = arith.constant dense<0.000000e+00> : vector<16xf32>
    %322 = vector.multi_reduction <add>, %321, %cst_103 [1] : vector<16x16xf32> to vector<16xf32>
    %323 = vector.shape_cast %322 : vector<16xf32> to vector<16x1xf32>
    %324 = tpu.reciprocal %323 {approx = true} : vector<16x1xf32> -> vector<16x1xf32>
    %325 = vector.broadcast %324 : vector<16x1xf32> to vector<16x16xf32>
    %326 = arith.mulf %321, %325 : vector<16x16xf32>
    %327 = arith.truncf %326 : vector<16x16xf32> to vector<16x16xbf16>
    %cst_104 = arith.constant dense<0.000000e+00> : vector<16x64xf32>
    %328 = tpu.matmul %327, %314, %cst_104 {dimension_numbers = #tpu.dot_dimension_numbers<[1], [0], [0], [1], [0, 0, 1, 1], [], []>} : vector<16x16xbf16>, vector<16x64xbf16>, vector<16x64xf32> -> vector<16x64xf32>
    %329 = arith.addf %308, %328 : vector<16x64xf32>
    %330 = vector.broadcast %28 : vector<1x64xf32> to vector<16x64xf32>
    %331 = arith.mulf %259, %330 : vector<16x64xf32>
    %332 = arith.truncf %331 : vector<16x64xf32> to vector<16x64xbf16>
    %333 = vector.broadcast %28 : vector<1x64xf32> to vector<16x64xf32>
    %334 = arith.mulf %262, %333 : vector<16x64xf32>
    %335 = arith.truncf %334 : vector<16x64xf32> to vector<16x64xbf16>
    %cst_105 = arith.constant dense<0.000000e+00> : vector<16x16xf32>
    %336 = tpu.matmul %265, %332, %cst_105 {dimension_numbers = #tpu.dot_dimension_numbers<[1], [1], [0], [0], [0, 0, 1, 0], [], []>} : vector<16x64xbf16>, vector<16x64xbf16>, vector<16x16xf32> -> vector<16x16xf32>
    %337 = arith.addf %336, %41 : vector<16x16xf32>
    %cst_106 = arith.constant dense<0xFF800000> : vector<16xf32>
    %338 = vector.multi_reduction <maximumf>, %337, %cst_106 [1] : vector<16x16xf32> to vector<16xf32>
    %339 = vector.shape_cast %338 : vector<16xf32> to vector<16x1xf32>
    %340 = vector.broadcast %339 : vector<16x1xf32> to vector<16x16xf32>
    %341 = arith.subf %337, %340 : vector<16x16xf32>
    %342 = math.exp %341 : vector<16x16xf32>
    %cst_107 = arith.constant dense<0.000000e+00> : vector<16xf32>
    %343 = vector.multi_reduction <add>, %342, %cst_107 [1] : vector<16x16xf32> to vector<16xf32>
    %344 = vector.shape_cast %343 : vector<16xf32> to vector<16x1xf32>
    %345 = tpu.reciprocal %344 {approx = true} : vector<16x1xf32> -> vector<16x1xf32>
    %346 = vector.broadcast %345 : vector<16x1xf32> to vector<16x16xf32>
    %347 = arith.mulf %342, %346 : vector<16x16xf32>
    %348 = arith.truncf %347 : vector<16x16xf32> to vector<16x16xbf16>
    %cst_108 = arith.constant dense<0.000000e+00> : vector<16x64xf32>
    %349 = tpu.matmul %348, %335, %cst_108 {dimension_numbers = #tpu.dot_dimension_numbers<[1], [0], [0], [1], [0, 0, 1, 1], [], []>} : vector<16x16xbf16>, vector<16x64xbf16>, vector<16x64xf32> -> vector<16x64xf32>
    %350 = arith.addf %329, %349 : vector<16x64xf32>
    %351 = arith.truncf %350 : vector<16x64xf32> to vector<16x64xbf16>
    %cst_109 = arith.constant dense<0.000000e+00> : vector<16x64xf32>
    %352 = tpu.matmul %351, %247, %cst_109 {dimension_numbers = #tpu.dot_dimension_numbers<[1], [0], [0], [1], [0, 0, 1, 1], [], []>} : vector<16x64xbf16>, vector<64x64xbf16>, vector<16x64xf32> -> vector<16x64xf32>
    %353 = vector.broadcast %251 : vector<1x64xf32> to vector<16x64xf32>
    %354 = arith.addf %352, %353 : vector<16x64xf32>
    %355 = arith.addf %219, %354 : vector<16x64xf32>
    %c6_110 = arith.constant 6 : index
    %c0_111 = arith.constant 0 : index
    %356 = vector.load %arg11[%c6_110, %c0_111] : memref<24x64xf32, #tpu.memory_space<vmem>>, vector<1x64xf32>
    %c7_112 = arith.constant 7 : index
    %c0_113 = arith.constant 0 : index
    %357 = vector.load %arg11[%c7_112, %c0_113] : memref<24x64xf32, #tpu.memory_space<vmem>>, vector<1x64xf32>
    %cst_114 = arith.constant dense<0.000000e+00> : vector<16xf32>
    %358 = vector.multi_reduction <add>, %355, %cst_114 [1] : vector<16x64xf32> to vector<16xf32>
    %359 = vector.shape_cast %358 : vector<16xf32> to vector<16x1xf32>
    %cst_115 = arith.constant 6.400000e+01 : f32
    %360 = vector.broadcast %cst_115 : f32 to vector<16x1xf32>
    %361 = arith.divf %359, %360 : vector<16x1xf32>
    %362 = vector.broadcast %361 : vector<16x1xf32> to vector<16x64xf32>
    %363 = arith.subf %355, %362 : vector<16x64xf32>
    %364 = arith.mulf %363, %363 : vector<16x64xf32>
    %cst_116 = arith.constant dense<0.000000e+00> : vector<16xf32>
    %365 = vector.multi_reduction <add>, %364, %cst_116 [1] : vector<16x64xf32> to vector<16xf32>
    %366 = vector.shape_cast %365 : vector<16xf32> to vector<16x1xf32>
    %cst_117 = arith.constant 6.400000e+01 : f32
    %367 = vector.broadcast %cst_117 : f32 to vector<16x1xf32>
    %368 = arith.divf %366, %367 : vector<16x1xf32>
    %369 = vector.broadcast %361 : vector<16x1xf32> to vector<16x64xf32>
    %370 = arith.subf %355, %369 : vector<16x64xf32>
    %cst_118 = arith.constant 9.99999974E-6 : f32
    %371 = vector.broadcast %cst_118 : f32 to vector<16x1xf32>
    %372 = arith.addf %368, %371 : vector<16x1xf32>
    %373 = math.rsqrt %372 : vector<16x1xf32>
    %374 = vector.broadcast %373 : vector<16x1xf32> to vector<16x64xf32>
    %375 = arith.mulf %370, %374 : vector<16x64xf32>
    %376 = vector.broadcast %356 : vector<1x64xf32> to vector<16x64xf32>
    %377 = arith.mulf %375, %376 : vector<16x64xf32>
    %378 = vector.broadcast %357 : vector<1x64xf32> to vector<16x64xf32>
    %379 = arith.addf %377, %378 : vector<16x64xf32>
    %c64_119 = arith.constant 64 : index
    %c0_120 = arith.constant 0 : index
    %380 = vector.load %arg7[%c64_119, %c0_120] : memref<256x128xbf16, #tpu.memory_space<vmem>>, vector<64x128xbf16>
    %c1_121 = arith.constant 1 : index
    %c0_122 = arith.constant 0 : index
    %381 = vector.load %arg8[%c1_121, %c0_122] : memref<4x128xf32, #tpu.memory_space<vmem>>, vector<1x128xf32>
    %c128_123 = arith.constant 128 : index
    %c0_124 = arith.constant 0 : index
    %382 = vector.load %arg9[%c128_123, %c0_124] : memref<512x64xbf16, #tpu.memory_space<vmem>>, vector<128x64xbf16>
    %c1_125 = arith.constant 1 : index
    %c0_126 = arith.constant 0 : index
    %383 = vector.load %arg10[%c1_125, %c0_126] : memref<4x64xf32, #tpu.memory_space<vmem>>, vector<1x64xf32>
    %384 = arith.truncf %379 : vector<16x64xf32> to vector<16x64xbf16>
    %cst_127 = arith.constant dense<0.000000e+00> : vector<16x128xf32>
    %385 = tpu.matmul %384, %380, %cst_127 {dimension_numbers = #tpu.dot_dimension_numbers<[1], [0], [0], [1], [0, 0, 1, 1], [], []>} : vector<16x64xbf16>, vector<64x128xbf16>, vector<16x128xf32> -> vector<16x128xf32>
    %386 = vector.broadcast %381 : vector<1x128xf32> to vector<16x128xf32>
    %387 = arith.addf %385, %386 : vector<16x128xf32>
    %cst_128 = arith.constant 0.000000e+00 : f32
    %388 = vector.broadcast %cst_128 : f32 to vector<16x128xf32>
    %389 = arith.maximumf %387, %388 : vector<16x128xf32>
    %390 = arith.truncf %389 : vector<16x128xf32> to vector<16x128xbf16>
    %cst_129 = arith.constant dense<0.000000e+00> : vector<16x64xf32>
    %391 = tpu.matmul %390, %382, %cst_129 {dimension_numbers = #tpu.dot_dimension_numbers<[1], [0], [0], [1], [0, 0, 1, 1], [], []>} : vector<16x128xbf16>, vector<128x64xbf16>, vector<16x64xf32> -> vector<16x64xf32>
    %392 = vector.broadcast %383 : vector<1x64xf32> to vector<16x64xf32>
    %393 = arith.addf %391, %392 : vector<16x64xf32>
    %394 = arith.addf %355, %393 : vector<16x64xf32>
    %c8 = arith.constant 8 : index
    %c0_130 = arith.constant 0 : index
    %395 = vector.load %arg11[%c8, %c0_130] : memref<24x64xf32, #tpu.memory_space<vmem>>, vector<1x64xf32>
    %c9 = arith.constant 9 : index
    %c0_131 = arith.constant 0 : index
    %396 = vector.load %arg11[%c9, %c0_131] : memref<24x64xf32, #tpu.memory_space<vmem>>, vector<1x64xf32>
    %cst_132 = arith.constant dense<0.000000e+00> : vector<16xf32>
    %397 = vector.multi_reduction <add>, %394, %cst_132 [1] : vector<16x64xf32> to vector<16xf32>
    %398 = vector.shape_cast %397 : vector<16xf32> to vector<16x1xf32>
    %cst_133 = arith.constant 6.400000e+01 : f32
    %399 = vector.broadcast %cst_133 : f32 to vector<16x1xf32>
    %400 = arith.divf %398, %399 : vector<16x1xf32>
    %401 = vector.broadcast %400 : vector<16x1xf32> to vector<16x64xf32>
    %402 = arith.subf %394, %401 : vector<16x64xf32>
    %403 = arith.mulf %402, %402 : vector<16x64xf32>
    %cst_134 = arith.constant dense<0.000000e+00> : vector<16xf32>
    %404 = vector.multi_reduction <add>, %403, %cst_134 [1] : vector<16x64xf32> to vector<16xf32>
    %405 = vector.shape_cast %404 : vector<16xf32> to vector<16x1xf32>
    %cst_135 = arith.constant 6.400000e+01 : f32
    %406 = vector.broadcast %cst_135 : f32 to vector<16x1xf32>
    %407 = arith.divf %405, %406 : vector<16x1xf32>
    %408 = vector.broadcast %400 : vector<16x1xf32> to vector<16x64xf32>
    %409 = arith.subf %394, %408 : vector<16x64xf32>
    %cst_136 = arith.constant 9.99999974E-6 : f32
    %410 = vector.broadcast %cst_136 : f32 to vector<16x1xf32>
    %411 = arith.addf %407, %410 : vector<16x1xf32>
    %412 = math.rsqrt %411 : vector<16x1xf32>
    %413 = vector.broadcast %412 : vector<16x1xf32> to vector<16x64xf32>
    %414 = arith.mulf %409, %413 : vector<16x64xf32>
    %415 = vector.broadcast %395 : vector<1x64xf32> to vector<16x64xf32>
    %416 = arith.mulf %414, %415 : vector<16x64xf32>
    %417 = vector.broadcast %396 : vector<1x64xf32> to vector<16x64xf32>
    %418 = arith.addf %416, %417 : vector<16x64xf32>
    %419 = vector.extract_strided_slice %39 {offsets = [16, 0], sizes = [16, 64], strides = [1, 1]} : vector<32x64xf32> to vector<16x64xf32>
    %c10 = arith.constant 10 : index
    %c0_137 = arith.constant 0 : index
    %420 = vector.load %arg11[%c10, %c0_137] : memref<24x64xf32, #tpu.memory_space<vmem>>, vector<1x64xf32>
    %c11 = arith.constant 11 : index
    %c0_138 = arith.constant 0 : index
    %421 = vector.load %arg11[%c11, %c0_138] : memref<24x64xf32, #tpu.memory_space<vmem>>, vector<1x64xf32>
    %cst_139 = arith.constant dense<0.000000e+00> : vector<16xf32>
    %422 = vector.multi_reduction <add>, %419, %cst_139 [1] : vector<16x64xf32> to vector<16xf32>
    %423 = vector.shape_cast %422 : vector<16xf32> to vector<16x1xf32>
    %cst_140 = arith.constant 6.400000e+01 : f32
    %424 = vector.broadcast %cst_140 : f32 to vector<16x1xf32>
    %425 = arith.divf %423, %424 : vector<16x1xf32>
    %426 = vector.broadcast %425 : vector<16x1xf32> to vector<16x64xf32>
    %427 = arith.subf %419, %426 : vector<16x64xf32>
    %428 = arith.mulf %427, %427 : vector<16x64xf32>
    %cst_141 = arith.constant dense<0.000000e+00> : vector<16xf32>
    %429 = vector.multi_reduction <add>, %428, %cst_141 [1] : vector<16x64xf32> to vector<16xf32>
    %430 = vector.shape_cast %429 : vector<16xf32> to vector<16x1xf32>
    %cst_142 = arith.constant 6.400000e+01 : f32
    %431 = vector.broadcast %cst_142 : f32 to vector<16x1xf32>
    %432 = arith.divf %430, %431 : vector<16x1xf32>
    %433 = vector.broadcast %425 : vector<16x1xf32> to vector<16x64xf32>
    %434 = arith.subf %419, %433 : vector<16x64xf32>
    %cst_143 = arith.constant 9.99999974E-6 : f32
    %435 = vector.broadcast %cst_143 : f32 to vector<16x1xf32>
    %436 = arith.addf %432, %435 : vector<16x1xf32>
    %437 = math.rsqrt %436 : vector<16x1xf32>
    %438 = vector.broadcast %437 : vector<16x1xf32> to vector<16x64xf32>
    %439 = arith.mulf %434, %438 : vector<16x64xf32>
    %440 = vector.broadcast %420 : vector<1x64xf32> to vector<16x64xf32>
    %441 = arith.mulf %439, %440 : vector<16x64xf32>
    %442 = vector.broadcast %421 : vector<1x64xf32> to vector<16x64xf32>
    %443 = arith.addf %441, %442 : vector<16x64xf32>
    %c512 = arith.constant 512 : index
    %c0_144 = arith.constant 0 : index
    %444 = vector.load %arg5[%c512, %c0_144] : memref<1536x64xbf16, #tpu.memory_space<vmem>>, vector<64x64xbf16>
    %c576 = arith.constant 576 : index
    %c0_145 = arith.constant 0 : index
    %445 = vector.load %arg5[%c576, %c0_145] : memref<1536x64xbf16, #tpu.memory_space<vmem>>, vector<64x64xbf16>
    %c640 = arith.constant 640 : index
    %c0_146 = arith.constant 0 : index
    %446 = vector.load %arg5[%c640, %c0_146] : memref<1536x64xbf16, #tpu.memory_space<vmem>>, vector<64x64xbf16>
    %c704 = arith.constant 704 : index
    %c0_147 = arith.constant 0 : index
    %447 = vector.load %arg5[%c704, %c0_147] : memref<1536x64xbf16, #tpu.memory_space<vmem>>, vector<64x64xbf16>
    %c8_148 = arith.constant 8 : index
    %c0_149 = arith.constant 0 : index
    %448 = vector.load %arg6[%c8_148, %c0_149] : memref<24x64xf32, #tpu.memory_space<vmem>>, vector<1x64xf32>
    %c9_150 = arith.constant 9 : index
    %c0_151 = arith.constant 0 : index
    %449 = vector.load %arg6[%c9_150, %c0_151] : memref<24x64xf32, #tpu.memory_space<vmem>>, vector<1x64xf32>
    %c10_152 = arith.constant 10 : index
    %c0_153 = arith.constant 0 : index
    %450 = vector.load %arg6[%c10_152, %c0_153] : memref<24x64xf32, #tpu.memory_space<vmem>>, vector<1x64xf32>
    %c11_154 = arith.constant 11 : index
    %c0_155 = arith.constant 0 : index
    %451 = vector.load %arg6[%c11_154, %c0_155] : memref<24x64xf32, #tpu.memory_space<vmem>>, vector<1x64xf32>
    %452 = arith.truncf %443 : vector<16x64xf32> to vector<16x64xbf16>
    %453 = arith.truncf %443 : vector<16x64xf32> to vector<16x64xbf16>
    %cst_156 = arith.constant dense<0.000000e+00> : vector<16x64xf32>
    %454 = tpu.matmul %452, %444, %cst_156 {dimension_numbers = #tpu.dot_dimension_numbers<[1], [0], [0], [1], [0, 0, 1, 1], [], []>} : vector<16x64xbf16>, vector<64x64xbf16>, vector<16x64xf32> -> vector<16x64xf32>
    %455 = vector.broadcast %448 : vector<1x64xf32> to vector<16x64xf32>
    %456 = arith.addf %454, %455 : vector<16x64xf32>
    %cst_157 = arith.constant dense<0.000000e+00> : vector<16x64xf32>
    %457 = tpu.matmul %453, %445, %cst_157 {dimension_numbers = #tpu.dot_dimension_numbers<[1], [0], [0], [1], [0, 0, 1, 1], [], []>} : vector<16x64xbf16>, vector<64x64xbf16>, vector<16x64xf32> -> vector<16x64xf32>
    %458 = vector.broadcast %449 : vector<1x64xf32> to vector<16x64xf32>
    %459 = arith.addf %457, %458 : vector<16x64xf32>
    %cst_158 = arith.constant dense<0.000000e+00> : vector<16x64xf32>
    %460 = tpu.matmul %453, %446, %cst_158 {dimension_numbers = #tpu.dot_dimension_numbers<[1], [0], [0], [1], [0, 0, 1, 1], [], []>} : vector<16x64xbf16>, vector<64x64xbf16>, vector<16x64xf32> -> vector<16x64xf32>
    %461 = vector.broadcast %450 : vector<1x64xf32> to vector<16x64xf32>
    %462 = arith.addf %460, %461 : vector<16x64xf32>
    %cst_159 = arith.constant 2.500000e-01 : f32
    %463 = vector.broadcast %cst_159 : f32 to vector<16x64xf32>
    %464 = arith.mulf %456, %463 : vector<16x64xf32>
    %465 = arith.truncf %464 : vector<16x64xf32> to vector<16x64xbf16>
    %cst_160 = arith.constant 0.000000e+00 : f32
    %466 = vector.broadcast %cst_160 : f32 to vector<16x64xf32>
    %467 = vector.broadcast %7 : vector<1x64xf32> to vector<16x64xf32>
    %468 = arith.mulf %459, %467 : vector<16x64xf32>
    %469 = arith.truncf %468 : vector<16x64xf32> to vector<16x64xbf16>
    %470 = vector.broadcast %7 : vector<1x64xf32> to vector<16x64xf32>
    %471 = arith.mulf %462, %470 : vector<16x64xf32>
    %472 = arith.truncf %471 : vector<16x64xf32> to vector<16x64xbf16>
    %cst_161 = arith.constant dense<0.000000e+00> : vector<16x16xf32>
    %473 = tpu.matmul %465, %469, %cst_161 {dimension_numbers = #tpu.dot_dimension_numbers<[1], [1], [0], [0], [0, 0, 1, 0], [], []>} : vector<16x64xbf16>, vector<16x64xbf16>, vector<16x16xf32> -> vector<16x16xf32>
    %474 = arith.addf %473, %42 : vector<16x16xf32>
    %cst_162 = arith.constant dense<0xFF800000> : vector<16xf32>
    %475 = vector.multi_reduction <maximumf>, %474, %cst_162 [1] : vector<16x16xf32> to vector<16xf32>
    %476 = vector.shape_cast %475 : vector<16xf32> to vector<16x1xf32>
    %477 = vector.broadcast %476 : vector<16x1xf32> to vector<16x16xf32>
    %478 = arith.subf %474, %477 : vector<16x16xf32>
    %479 = math.exp %478 : vector<16x16xf32>
    %cst_163 = arith.constant dense<0.000000e+00> : vector<16xf32>
    %480 = vector.multi_reduction <add>, %479, %cst_163 [1] : vector<16x16xf32> to vector<16xf32>
    %481 = vector.shape_cast %480 : vector<16xf32> to vector<16x1xf32>
    %482 = tpu.reciprocal %481 {approx = true} : vector<16x1xf32> -> vector<16x1xf32>
    %483 = vector.broadcast %482 : vector<16x1xf32> to vector<16x16xf32>
    %484 = arith.mulf %479, %483 : vector<16x16xf32>
    %485 = arith.truncf %484 : vector<16x16xf32> to vector<16x16xbf16>
    %cst_164 = arith.constant dense<0.000000e+00> : vector<16x64xf32>
    %486 = tpu.matmul %485, %472, %cst_164 {dimension_numbers = #tpu.dot_dimension_numbers<[1], [0], [0], [1], [0, 0, 1, 1], [], []>} : vector<16x16xbf16>, vector<16x64xbf16>, vector<16x64xf32> -> vector<16x64xf32>
    %487 = arith.addf %466, %486 : vector<16x64xf32>
    %488 = vector.broadcast %14 : vector<1x64xf32> to vector<16x64xf32>
    %489 = arith.mulf %459, %488 : vector<16x64xf32>
    %490 = arith.truncf %489 : vector<16x64xf32> to vector<16x64xbf16>
    %491 = vector.broadcast %14 : vector<1x64xf32> to vector<16x64xf32>
    %492 = arith.mulf %462, %491 : vector<16x64xf32>
    %493 = arith.truncf %492 : vector<16x64xf32> to vector<16x64xbf16>
    %cst_165 = arith.constant dense<0.000000e+00> : vector<16x16xf32>
    %494 = tpu.matmul %465, %490, %cst_165 {dimension_numbers = #tpu.dot_dimension_numbers<[1], [1], [0], [0], [0, 0, 1, 0], [], []>} : vector<16x64xbf16>, vector<16x64xbf16>, vector<16x16xf32> -> vector<16x16xf32>
    %495 = arith.addf %494, %42 : vector<16x16xf32>
    %cst_166 = arith.constant dense<0xFF800000> : vector<16xf32>
    %496 = vector.multi_reduction <maximumf>, %495, %cst_166 [1] : vector<16x16xf32> to vector<16xf32>
    %497 = vector.shape_cast %496 : vector<16xf32> to vector<16x1xf32>
    %498 = vector.broadcast %497 : vector<16x1xf32> to vector<16x16xf32>
    %499 = arith.subf %495, %498 : vector<16x16xf32>
    %500 = math.exp %499 : vector<16x16xf32>
    %cst_167 = arith.constant dense<0.000000e+00> : vector<16xf32>
    %501 = vector.multi_reduction <add>, %500, %cst_167 [1] : vector<16x16xf32> to vector<16xf32>
    %502 = vector.shape_cast %501 : vector<16xf32> to vector<16x1xf32>
    %503 = tpu.reciprocal %502 {approx = true} : vector<16x1xf32> -> vector<16x1xf32>
    %504 = vector.broadcast %503 : vector<16x1xf32> to vector<16x16xf32>
    %505 = arith.mulf %500, %504 : vector<16x16xf32>
    %506 = arith.truncf %505 : vector<16x16xf32> to vector<16x16xbf16>
    %cst_168 = arith.constant dense<0.000000e+00> : vector<16x64xf32>
    %507 = tpu.matmul %506, %493, %cst_168 {dimension_numbers = #tpu.dot_dimension_numbers<[1], [0], [0], [1], [0, 0, 1, 1], [], []>} : vector<16x16xbf16>, vector<16x64xbf16>, vector<16x64xf32> -> vector<16x64xf32>
    %508 = arith.addf %487, %507 : vector<16x64xf32>
    %509 = vector.broadcast %21 : vector<1x64xf32> to vector<16x64xf32>
    %510 = arith.mulf %459, %509 : vector<16x64xf32>
    %511 = arith.truncf %510 : vector<16x64xf32> to vector<16x64xbf16>
    %512 = vector.broadcast %21 : vector<1x64xf32> to vector<16x64xf32>
    %513 = arith.mulf %462, %512 : vector<16x64xf32>
    %514 = arith.truncf %513 : vector<16x64xf32> to vector<16x64xbf16>
    %cst_169 = arith.constant dense<0.000000e+00> : vector<16x16xf32>
    %515 = tpu.matmul %465, %511, %cst_169 {dimension_numbers = #tpu.dot_dimension_numbers<[1], [1], [0], [0], [0, 0, 1, 0], [], []>} : vector<16x64xbf16>, vector<16x64xbf16>, vector<16x16xf32> -> vector<16x16xf32>
    %516 = arith.addf %515, %42 : vector<16x16xf32>
    %cst_170 = arith.constant dense<0xFF800000> : vector<16xf32>
    %517 = vector.multi_reduction <maximumf>, %516, %cst_170 [1] : vector<16x16xf32> to vector<16xf32>
    %518 = vector.shape_cast %517 : vector<16xf32> to vector<16x1xf32>
    %519 = vector.broadcast %518 : vector<16x1xf32> to vector<16x16xf32>
    %520 = arith.subf %516, %519 : vector<16x16xf32>
    %521 = math.exp %520 : vector<16x16xf32>
    %cst_171 = arith.constant dense<0.000000e+00> : vector<16xf32>
    %522 = vector.multi_reduction <add>, %521, %cst_171 [1] : vector<16x16xf32> to vector<16xf32>
    %523 = vector.shape_cast %522 : vector<16xf32> to vector<16x1xf32>
    %524 = tpu.reciprocal %523 {approx = true} : vector<16x1xf32> -> vector<16x1xf32>
    %525 = vector.broadcast %524 : vector<16x1xf32> to vector<16x16xf32>
    %526 = arith.mulf %521, %525 : vector<16x16xf32>
    %527 = arith.truncf %526 : vector<16x16xf32> to vector<16x16xbf16>
    %cst_172 = arith.constant dense<0.000000e+00> : vector<16x64xf32>
    %528 = tpu.matmul %527, %514, %cst_172 {dimension_numbers = #tpu.dot_dimension_numbers<[1], [0], [0], [1], [0, 0, 1, 1], [], []>} : vector<16x16xbf16>, vector<16x64xbf16>, vector<16x64xf32> -> vector<16x64xf32>
    %529 = arith.addf %508, %528 : vector<16x64xf32>
    %530 = vector.broadcast %28 : vector<1x64xf32> to vector<16x64xf32>
    %531 = arith.mulf %459, %530 : vector<16x64xf32>
    %532 = arith.truncf %531 : vector<16x64xf32> to vector<16x64xbf16>
    %533 = vector.broadcast %28 : vector<1x64xf32> to vector<16x64xf32>
    %534 = arith.mulf %462, %533 : vector<16x64xf32>
    %535 = arith.truncf %534 : vector<16x64xf32> to vector<16x64xbf16>
    %cst_173 = arith.constant dense<0.000000e+00> : vector<16x16xf32>
    %536 = tpu.matmul %465, %532, %cst_173 {dimension_numbers = #tpu.dot_dimension_numbers<[1], [1], [0], [0], [0, 0, 1, 0], [], []>} : vector<16x64xbf16>, vector<16x64xbf16>, vector<16x16xf32> -> vector<16x16xf32>
    %537 = arith.addf %536, %42 : vector<16x16xf32>
    %cst_174 = arith.constant dense<0xFF800000> : vector<16xf32>
    %538 = vector.multi_reduction <maximumf>, %537, %cst_174 [1] : vector<16x16xf32> to vector<16xf32>
    %539 = vector.shape_cast %538 : vector<16xf32> to vector<16x1xf32>
    %540 = vector.broadcast %539 : vector<16x1xf32> to vector<16x16xf32>
    %541 = arith.subf %537, %540 : vector<16x16xf32>
    %542 = math.exp %541 : vector<16x16xf32>
    %cst_175 = arith.constant dense<0.000000e+00> : vector<16xf32>
    %543 = vector.multi_reduction <add>, %542, %cst_175 [1] : vector<16x16xf32> to vector<16xf32>
    %544 = vector.shape_cast %543 : vector<16xf32> to vector<16x1xf32>
    %545 = tpu.reciprocal %544 {approx = true} : vector<16x1xf32> -> vector<16x1xf32>
    %546 = vector.broadcast %545 : vector<16x1xf32> to vector<16x16xf32>
    %547 = arith.mulf %542, %546 : vector<16x16xf32>
    %548 = arith.truncf %547 : vector<16x16xf32> to vector<16x16xbf16>
    %cst_176 = arith.constant dense<0.000000e+00> : vector<16x64xf32>
    %549 = tpu.matmul %548, %535, %cst_176 {dimension_numbers = #tpu.dot_dimension_numbers<[1], [0], [0], [1], [0, 0, 1, 1], [], []>} : vector<16x16xbf16>, vector<16x64xbf16>, vector<16x64xf32> -> vector<16x64xf32>
    %550 = arith.addf %529, %549 : vector<16x64xf32>
    %551 = arith.truncf %550 : vector<16x64xf32> to vector<16x64xbf16>
    %cst_177 = arith.constant dense<0.000000e+00> : vector<16x64xf32>
    %552 = tpu.matmul %551, %447, %cst_177 {dimension_numbers = #tpu.dot_dimension_numbers<[1], [0], [0], [1], [0, 0, 1, 1], [], []>} : vector<16x64xbf16>, vector<64x64xbf16>, vector<16x64xf32> -> vector<16x64xf32>
    %553 = vector.broadcast %451 : vector<1x64xf32> to vector<16x64xf32>
    %554 = arith.addf %552, %553 : vector<16x64xf32>
    %555 = arith.addf %419, %554 : vector<16x64xf32>
    %c12 = arith.constant 12 : index
    %c0_178 = arith.constant 0 : index
    %556 = vector.load %arg11[%c12, %c0_178] : memref<24x64xf32, #tpu.memory_space<vmem>>, vector<1x64xf32>
    %c13 = arith.constant 13 : index
    %c0_179 = arith.constant 0 : index
    %557 = vector.load %arg11[%c13, %c0_179] : memref<24x64xf32, #tpu.memory_space<vmem>>, vector<1x64xf32>
    %cst_180 = arith.constant dense<0.000000e+00> : vector<16xf32>
    %558 = vector.multi_reduction <add>, %555, %cst_180 [1] : vector<16x64xf32> to vector<16xf32>
    %559 = vector.shape_cast %558 : vector<16xf32> to vector<16x1xf32>
    %cst_181 = arith.constant 6.400000e+01 : f32
    %560 = vector.broadcast %cst_181 : f32 to vector<16x1xf32>
    %561 = arith.divf %559, %560 : vector<16x1xf32>
    %562 = vector.broadcast %561 : vector<16x1xf32> to vector<16x64xf32>
    %563 = arith.subf %555, %562 : vector<16x64xf32>
    %564 = arith.mulf %563, %563 : vector<16x64xf32>
    %cst_182 = arith.constant dense<0.000000e+00> : vector<16xf32>
    %565 = vector.multi_reduction <add>, %564, %cst_182 [1] : vector<16x64xf32> to vector<16xf32>
    %566 = vector.shape_cast %565 : vector<16xf32> to vector<16x1xf32>
    %cst_183 = arith.constant 6.400000e+01 : f32
    %567 = vector.broadcast %cst_183 : f32 to vector<16x1xf32>
    %568 = arith.divf %566, %567 : vector<16x1xf32>
    %569 = vector.broadcast %561 : vector<16x1xf32> to vector<16x64xf32>
    %570 = arith.subf %555, %569 : vector<16x64xf32>
    %cst_184 = arith.constant 9.99999974E-6 : f32
    %571 = vector.broadcast %cst_184 : f32 to vector<16x1xf32>
    %572 = arith.addf %568, %571 : vector<16x1xf32>
    %573 = math.rsqrt %572 : vector<16x1xf32>
    %574 = vector.broadcast %573 : vector<16x1xf32> to vector<16x64xf32>
    %575 = arith.mulf %570, %574 : vector<16x64xf32>
    %576 = vector.broadcast %556 : vector<1x64xf32> to vector<16x64xf32>
    %577 = arith.mulf %575, %576 : vector<16x64xf32>
    %578 = vector.broadcast %557 : vector<1x64xf32> to vector<16x64xf32>
    %579 = arith.addf %577, %578 : vector<16x64xf32>
    %c768 = arith.constant 768 : index
    %c0_185 = arith.constant 0 : index
    %580 = vector.load %arg5[%c768, %c0_185] : memref<1536x64xbf16, #tpu.memory_space<vmem>>, vector<64x64xbf16>
    %c832 = arith.constant 832 : index
    %c0_186 = arith.constant 0 : index
    %581 = vector.load %arg5[%c832, %c0_186] : memref<1536x64xbf16, #tpu.memory_space<vmem>>, vector<64x64xbf16>
    %c896 = arith.constant 896 : index
    %c0_187 = arith.constant 0 : index
    %582 = vector.load %arg5[%c896, %c0_187] : memref<1536x64xbf16, #tpu.memory_space<vmem>>, vector<64x64xbf16>
    %c960 = arith.constant 960 : index
    %c0_188 = arith.constant 0 : index
    %583 = vector.load %arg5[%c960, %c0_188] : memref<1536x64xbf16, #tpu.memory_space<vmem>>, vector<64x64xbf16>
    %c12_189 = arith.constant 12 : index
    %c0_190 = arith.constant 0 : index
    %584 = vector.load %arg6[%c12_189, %c0_190] : memref<24x64xf32, #tpu.memory_space<vmem>>, vector<1x64xf32>
    %c13_191 = arith.constant 13 : index
    %c0_192 = arith.constant 0 : index
    %585 = vector.load %arg6[%c13_191, %c0_192] : memref<24x64xf32, #tpu.memory_space<vmem>>, vector<1x64xf32>
    %c14 = arith.constant 14 : index
    %c0_193 = arith.constant 0 : index
    %586 = vector.load %arg6[%c14, %c0_193] : memref<24x64xf32, #tpu.memory_space<vmem>>, vector<1x64xf32>
    %c15 = arith.constant 15 : index
    %c0_194 = arith.constant 0 : index
    %587 = vector.load %arg6[%c15, %c0_194] : memref<24x64xf32, #tpu.memory_space<vmem>>, vector<1x64xf32>
    %588 = arith.truncf %579 : vector<16x64xf32> to vector<16x64xbf16>
    %589 = arith.truncf %418 : vector<16x64xf32> to vector<16x64xbf16>
    %cst_195 = arith.constant dense<0.000000e+00> : vector<16x64xf32>
    %590 = tpu.matmul %588, %580, %cst_195 {dimension_numbers = #tpu.dot_dimension_numbers<[1], [0], [0], [1], [0, 0, 1, 1], [], []>} : vector<16x64xbf16>, vector<64x64xbf16>, vector<16x64xf32> -> vector<16x64xf32>
    %591 = vector.broadcast %584 : vector<1x64xf32> to vector<16x64xf32>
    %592 = arith.addf %590, %591 : vector<16x64xf32>
    %cst_196 = arith.constant dense<0.000000e+00> : vector<16x64xf32>
    %593 = tpu.matmul %589, %581, %cst_196 {dimension_numbers = #tpu.dot_dimension_numbers<[1], [0], [0], [1], [0, 0, 1, 1], [], []>} : vector<16x64xbf16>, vector<64x64xbf16>, vector<16x64xf32> -> vector<16x64xf32>
    %594 = vector.broadcast %585 : vector<1x64xf32> to vector<16x64xf32>
    %595 = arith.addf %593, %594 : vector<16x64xf32>
    %cst_197 = arith.constant dense<0.000000e+00> : vector<16x64xf32>
    %596 = tpu.matmul %589, %582, %cst_197 {dimension_numbers = #tpu.dot_dimension_numbers<[1], [0], [0], [1], [0, 0, 1, 1], [], []>} : vector<16x64xbf16>, vector<64x64xbf16>, vector<16x64xf32> -> vector<16x64xf32>
    %597 = vector.broadcast %586 : vector<1x64xf32> to vector<16x64xf32>
    %598 = arith.addf %596, %597 : vector<16x64xf32>
    %cst_198 = arith.constant 2.500000e-01 : f32
    %599 = vector.broadcast %cst_198 : f32 to vector<16x64xf32>
    %600 = arith.mulf %592, %599 : vector<16x64xf32>
    %601 = arith.truncf %600 : vector<16x64xf32> to vector<16x64xbf16>
    %cst_199 = arith.constant 0.000000e+00 : f32
    %602 = vector.broadcast %cst_199 : f32 to vector<16x64xf32>
    %603 = vector.broadcast %7 : vector<1x64xf32> to vector<16x64xf32>
    %604 = arith.mulf %595, %603 : vector<16x64xf32>
    %605 = arith.truncf %604 : vector<16x64xf32> to vector<16x64xbf16>
    %606 = vector.broadcast %7 : vector<1x64xf32> to vector<16x64xf32>
    %607 = arith.mulf %598, %606 : vector<16x64xf32>
    %608 = arith.truncf %607 : vector<16x64xf32> to vector<16x64xbf16>
    %cst_200 = arith.constant dense<0.000000e+00> : vector<16x16xf32>
    %609 = tpu.matmul %601, %605, %cst_200 {dimension_numbers = #tpu.dot_dimension_numbers<[1], [1], [0], [0], [0, 0, 1, 0], [], []>} : vector<16x64xbf16>, vector<16x64xbf16>, vector<16x16xf32> -> vector<16x16xf32>
    %610 = arith.addf %609, %43 : vector<16x16xf32>
    %cst_201 = arith.constant dense<0xFF800000> : vector<16xf32>
    %611 = vector.multi_reduction <maximumf>, %610, %cst_201 [1] : vector<16x16xf32> to vector<16xf32>
    %612 = vector.shape_cast %611 : vector<16xf32> to vector<16x1xf32>
    %613 = vector.broadcast %612 : vector<16x1xf32> to vector<16x16xf32>
    %614 = arith.subf %610, %613 : vector<16x16xf32>
    %615 = math.exp %614 : vector<16x16xf32>
    %cst_202 = arith.constant dense<0.000000e+00> : vector<16xf32>
    %616 = vector.multi_reduction <add>, %615, %cst_202 [1] : vector<16x16xf32> to vector<16xf32>
    %617 = vector.shape_cast %616 : vector<16xf32> to vector<16x1xf32>
    %618 = tpu.reciprocal %617 {approx = true} : vector<16x1xf32> -> vector<16x1xf32>
    %619 = vector.broadcast %618 : vector<16x1xf32> to vector<16x16xf32>
    %620 = arith.mulf %615, %619 : vector<16x16xf32>
    %621 = arith.truncf %620 : vector<16x16xf32> to vector<16x16xbf16>
    %cst_203 = arith.constant dense<0.000000e+00> : vector<16x64xf32>
    %622 = tpu.matmul %621, %608, %cst_203 {dimension_numbers = #tpu.dot_dimension_numbers<[1], [0], [0], [1], [0, 0, 1, 1], [], []>} : vector<16x16xbf16>, vector<16x64xbf16>, vector<16x64xf32> -> vector<16x64xf32>
    %623 = arith.addf %602, %622 : vector<16x64xf32>
    %624 = vector.broadcast %14 : vector<1x64xf32> to vector<16x64xf32>
    %625 = arith.mulf %595, %624 : vector<16x64xf32>
    %626 = arith.truncf %625 : vector<16x64xf32> to vector<16x64xbf16>
    %627 = vector.broadcast %14 : vector<1x64xf32> to vector<16x64xf32>
    %628 = arith.mulf %598, %627 : vector<16x64xf32>
    %629 = arith.truncf %628 : vector<16x64xf32> to vector<16x64xbf16>
    %cst_204 = arith.constant dense<0.000000e+00> : vector<16x16xf32>
    %630 = tpu.matmul %601, %626, %cst_204 {dimension_numbers = #tpu.dot_dimension_numbers<[1], [1], [0], [0], [0, 0, 1, 0], [], []>} : vector<16x64xbf16>, vector<16x64xbf16>, vector<16x16xf32> -> vector<16x16xf32>
    %631 = arith.addf %630, %43 : vector<16x16xf32>
    %cst_205 = arith.constant dense<0xFF800000> : vector<16xf32>
    %632 = vector.multi_reduction <maximumf>, %631, %cst_205 [1] : vector<16x16xf32> to vector<16xf32>
    %633 = vector.shape_cast %632 : vector<16xf32> to vector<16x1xf32>
    %634 = vector.broadcast %633 : vector<16x1xf32> to vector<16x16xf32>
    %635 = arith.subf %631, %634 : vector<16x16xf32>
    %636 = math.exp %635 : vector<16x16xf32>
    %cst_206 = arith.constant dense<0.000000e+00> : vector<16xf32>
    %637 = vector.multi_reduction <add>, %636, %cst_206 [1] : vector<16x16xf32> to vector<16xf32>
    %638 = vector.shape_cast %637 : vector<16xf32> to vector<16x1xf32>
    %639 = tpu.reciprocal %638 {approx = true} : vector<16x1xf32> -> vector<16x1xf32>
    %640 = vector.broadcast %639 : vector<16x1xf32> to vector<16x16xf32>
    %641 = arith.mulf %636, %640 : vector<16x16xf32>
    %642 = arith.truncf %641 : vector<16x16xf32> to vector<16x16xbf16>
    %cst_207 = arith.constant dense<0.000000e+00> : vector<16x64xf32>
    %643 = tpu.matmul %642, %629, %cst_207 {dimension_numbers = #tpu.dot_dimension_numbers<[1], [0], [0], [1], [0, 0, 1, 1], [], []>} : vector<16x16xbf16>, vector<16x64xbf16>, vector<16x64xf32> -> vector<16x64xf32>
    %644 = arith.addf %623, %643 : vector<16x64xf32>
    %645 = vector.broadcast %21 : vector<1x64xf32> to vector<16x64xf32>
    %646 = arith.mulf %595, %645 : vector<16x64xf32>
    %647 = arith.truncf %646 : vector<16x64xf32> to vector<16x64xbf16>
    %648 = vector.broadcast %21 : vector<1x64xf32> to vector<16x64xf32>
    %649 = arith.mulf %598, %648 : vector<16x64xf32>
    %650 = arith.truncf %649 : vector<16x64xf32> to vector<16x64xbf16>
    %cst_208 = arith.constant dense<0.000000e+00> : vector<16x16xf32>
    %651 = tpu.matmul %601, %647, %cst_208 {dimension_numbers = #tpu.dot_dimension_numbers<[1], [1], [0], [0], [0, 0, 1, 0], [], []>} : vector<16x64xbf16>, vector<16x64xbf16>, vector<16x16xf32> -> vector<16x16xf32>
    %652 = arith.addf %651, %43 : vector<16x16xf32>
    %cst_209 = arith.constant dense<0xFF800000> : vector<16xf32>
    %653 = vector.multi_reduction <maximumf>, %652, %cst_209 [1] : vector<16x16xf32> to vector<16xf32>
    %654 = vector.shape_cast %653 : vector<16xf32> to vector<16x1xf32>
    %655 = vector.broadcast %654 : vector<16x1xf32> to vector<16x16xf32>
    %656 = arith.subf %652, %655 : vector<16x16xf32>
    %657 = math.exp %656 : vector<16x16xf32>
    %cst_210 = arith.constant dense<0.000000e+00> : vector<16xf32>
    %658 = vector.multi_reduction <add>, %657, %cst_210 [1] : vector<16x16xf32> to vector<16xf32>
    %659 = vector.shape_cast %658 : vector<16xf32> to vector<16x1xf32>
    %660 = tpu.reciprocal %659 {approx = true} : vector<16x1xf32> -> vector<16x1xf32>
    %661 = vector.broadcast %660 : vector<16x1xf32> to vector<16x16xf32>
    %662 = arith.mulf %657, %661 : vector<16x16xf32>
    %663 = arith.truncf %662 : vector<16x16xf32> to vector<16x16xbf16>
    %cst_211 = arith.constant dense<0.000000e+00> : vector<16x64xf32>
    %664 = tpu.matmul %663, %650, %cst_211 {dimension_numbers = #tpu.dot_dimension_numbers<[1], [0], [0], [1], [0, 0, 1, 1], [], []>} : vector<16x16xbf16>, vector<16x64xbf16>, vector<16x64xf32> -> vector<16x64xf32>
    %665 = arith.addf %644, %664 : vector<16x64xf32>
    %666 = vector.broadcast %28 : vector<1x64xf32> to vector<16x64xf32>
    %667 = arith.mulf %595, %666 : vector<16x64xf32>
    %668 = arith.truncf %667 : vector<16x64xf32> to vector<16x64xbf16>
    %669 = vector.broadcast %28 : vector<1x64xf32> to vector<16x64xf32>
    %670 = arith.mulf %598, %669 : vector<16x64xf32>
    %671 = arith.truncf %670 : vector<16x64xf32> to vector<16x64xbf16>
    %cst_212 = arith.constant dense<0.000000e+00> : vector<16x16xf32>
    %672 = tpu.matmul %601, %668, %cst_212 {dimension_numbers = #tpu.dot_dimension_numbers<[1], [1], [0], [0], [0, 0, 1, 0], [], []>} : vector<16x64xbf16>, vector<16x64xbf16>, vector<16x16xf32> -> vector<16x16xf32>
    %673 = arith.addf %672, %43 : vector<16x16xf32>
    %cst_213 = arith.constant dense<0xFF800000> : vector<16xf32>
    %674 = vector.multi_reduction <maximumf>, %673, %cst_213 [1] : vector<16x16xf32> to vector<16xf32>
    %675 = vector.shape_cast %674 : vector<16xf32> to vector<16x1xf32>
    %676 = vector.broadcast %675 : vector<16x1xf32> to vector<16x16xf32>
    %677 = arith.subf %673, %676 : vector<16x16xf32>
    %678 = math.exp %677 : vector<16x16xf32>
    %cst_214 = arith.constant dense<0.000000e+00> : vector<16xf32>
    %679 = vector.multi_reduction <add>, %678, %cst_214 [1] : vector<16x16xf32> to vector<16xf32>
    %680 = vector.shape_cast %679 : vector<16xf32> to vector<16x1xf32>
    %681 = tpu.reciprocal %680 {approx = true} : vector<16x1xf32> -> vector<16x1xf32>
    %682 = vector.broadcast %681 : vector<16x1xf32> to vector<16x16xf32>
    %683 = arith.mulf %678, %682 : vector<16x16xf32>
    %684 = arith.truncf %683 : vector<16x16xf32> to vector<16x16xbf16>
    %cst_215 = arith.constant dense<0.000000e+00> : vector<16x64xf32>
    %685 = tpu.matmul %684, %671, %cst_215 {dimension_numbers = #tpu.dot_dimension_numbers<[1], [0], [0], [1], [0, 0, 1, 1], [], []>} : vector<16x16xbf16>, vector<16x64xbf16>, vector<16x64xf32> -> vector<16x64xf32>
    %686 = arith.addf %665, %685 : vector<16x64xf32>
    %687 = arith.truncf %686 : vector<16x64xf32> to vector<16x64xbf16>
    %cst_216 = arith.constant dense<0.000000e+00> : vector<16x64xf32>
    %688 = tpu.matmul %687, %583, %cst_216 {dimension_numbers = #tpu.dot_dimension_numbers<[1], [0], [0], [1], [0, 0, 1, 1], [], []>} : vector<16x64xbf16>, vector<64x64xbf16>, vector<16x64xf32> -> vector<16x64xf32>
    %689 = vector.broadcast %587 : vector<1x64xf32> to vector<16x64xf32>
    %690 = arith.addf %688, %689 : vector<16x64xf32>
    %691 = arith.addf %555, %690 : vector<16x64xf32>
    %c14_217 = arith.constant 14 : index
    %c0_218 = arith.constant 0 : index
    %692 = vector.load %arg11[%c14_217, %c0_218] : memref<24x64xf32, #tpu.memory_space<vmem>>, vector<1x64xf32>
    %c15_219 = arith.constant 15 : index
    %c0_220 = arith.constant 0 : index
    %693 = vector.load %arg11[%c15_219, %c0_220] : memref<24x64xf32, #tpu.memory_space<vmem>>, vector<1x64xf32>
    %cst_221 = arith.constant dense<0.000000e+00> : vector<16xf32>
    %694 = vector.multi_reduction <add>, %691, %cst_221 [1] : vector<16x64xf32> to vector<16xf32>
    %695 = vector.shape_cast %694 : vector<16xf32> to vector<16x1xf32>
    %cst_222 = arith.constant 6.400000e+01 : f32
    %696 = vector.broadcast %cst_222 : f32 to vector<16x1xf32>
    %697 = arith.divf %695, %696 : vector<16x1xf32>
    %698 = vector.broadcast %697 : vector<16x1xf32> to vector<16x64xf32>
    %699 = arith.subf %691, %698 : vector<16x64xf32>
    %700 = arith.mulf %699, %699 : vector<16x64xf32>
    %cst_223 = arith.constant dense<0.000000e+00> : vector<16xf32>
    %701 = vector.multi_reduction <add>, %700, %cst_223 [1] : vector<16x64xf32> to vector<16xf32>
    %702 = vector.shape_cast %701 : vector<16xf32> to vector<16x1xf32>
    %cst_224 = arith.constant 6.400000e+01 : f32
    %703 = vector.broadcast %cst_224 : f32 to vector<16x1xf32>
    %704 = arith.divf %702, %703 : vector<16x1xf32>
    %705 = vector.broadcast %697 : vector<16x1xf32> to vector<16x64xf32>
    %706 = arith.subf %691, %705 : vector<16x64xf32>
    %cst_225 = arith.constant 9.99999974E-6 : f32
    %707 = vector.broadcast %cst_225 : f32 to vector<16x1xf32>
    %708 = arith.addf %704, %707 : vector<16x1xf32>
    %709 = math.rsqrt %708 : vector<16x1xf32>
    %710 = vector.broadcast %709 : vector<16x1xf32> to vector<16x64xf32>
    %711 = arith.mulf %706, %710 : vector<16x64xf32>
    %712 = vector.broadcast %692 : vector<1x64xf32> to vector<16x64xf32>
    %713 = arith.mulf %711, %712 : vector<16x64xf32>
    %714 = vector.broadcast %693 : vector<1x64xf32> to vector<16x64xf32>
    %715 = arith.addf %713, %714 : vector<16x64xf32>
    %c128_226 = arith.constant 128 : index
    %c0_227 = arith.constant 0 : index
    %716 = vector.load %arg7[%c128_226, %c0_227] : memref<256x128xbf16, #tpu.memory_space<vmem>>, vector<64x128xbf16>
    %c2_228 = arith.constant 2 : index
    %c0_229 = arith.constant 0 : index
    %717 = vector.load %arg8[%c2_228, %c0_229] : memref<4x128xf32, #tpu.memory_space<vmem>>, vector<1x128xf32>
    %c256_230 = arith.constant 256 : index
    %c0_231 = arith.constant 0 : index
    %718 = vector.load %arg9[%c256_230, %c0_231] : memref<512x64xbf16, #tpu.memory_space<vmem>>, vector<128x64xbf16>
    %c2_232 = arith.constant 2 : index
    %c0_233 = arith.constant 0 : index
    %719 = vector.load %arg10[%c2_232, %c0_233] : memref<4x64xf32, #tpu.memory_space<vmem>>, vector<1x64xf32>
    %720 = arith.truncf %715 : vector<16x64xf32> to vector<16x64xbf16>
    %cst_234 = arith.constant dense<0.000000e+00> : vector<16x128xf32>
    %721 = tpu.matmul %720, %716, %cst_234 {dimension_numbers = #tpu.dot_dimension_numbers<[1], [0], [0], [1], [0, 0, 1, 1], [], []>} : vector<16x64xbf16>, vector<64x128xbf16>, vector<16x128xf32> -> vector<16x128xf32>
    %722 = vector.broadcast %717 : vector<1x128xf32> to vector<16x128xf32>
    %723 = arith.addf %721, %722 : vector<16x128xf32>
    %cst_235 = arith.constant 0.000000e+00 : f32
    %724 = vector.broadcast %cst_235 : f32 to vector<16x128xf32>
    %725 = arith.maximumf %723, %724 : vector<16x128xf32>
    %726 = arith.truncf %725 : vector<16x128xf32> to vector<16x128xbf16>
    %cst_236 = arith.constant dense<0.000000e+00> : vector<16x64xf32>
    %727 = tpu.matmul %726, %718, %cst_236 {dimension_numbers = #tpu.dot_dimension_numbers<[1], [0], [0], [1], [0, 0, 1, 1], [], []>} : vector<16x128xbf16>, vector<128x64xbf16>, vector<16x64xf32> -> vector<16x64xf32>
    %728 = vector.broadcast %719 : vector<1x64xf32> to vector<16x64xf32>
    %729 = arith.addf %727, %728 : vector<16x64xf32>
    %730 = arith.addf %691, %729 : vector<16x64xf32>
    %c16 = arith.constant 16 : index
    %c0_237 = arith.constant 0 : index
    %731 = vector.load %arg11[%c16, %c0_237] : memref<24x64xf32, #tpu.memory_space<vmem>>, vector<1x64xf32>
    %c17 = arith.constant 17 : index
    %c0_238 = arith.constant 0 : index
    %732 = vector.load %arg11[%c17, %c0_238] : memref<24x64xf32, #tpu.memory_space<vmem>>, vector<1x64xf32>
    %cst_239 = arith.constant dense<0.000000e+00> : vector<16xf32>
    %733 = vector.multi_reduction <add>, %730, %cst_239 [1] : vector<16x64xf32> to vector<16xf32>
    %734 = vector.shape_cast %733 : vector<16xf32> to vector<16x1xf32>
    %cst_240 = arith.constant 6.400000e+01 : f32
    %735 = vector.broadcast %cst_240 : f32 to vector<16x1xf32>
    %736 = arith.divf %734, %735 : vector<16x1xf32>
    %737 = vector.broadcast %736 : vector<16x1xf32> to vector<16x64xf32>
    %738 = arith.subf %730, %737 : vector<16x64xf32>
    %739 = arith.mulf %738, %738 : vector<16x64xf32>
    %cst_241 = arith.constant dense<0.000000e+00> : vector<16xf32>
    %740 = vector.multi_reduction <add>, %739, %cst_241 [1] : vector<16x64xf32> to vector<16xf32>
    %741 = vector.shape_cast %740 : vector<16xf32> to vector<16x1xf32>
    %cst_242 = arith.constant 6.400000e+01 : f32
    %742 = vector.broadcast %cst_242 : f32 to vector<16x1xf32>
    %743 = arith.divf %741, %742 : vector<16x1xf32>
    %744 = vector.broadcast %736 : vector<16x1xf32> to vector<16x64xf32>
    %745 = arith.subf %730, %744 : vector<16x64xf32>
    %cst_243 = arith.constant 9.99999974E-6 : f32
    %746 = vector.broadcast %cst_243 : f32 to vector<16x1xf32>
    %747 = arith.addf %743, %746 : vector<16x1xf32>
    %748 = math.rsqrt %747 : vector<16x1xf32>
    %749 = vector.broadcast %748 : vector<16x1xf32> to vector<16x64xf32>
    %750 = arith.mulf %745, %749 : vector<16x64xf32>
    %751 = vector.broadcast %731 : vector<1x64xf32> to vector<16x64xf32>
    %752 = arith.mulf %750, %751 : vector<16x64xf32>
    %753 = vector.broadcast %732 : vector<1x64xf32> to vector<16x64xf32>
    %754 = arith.addf %752, %753 : vector<16x64xf32>
    %c1024 = arith.constant 1024 : index
    %c0_244 = arith.constant 0 : index
    %755 = vector.load %arg5[%c1024, %c0_244] : memref<1536x64xbf16, #tpu.memory_space<vmem>>, vector<64x64xbf16>
    %c1088 = arith.constant 1088 : index
    %c0_245 = arith.constant 0 : index
    %756 = vector.load %arg5[%c1088, %c0_245] : memref<1536x64xbf16, #tpu.memory_space<vmem>>, vector<64x64xbf16>
    %c1152 = arith.constant 1152 : index
    %c0_246 = arith.constant 0 : index
    %757 = vector.load %arg5[%c1152, %c0_246] : memref<1536x64xbf16, #tpu.memory_space<vmem>>, vector<64x64xbf16>
    %c1216 = arith.constant 1216 : index
    %c0_247 = arith.constant 0 : index
    %758 = vector.load %arg5[%c1216, %c0_247] : memref<1536x64xbf16, #tpu.memory_space<vmem>>, vector<64x64xbf16>
    %c16_248 = arith.constant 16 : index
    %c0_249 = arith.constant 0 : index
    %759 = vector.load %arg6[%c16_248, %c0_249] : memref<24x64xf32, #tpu.memory_space<vmem>>, vector<1x64xf32>
    %c17_250 = arith.constant 17 : index
    %c0_251 = arith.constant 0 : index
    %760 = vector.load %arg6[%c17_250, %c0_251] : memref<24x64xf32, #tpu.memory_space<vmem>>, vector<1x64xf32>
    %c18 = arith.constant 18 : index
    %c0_252 = arith.constant 0 : index
    %761 = vector.load %arg6[%c18, %c0_252] : memref<24x64xf32, #tpu.memory_space<vmem>>, vector<1x64xf32>
    %c19 = arith.constant 19 : index
    %c0_253 = arith.constant 0 : index
    %762 = vector.load %arg6[%c19, %c0_253] : memref<24x64xf32, #tpu.memory_space<vmem>>, vector<1x64xf32>
    %763 = arith.truncf %754 : vector<16x64xf32> to vector<16x64xbf16>
    %764 = arith.truncf %754 : vector<16x64xf32> to vector<16x64xbf16>
    %cst_254 = arith.constant dense<0.000000e+00> : vector<16x64xf32>
    %765 = tpu.matmul %763, %755, %cst_254 {dimension_numbers = #tpu.dot_dimension_numbers<[1], [0], [0], [1], [0, 0, 1, 1], [], []>} : vector<16x64xbf16>, vector<64x64xbf16>, vector<16x64xf32> -> vector<16x64xf32>
    %766 = vector.broadcast %759 : vector<1x64xf32> to vector<16x64xf32>
    %767 = arith.addf %765, %766 : vector<16x64xf32>
    %cst_255 = arith.constant dense<0.000000e+00> : vector<16x64xf32>
    %768 = tpu.matmul %764, %756, %cst_255 {dimension_numbers = #tpu.dot_dimension_numbers<[1], [0], [0], [1], [0, 0, 1, 1], [], []>} : vector<16x64xbf16>, vector<64x64xbf16>, vector<16x64xf32> -> vector<16x64xf32>
    %769 = vector.broadcast %760 : vector<1x64xf32> to vector<16x64xf32>
    %770 = arith.addf %768, %769 : vector<16x64xf32>
    %cst_256 = arith.constant dense<0.000000e+00> : vector<16x64xf32>
    %771 = tpu.matmul %764, %757, %cst_256 {dimension_numbers = #tpu.dot_dimension_numbers<[1], [0], [0], [1], [0, 0, 1, 1], [], []>} : vector<16x64xbf16>, vector<64x64xbf16>, vector<16x64xf32> -> vector<16x64xf32>
    %772 = vector.broadcast %761 : vector<1x64xf32> to vector<16x64xf32>
    %773 = arith.addf %771, %772 : vector<16x64xf32>
    %cst_257 = arith.constant 2.500000e-01 : f32
    %774 = vector.broadcast %cst_257 : f32 to vector<16x64xf32>
    %775 = arith.mulf %767, %774 : vector<16x64xf32>
    %776 = arith.truncf %775 : vector<16x64xf32> to vector<16x64xbf16>
    %cst_258 = arith.constant 0.000000e+00 : f32
    %777 = vector.broadcast %cst_258 : f32 to vector<16x64xf32>
    %778 = vector.broadcast %7 : vector<1x64xf32> to vector<16x64xf32>
    %779 = arith.mulf %770, %778 : vector<16x64xf32>
    %780 = arith.truncf %779 : vector<16x64xf32> to vector<16x64xbf16>
    %781 = vector.broadcast %7 : vector<1x64xf32> to vector<16x64xf32>
    %782 = arith.mulf %773, %781 : vector<16x64xf32>
    %783 = arith.truncf %782 : vector<16x64xf32> to vector<16x64xbf16>
    %cst_259 = arith.constant dense<0.000000e+00> : vector<16x16xf32>
    %784 = tpu.matmul %776, %780, %cst_259 {dimension_numbers = #tpu.dot_dimension_numbers<[1], [1], [0], [0], [0, 0, 1, 0], [], []>} : vector<16x64xbf16>, vector<16x64xbf16>, vector<16x16xf32> -> vector<16x16xf32>
    %785 = arith.addf %784, %42 : vector<16x16xf32>
    %cst_260 = arith.constant dense<0xFF800000> : vector<16xf32>
    %786 = vector.multi_reduction <maximumf>, %785, %cst_260 [1] : vector<16x16xf32> to vector<16xf32>
    %787 = vector.shape_cast %786 : vector<16xf32> to vector<16x1xf32>
    %788 = vector.broadcast %787 : vector<16x1xf32> to vector<16x16xf32>
    %789 = arith.subf %785, %788 : vector<16x16xf32>
    %790 = math.exp %789 : vector<16x16xf32>
    %cst_261 = arith.constant dense<0.000000e+00> : vector<16xf32>
    %791 = vector.multi_reduction <add>, %790, %cst_261 [1] : vector<16x16xf32> to vector<16xf32>
    %792 = vector.shape_cast %791 : vector<16xf32> to vector<16x1xf32>
    %793 = tpu.reciprocal %792 {approx = true} : vector<16x1xf32> -> vector<16x1xf32>
    %794 = vector.broadcast %793 : vector<16x1xf32> to vector<16x16xf32>
    %795 = arith.mulf %790, %794 : vector<16x16xf32>
    %796 = arith.truncf %795 : vector<16x16xf32> to vector<16x16xbf16>
    %cst_262 = arith.constant dense<0.000000e+00> : vector<16x64xf32>
    %797 = tpu.matmul %796, %783, %cst_262 {dimension_numbers = #tpu.dot_dimension_numbers<[1], [0], [0], [1], [0, 0, 1, 1], [], []>} : vector<16x16xbf16>, vector<16x64xbf16>, vector<16x64xf32> -> vector<16x64xf32>
    %798 = arith.addf %777, %797 : vector<16x64xf32>
    %799 = vector.broadcast %14 : vector<1x64xf32> to vector<16x64xf32>
    %800 = arith.mulf %770, %799 : vector<16x64xf32>
    %801 = arith.truncf %800 : vector<16x64xf32> to vector<16x64xbf16>
    %802 = vector.broadcast %14 : vector<1x64xf32> to vector<16x64xf32>
    %803 = arith.mulf %773, %802 : vector<16x64xf32>
    %804 = arith.truncf %803 : vector<16x64xf32> to vector<16x64xbf16>
    %cst_263 = arith.constant dense<0.000000e+00> : vector<16x16xf32>
    %805 = tpu.matmul %776, %801, %cst_263 {dimension_numbers = #tpu.dot_dimension_numbers<[1], [1], [0], [0], [0, 0, 1, 0], [], []>} : vector<16x64xbf16>, vector<16x64xbf16>, vector<16x16xf32> -> vector<16x16xf32>
    %806 = arith.addf %805, %42 : vector<16x16xf32>
    %cst_264 = arith.constant dense<0xFF800000> : vector<16xf32>
    %807 = vector.multi_reduction <maximumf>, %806, %cst_264 [1] : vector<16x16xf32> to vector<16xf32>
    %808 = vector.shape_cast %807 : vector<16xf32> to vector<16x1xf32>
    %809 = vector.broadcast %808 : vector<16x1xf32> to vector<16x16xf32>
    %810 = arith.subf %806, %809 : vector<16x16xf32>
    %811 = math.exp %810 : vector<16x16xf32>
    %cst_265 = arith.constant dense<0.000000e+00> : vector<16xf32>
    %812 = vector.multi_reduction <add>, %811, %cst_265 [1] : vector<16x16xf32> to vector<16xf32>
    %813 = vector.shape_cast %812 : vector<16xf32> to vector<16x1xf32>
    %814 = tpu.reciprocal %813 {approx = true} : vector<16x1xf32> -> vector<16x1xf32>
    %815 = vector.broadcast %814 : vector<16x1xf32> to vector<16x16xf32>
    %816 = arith.mulf %811, %815 : vector<16x16xf32>
    %817 = arith.truncf %816 : vector<16x16xf32> to vector<16x16xbf16>
    %cst_266 = arith.constant dense<0.000000e+00> : vector<16x64xf32>
    %818 = tpu.matmul %817, %804, %cst_266 {dimension_numbers = #tpu.dot_dimension_numbers<[1], [0], [0], [1], [0, 0, 1, 1], [], []>} : vector<16x16xbf16>, vector<16x64xbf16>, vector<16x64xf32> -> vector<16x64xf32>
    %819 = arith.addf %798, %818 : vector<16x64xf32>
    %820 = vector.broadcast %21 : vector<1x64xf32> to vector<16x64xf32>
    %821 = arith.mulf %770, %820 : vector<16x64xf32>
    %822 = arith.truncf %821 : vector<16x64xf32> to vector<16x64xbf16>
    %823 = vector.broadcast %21 : vector<1x64xf32> to vector<16x64xf32>
    %824 = arith.mulf %773, %823 : vector<16x64xf32>
    %825 = arith.truncf %824 : vector<16x64xf32> to vector<16x64xbf16>
    %cst_267 = arith.constant dense<0.000000e+00> : vector<16x16xf32>
    %826 = tpu.matmul %776, %822, %cst_267 {dimension_numbers = #tpu.dot_dimension_numbers<[1], [1], [0], [0], [0, 0, 1, 0], [], []>} : vector<16x64xbf16>, vector<16x64xbf16>, vector<16x16xf32> -> vector<16x16xf32>
    %827 = arith.addf %826, %42 : vector<16x16xf32>
    %cst_268 = arith.constant dense<0xFF800000> : vector<16xf32>
    %828 = vector.multi_reduction <maximumf>, %827, %cst_268 [1] : vector<16x16xf32> to vector<16xf32>
    %829 = vector.shape_cast %828 : vector<16xf32> to vector<16x1xf32>
    %830 = vector.broadcast %829 : vector<16x1xf32> to vector<16x16xf32>
    %831 = arith.subf %827, %830 : vector<16x16xf32>
    %832 = math.exp %831 : vector<16x16xf32>
    %cst_269 = arith.constant dense<0.000000e+00> : vector<16xf32>
    %833 = vector.multi_reduction <add>, %832, %cst_269 [1] : vector<16x16xf32> to vector<16xf32>
    %834 = vector.shape_cast %833 : vector<16xf32> to vector<16x1xf32>
    %835 = tpu.reciprocal %834 {approx = true} : vector<16x1xf32> -> vector<16x1xf32>
    %836 = vector.broadcast %835 : vector<16x1xf32> to vector<16x16xf32>
    %837 = arith.mulf %832, %836 : vector<16x16xf32>
    %838 = arith.truncf %837 : vector<16x16xf32> to vector<16x16xbf16>
    %cst_270 = arith.constant dense<0.000000e+00> : vector<16x64xf32>
    %839 = tpu.matmul %838, %825, %cst_270 {dimension_numbers = #tpu.dot_dimension_numbers<[1], [0], [0], [1], [0, 0, 1, 1], [], []>} : vector<16x16xbf16>, vector<16x64xbf16>, vector<16x64xf32> -> vector<16x64xf32>
    %840 = arith.addf %819, %839 : vector<16x64xf32>
    %841 = vector.broadcast %28 : vector<1x64xf32> to vector<16x64xf32>
    %842 = arith.mulf %770, %841 : vector<16x64xf32>
    %843 = arith.truncf %842 : vector<16x64xf32> to vector<16x64xbf16>
    %844 = vector.broadcast %28 : vector<1x64xf32> to vector<16x64xf32>
    %845 = arith.mulf %773, %844 : vector<16x64xf32>
    %846 = arith.truncf %845 : vector<16x64xf32> to vector<16x64xbf16>
    %cst_271 = arith.constant dense<0.000000e+00> : vector<16x16xf32>
    %847 = tpu.matmul %776, %843, %cst_271 {dimension_numbers = #tpu.dot_dimension_numbers<[1], [1], [0], [0], [0, 0, 1, 0], [], []>} : vector<16x64xbf16>, vector<16x64xbf16>, vector<16x16xf32> -> vector<16x16xf32>
    %848 = arith.addf %847, %42 : vector<16x16xf32>
    %cst_272 = arith.constant dense<0xFF800000> : vector<16xf32>
    %849 = vector.multi_reduction <maximumf>, %848, %cst_272 [1] : vector<16x16xf32> to vector<16xf32>
    %850 = vector.shape_cast %849 : vector<16xf32> to vector<16x1xf32>
    %851 = vector.broadcast %850 : vector<16x1xf32> to vector<16x16xf32>
    %852 = arith.subf %848, %851 : vector<16x16xf32>
    %853 = math.exp %852 : vector<16x16xf32>
    %cst_273 = arith.constant dense<0.000000e+00> : vector<16xf32>
    %854 = vector.multi_reduction <add>, %853, %cst_273 [1] : vector<16x16xf32> to vector<16xf32>
    %855 = vector.shape_cast %854 : vector<16xf32> to vector<16x1xf32>
    %856 = tpu.reciprocal %855 {approx = true} : vector<16x1xf32> -> vector<16x1xf32>
    %857 = vector.broadcast %856 : vector<16x1xf32> to vector<16x16xf32>
    %858 = arith.mulf %853, %857 : vector<16x16xf32>
    %859 = arith.truncf %858 : vector<16x16xf32> to vector<16x16xbf16>
    %cst_274 = arith.constant dense<0.000000e+00> : vector<16x64xf32>
    %860 = tpu.matmul %859, %846, %cst_274 {dimension_numbers = #tpu.dot_dimension_numbers<[1], [0], [0], [1], [0, 0, 1, 1], [], []>} : vector<16x16xbf16>, vector<16x64xbf16>, vector<16x64xf32> -> vector<16x64xf32>
    %861 = arith.addf %840, %860 : vector<16x64xf32>
    %862 = arith.truncf %861 : vector<16x64xf32> to vector<16x64xbf16>
    %cst_275 = arith.constant dense<0.000000e+00> : vector<16x64xf32>
    %863 = tpu.matmul %862, %758, %cst_275 {dimension_numbers = #tpu.dot_dimension_numbers<[1], [0], [0], [1], [0, 0, 1, 1], [], []>} : vector<16x64xbf16>, vector<64x64xbf16>, vector<16x64xf32> -> vector<16x64xf32>
    %864 = vector.broadcast %762 : vector<1x64xf32> to vector<16x64xf32>
    %865 = arith.addf %863, %864 : vector<16x64xf32>
    %866 = arith.addf %730, %865 : vector<16x64xf32>
    %c18_276 = arith.constant 18 : index
    %c0_277 = arith.constant 0 : index
    %867 = vector.load %arg11[%c18_276, %c0_277] : memref<24x64xf32, #tpu.memory_space<vmem>>, vector<1x64xf32>
    %c19_278 = arith.constant 19 : index
    %c0_279 = arith.constant 0 : index
    %868 = vector.load %arg11[%c19_278, %c0_279] : memref<24x64xf32, #tpu.memory_space<vmem>>, vector<1x64xf32>
    %cst_280 = arith.constant dense<0.000000e+00> : vector<16xf32>
    %869 = vector.multi_reduction <add>, %866, %cst_280 [1] : vector<16x64xf32> to vector<16xf32>
    %870 = vector.shape_cast %869 : vector<16xf32> to vector<16x1xf32>
    %cst_281 = arith.constant 6.400000e+01 : f32
    %871 = vector.broadcast %cst_281 : f32 to vector<16x1xf32>
    %872 = arith.divf %870, %871 : vector<16x1xf32>
    %873 = vector.broadcast %872 : vector<16x1xf32> to vector<16x64xf32>
    %874 = arith.subf %866, %873 : vector<16x64xf32>
    %875 = arith.mulf %874, %874 : vector<16x64xf32>
    %cst_282 = arith.constant dense<0.000000e+00> : vector<16xf32>
    %876 = vector.multi_reduction <add>, %875, %cst_282 [1] : vector<16x64xf32> to vector<16xf32>
    %877 = vector.shape_cast %876 : vector<16xf32> to vector<16x1xf32>
    %cst_283 = arith.constant 6.400000e+01 : f32
    %878 = vector.broadcast %cst_283 : f32 to vector<16x1xf32>
    %879 = arith.divf %877, %878 : vector<16x1xf32>
    %880 = vector.broadcast %872 : vector<16x1xf32> to vector<16x64xf32>
    %881 = arith.subf %866, %880 : vector<16x64xf32>
    %cst_284 = arith.constant 9.99999974E-6 : f32
    %882 = vector.broadcast %cst_284 : f32 to vector<16x1xf32>
    %883 = arith.addf %879, %882 : vector<16x1xf32>
    %884 = math.rsqrt %883 : vector<16x1xf32>
    %885 = vector.broadcast %884 : vector<16x1xf32> to vector<16x64xf32>
    %886 = arith.mulf %881, %885 : vector<16x64xf32>
    %887 = vector.broadcast %867 : vector<1x64xf32> to vector<16x64xf32>
    %888 = arith.mulf %886, %887 : vector<16x64xf32>
    %889 = vector.broadcast %868 : vector<1x64xf32> to vector<16x64xf32>
    %890 = arith.addf %888, %889 : vector<16x64xf32>
    %c1280 = arith.constant 1280 : index
    %c0_285 = arith.constant 0 : index
    %891 = vector.load %arg5[%c1280, %c0_285] : memref<1536x64xbf16, #tpu.memory_space<vmem>>, vector<64x64xbf16>
    %c1344 = arith.constant 1344 : index
    %c0_286 = arith.constant 0 : index
    %892 = vector.load %arg5[%c1344, %c0_286] : memref<1536x64xbf16, #tpu.memory_space<vmem>>, vector<64x64xbf16>
    %c1408 = arith.constant 1408 : index
    %c0_287 = arith.constant 0 : index
    %893 = vector.load %arg5[%c1408, %c0_287] : memref<1536x64xbf16, #tpu.memory_space<vmem>>, vector<64x64xbf16>
    %c1472 = arith.constant 1472 : index
    %c0_288 = arith.constant 0 : index
    %894 = vector.load %arg5[%c1472, %c0_288] : memref<1536x64xbf16, #tpu.memory_space<vmem>>, vector<64x64xbf16>
    %c20 = arith.constant 20 : index
    %c0_289 = arith.constant 0 : index
    %895 = vector.load %arg6[%c20, %c0_289] : memref<24x64xf32, #tpu.memory_space<vmem>>, vector<1x64xf32>
    %c21 = arith.constant 21 : index
    %c0_290 = arith.constant 0 : index
    %896 = vector.load %arg6[%c21, %c0_290] : memref<24x64xf32, #tpu.memory_space<vmem>>, vector<1x64xf32>
    %c22 = arith.constant 22 : index
    %c0_291 = arith.constant 0 : index
    %897 = vector.load %arg6[%c22, %c0_291] : memref<24x64xf32, #tpu.memory_space<vmem>>, vector<1x64xf32>
    %c23 = arith.constant 23 : index
    %c0_292 = arith.constant 0 : index
    %898 = vector.load %arg6[%c23, %c0_292] : memref<24x64xf32, #tpu.memory_space<vmem>>, vector<1x64xf32>
    %899 = arith.truncf %890 : vector<16x64xf32> to vector<16x64xbf16>
    %900 = arith.truncf %418 : vector<16x64xf32> to vector<16x64xbf16>
    %cst_293 = arith.constant dense<0.000000e+00> : vector<16x64xf32>
    %901 = tpu.matmul %899, %891, %cst_293 {dimension_numbers = #tpu.dot_dimension_numbers<[1], [0], [0], [1], [0, 0, 1, 1], [], []>} : vector<16x64xbf16>, vector<64x64xbf16>, vector<16x64xf32> -> vector<16x64xf32>
    %902 = vector.broadcast %895 : vector<1x64xf32> to vector<16x64xf32>
    %903 = arith.addf %901, %902 : vector<16x64xf32>
    %cst_294 = arith.constant dense<0.000000e+00> : vector<16x64xf32>
    %904 = tpu.matmul %900, %892, %cst_294 {dimension_numbers = #tpu.dot_dimension_numbers<[1], [0], [0], [1], [0, 0, 1, 1], [], []>} : vector<16x64xbf16>, vector<64x64xbf16>, vector<16x64xf32> -> vector<16x64xf32>
    %905 = vector.broadcast %896 : vector<1x64xf32> to vector<16x64xf32>
    %906 = arith.addf %904, %905 : vector<16x64xf32>
    %cst_295 = arith.constant dense<0.000000e+00> : vector<16x64xf32>
    %907 = tpu.matmul %900, %893, %cst_295 {dimension_numbers = #tpu.dot_dimension_numbers<[1], [0], [0], [1], [0, 0, 1, 1], [], []>} : vector<16x64xbf16>, vector<64x64xbf16>, vector<16x64xf32> -> vector<16x64xf32>
    %908 = vector.broadcast %897 : vector<1x64xf32> to vector<16x64xf32>
    %909 = arith.addf %907, %908 : vector<16x64xf32>
    %cst_296 = arith.constant 2.500000e-01 : f32
    %910 = vector.broadcast %cst_296 : f32 to vector<16x64xf32>
    %911 = arith.mulf %903, %910 : vector<16x64xf32>
    %912 = arith.truncf %911 : vector<16x64xf32> to vector<16x64xbf16>
    %cst_297 = arith.constant 0.000000e+00 : f32
    %913 = vector.broadcast %cst_297 : f32 to vector<16x64xf32>
    %914 = vector.broadcast %7 : vector<1x64xf32> to vector<16x64xf32>
    %915 = arith.mulf %906, %914 : vector<16x64xf32>
    %916 = arith.truncf %915 : vector<16x64xf32> to vector<16x64xbf16>
    %917 = vector.broadcast %7 : vector<1x64xf32> to vector<16x64xf32>
    %918 = arith.mulf %909, %917 : vector<16x64xf32>
    %919 = arith.truncf %918 : vector<16x64xf32> to vector<16x64xbf16>
    %cst_298 = arith.constant dense<0.000000e+00> : vector<16x16xf32>
    %920 = tpu.matmul %912, %916, %cst_298 {dimension_numbers = #tpu.dot_dimension_numbers<[1], [1], [0], [0], [0, 0, 1, 0], [], []>} : vector<16x64xbf16>, vector<16x64xbf16>, vector<16x16xf32> -> vector<16x16xf32>
    %921 = arith.addf %920, %43 : vector<16x16xf32>
    %cst_299 = arith.constant dense<0xFF800000> : vector<16xf32>
    %922 = vector.multi_reduction <maximumf>, %921, %cst_299 [1] : vector<16x16xf32> to vector<16xf32>
    %923 = vector.shape_cast %922 : vector<16xf32> to vector<16x1xf32>
    %924 = vector.broadcast %923 : vector<16x1xf32> to vector<16x16xf32>
    %925 = arith.subf %921, %924 : vector<16x16xf32>
    %926 = math.exp %925 : vector<16x16xf32>
    %cst_300 = arith.constant dense<0.000000e+00> : vector<16xf32>
    %927 = vector.multi_reduction <add>, %926, %cst_300 [1] : vector<16x16xf32> to vector<16xf32>
    %928 = vector.shape_cast %927 : vector<16xf32> to vector<16x1xf32>
    %929 = tpu.reciprocal %928 {approx = true} : vector<16x1xf32> -> vector<16x1xf32>
    %930 = vector.broadcast %929 : vector<16x1xf32> to vector<16x16xf32>
    %931 = arith.mulf %926, %930 : vector<16x16xf32>
    %932 = arith.truncf %931 : vector<16x16xf32> to vector<16x16xbf16>
    %cst_301 = arith.constant dense<0.000000e+00> : vector<16x64xf32>
    %933 = tpu.matmul %932, %919, %cst_301 {dimension_numbers = #tpu.dot_dimension_numbers<[1], [0], [0], [1], [0, 0, 1, 1], [], []>} : vector<16x16xbf16>, vector<16x64xbf16>, vector<16x64xf32> -> vector<16x64xf32>
    %934 = arith.addf %913, %933 : vector<16x64xf32>
    %935 = vector.broadcast %14 : vector<1x64xf32> to vector<16x64xf32>
    %936 = arith.mulf %906, %935 : vector<16x64xf32>
    %937 = arith.truncf %936 : vector<16x64xf32> to vector<16x64xbf16>
    %938 = vector.broadcast %14 : vector<1x64xf32> to vector<16x64xf32>
    %939 = arith.mulf %909, %938 : vector<16x64xf32>
    %940 = arith.truncf %939 : vector<16x64xf32> to vector<16x64xbf16>
    %cst_302 = arith.constant dense<0.000000e+00> : vector<16x16xf32>
    %941 = tpu.matmul %912, %937, %cst_302 {dimension_numbers = #tpu.dot_dimension_numbers<[1], [1], [0], [0], [0, 0, 1, 0], [], []>} : vector<16x64xbf16>, vector<16x64xbf16>, vector<16x16xf32> -> vector<16x16xf32>
    %942 = arith.addf %941, %43 : vector<16x16xf32>
    %cst_303 = arith.constant dense<0xFF800000> : vector<16xf32>
    %943 = vector.multi_reduction <maximumf>, %942, %cst_303 [1] : vector<16x16xf32> to vector<16xf32>
    %944 = vector.shape_cast %943 : vector<16xf32> to vector<16x1xf32>
    %945 = vector.broadcast %944 : vector<16x1xf32> to vector<16x16xf32>
    %946 = arith.subf %942, %945 : vector<16x16xf32>
    %947 = math.exp %946 : vector<16x16xf32>
    %cst_304 = arith.constant dense<0.000000e+00> : vector<16xf32>
    %948 = vector.multi_reduction <add>, %947, %cst_304 [1] : vector<16x16xf32> to vector<16xf32>
    %949 = vector.shape_cast %948 : vector<16xf32> to vector<16x1xf32>
    %950 = tpu.reciprocal %949 {approx = true} : vector<16x1xf32> -> vector<16x1xf32>
    %951 = vector.broadcast %950 : vector<16x1xf32> to vector<16x16xf32>
    %952 = arith.mulf %947, %951 : vector<16x16xf32>
    %953 = arith.truncf %952 : vector<16x16xf32> to vector<16x16xbf16>
    %cst_305 = arith.constant dense<0.000000e+00> : vector<16x64xf32>
    %954 = tpu.matmul %953, %940, %cst_305 {dimension_numbers = #tpu.dot_dimension_numbers<[1], [0], [0], [1], [0, 0, 1, 1], [], []>} : vector<16x16xbf16>, vector<16x64xbf16>, vector<16x64xf32> -> vector<16x64xf32>
    %955 = arith.addf %934, %954 : vector<16x64xf32>
    %956 = vector.broadcast %21 : vector<1x64xf32> to vector<16x64xf32>
    %957 = arith.mulf %906, %956 : vector<16x64xf32>
    %958 = arith.truncf %957 : vector<16x64xf32> to vector<16x64xbf16>
    %959 = vector.broadcast %21 : vector<1x64xf32> to vector<16x64xf32>
    %960 = arith.mulf %909, %959 : vector<16x64xf32>
    %961 = arith.truncf %960 : vector<16x64xf32> to vector<16x64xbf16>
    %cst_306 = arith.constant dense<0.000000e+00> : vector<16x16xf32>
    %962 = tpu.matmul %912, %958, %cst_306 {dimension_numbers = #tpu.dot_dimension_numbers<[1], [1], [0], [0], [0, 0, 1, 0], [], []>} : vector<16x64xbf16>, vector<16x64xbf16>, vector<16x16xf32> -> vector<16x16xf32>
    %963 = arith.addf %962, %43 : vector<16x16xf32>
    %cst_307 = arith.constant dense<0xFF800000> : vector<16xf32>
    %964 = vector.multi_reduction <maximumf>, %963, %cst_307 [1] : vector<16x16xf32> to vector<16xf32>
    %965 = vector.shape_cast %964 : vector<16xf32> to vector<16x1xf32>
    %966 = vector.broadcast %965 : vector<16x1xf32> to vector<16x16xf32>
    %967 = arith.subf %963, %966 : vector<16x16xf32>
    %968 = math.exp %967 : vector<16x16xf32>
    %cst_308 = arith.constant dense<0.000000e+00> : vector<16xf32>
    %969 = vector.multi_reduction <add>, %968, %cst_308 [1] : vector<16x16xf32> to vector<16xf32>
    %970 = vector.shape_cast %969 : vector<16xf32> to vector<16x1xf32>
    %971 = tpu.reciprocal %970 {approx = true} : vector<16x1xf32> -> vector<16x1xf32>
    %972 = vector.broadcast %971 : vector<16x1xf32> to vector<16x16xf32>
    %973 = arith.mulf %968, %972 : vector<16x16xf32>
    %974 = arith.truncf %973 : vector<16x16xf32> to vector<16x16xbf16>
    %cst_309 = arith.constant dense<0.000000e+00> : vector<16x64xf32>
    %975 = tpu.matmul %974, %961, %cst_309 {dimension_numbers = #tpu.dot_dimension_numbers<[1], [0], [0], [1], [0, 0, 1, 1], [], []>} : vector<16x16xbf16>, vector<16x64xbf16>, vector<16x64xf32> -> vector<16x64xf32>
    %976 = arith.addf %955, %975 : vector<16x64xf32>
    %977 = vector.broadcast %28 : vector<1x64xf32> to vector<16x64xf32>
    %978 = arith.mulf %906, %977 : vector<16x64xf32>
    %979 = arith.truncf %978 : vector<16x64xf32> to vector<16x64xbf16>
    %980 = vector.broadcast %28 : vector<1x64xf32> to vector<16x64xf32>
    %981 = arith.mulf %909, %980 : vector<16x64xf32>
    %982 = arith.truncf %981 : vector<16x64xf32> to vector<16x64xbf16>
    %cst_310 = arith.constant dense<0.000000e+00> : vector<16x16xf32>
    %983 = tpu.matmul %912, %979, %cst_310 {dimension_numbers = #tpu.dot_dimension_numbers<[1], [1], [0], [0], [0, 0, 1, 0], [], []>} : vector<16x64xbf16>, vector<16x64xbf16>, vector<16x16xf32> -> vector<16x16xf32>
    %984 = arith.addf %983, %43 : vector<16x16xf32>
    %cst_311 = arith.constant dense<0xFF800000> : vector<16xf32>
    %985 = vector.multi_reduction <maximumf>, %984, %cst_311 [1] : vector<16x16xf32> to vector<16xf32>
    %986 = vector.shape_cast %985 : vector<16xf32> to vector<16x1xf32>
    %987 = vector.broadcast %986 : vector<16x1xf32> to vector<16x16xf32>
    %988 = arith.subf %984, %987 : vector<16x16xf32>
    %989 = math.exp %988 : vector<16x16xf32>
    %cst_312 = arith.constant dense<0.000000e+00> : vector<16xf32>
    %990 = vector.multi_reduction <add>, %989, %cst_312 [1] : vector<16x16xf32> to vector<16xf32>
    %991 = vector.shape_cast %990 : vector<16xf32> to vector<16x1xf32>
    %992 = tpu.reciprocal %991 {approx = true} : vector<16x1xf32> -> vector<16x1xf32>
    %993 = vector.broadcast %992 : vector<16x1xf32> to vector<16x16xf32>
    %994 = arith.mulf %989, %993 : vector<16x16xf32>
    %995 = arith.truncf %994 : vector<16x16xf32> to vector<16x16xbf16>
    %cst_313 = arith.constant dense<0.000000e+00> : vector<16x64xf32>
    %996 = tpu.matmul %995, %982, %cst_313 {dimension_numbers = #tpu.dot_dimension_numbers<[1], [0], [0], [1], [0, 0, 1, 1], [], []>} : vector<16x16xbf16>, vector<16x64xbf16>, vector<16x64xf32> -> vector<16x64xf32>
    %997 = arith.addf %976, %996 : vector<16x64xf32>
    %998 = arith.truncf %997 : vector<16x64xf32> to vector<16x64xbf16>
    %cst_314 = arith.constant dense<0.000000e+00> : vector<16x64xf32>
    %999 = tpu.matmul %998, %894, %cst_314 {dimension_numbers = #tpu.dot_dimension_numbers<[1], [0], [0], [1], [0, 0, 1, 1], [], []>} : vector<16x64xbf16>, vector<64x64xbf16>, vector<16x64xf32> -> vector<16x64xf32>
    %1000 = vector.broadcast %898 : vector<1x64xf32> to vector<16x64xf32>
    %1001 = arith.addf %999, %1000 : vector<16x64xf32>
    %1002 = arith.addf %866, %1001 : vector<16x64xf32>
    %c20_315 = arith.constant 20 : index
    %c0_316 = arith.constant 0 : index
    %1003 = vector.load %arg11[%c20_315, %c0_316] : memref<24x64xf32, #tpu.memory_space<vmem>>, vector<1x64xf32>
    %c21_317 = arith.constant 21 : index
    %c0_318 = arith.constant 0 : index
    %1004 = vector.load %arg11[%c21_317, %c0_318] : memref<24x64xf32, #tpu.memory_space<vmem>>, vector<1x64xf32>
    %cst_319 = arith.constant dense<0.000000e+00> : vector<16xf32>
    %1005 = vector.multi_reduction <add>, %1002, %cst_319 [1] : vector<16x64xf32> to vector<16xf32>
    %1006 = vector.shape_cast %1005 : vector<16xf32> to vector<16x1xf32>
    %cst_320 = arith.constant 6.400000e+01 : f32
    %1007 = vector.broadcast %cst_320 : f32 to vector<16x1xf32>
    %1008 = arith.divf %1006, %1007 : vector<16x1xf32>
    %1009 = vector.broadcast %1008 : vector<16x1xf32> to vector<16x64xf32>
    %1010 = arith.subf %1002, %1009 : vector<16x64xf32>
    %1011 = arith.mulf %1010, %1010 : vector<16x64xf32>
    %cst_321 = arith.constant dense<0.000000e+00> : vector<16xf32>
    %1012 = vector.multi_reduction <add>, %1011, %cst_321 [1] : vector<16x64xf32> to vector<16xf32>
    %1013 = vector.shape_cast %1012 : vector<16xf32> to vector<16x1xf32>
    %cst_322 = arith.constant 6.400000e+01 : f32
    %1014 = vector.broadcast %cst_322 : f32 to vector<16x1xf32>
    %1015 = arith.divf %1013, %1014 : vector<16x1xf32>
    %1016 = vector.broadcast %1008 : vector<16x1xf32> to vector<16x64xf32>
    %1017 = arith.subf %1002, %1016 : vector<16x64xf32>
    %cst_323 = arith.constant 9.99999974E-6 : f32
    %1018 = vector.broadcast %cst_323 : f32 to vector<16x1xf32>
    %1019 = arith.addf %1015, %1018 : vector<16x1xf32>
    %1020 = math.rsqrt %1019 : vector<16x1xf32>
    %1021 = vector.broadcast %1020 : vector<16x1xf32> to vector<16x64xf32>
    %1022 = arith.mulf %1017, %1021 : vector<16x64xf32>
    %1023 = vector.broadcast %1003 : vector<1x64xf32> to vector<16x64xf32>
    %1024 = arith.mulf %1022, %1023 : vector<16x64xf32>
    %1025 = vector.broadcast %1004 : vector<1x64xf32> to vector<16x64xf32>
    %1026 = arith.addf %1024, %1025 : vector<16x64xf32>
    %c192_324 = arith.constant 192 : index
    %c0_325 = arith.constant 0 : index
    %1027 = vector.load %arg7[%c192_324, %c0_325] : memref<256x128xbf16, #tpu.memory_space<vmem>>, vector<64x128xbf16>
    %c3_326 = arith.constant 3 : index
    %c0_327 = arith.constant 0 : index
    %1028 = vector.load %arg8[%c3_326, %c0_327] : memref<4x128xf32, #tpu.memory_space<vmem>>, vector<1x128xf32>
    %c384_328 = arith.constant 384 : index
    %c0_329 = arith.constant 0 : index
    %1029 = vector.load %arg9[%c384_328, %c0_329] : memref<512x64xbf16, #tpu.memory_space<vmem>>, vector<128x64xbf16>
    %c3_330 = arith.constant 3 : index
    %c0_331 = arith.constant 0 : index
    %1030 = vector.load %arg10[%c3_330, %c0_331] : memref<4x64xf32, #tpu.memory_space<vmem>>, vector<1x64xf32>
    %1031 = arith.truncf %1026 : vector<16x64xf32> to vector<16x64xbf16>
    %cst_332 = arith.constant dense<0.000000e+00> : vector<16x128xf32>
    %1032 = tpu.matmul %1031, %1027, %cst_332 {dimension_numbers = #tpu.dot_dimension_numbers<[1], [0], [0], [1], [0, 0, 1, 1], [], []>} : vector<16x64xbf16>, vector<64x128xbf16>, vector<16x128xf32> -> vector<16x128xf32>
    %1033 = vector.broadcast %1028 : vector<1x128xf32> to vector<16x128xf32>
    %1034 = arith.addf %1032, %1033 : vector<16x128xf32>
    %cst_333 = arith.constant 0.000000e+00 : f32
    %1035 = vector.broadcast %cst_333 : f32 to vector<16x128xf32>
    %1036 = arith.maximumf %1034, %1035 : vector<16x128xf32>
    %1037 = arith.truncf %1036 : vector<16x128xf32> to vector<16x128xbf16>
    %cst_334 = arith.constant dense<0.000000e+00> : vector<16x64xf32>
    %1038 = tpu.matmul %1037, %1029, %cst_334 {dimension_numbers = #tpu.dot_dimension_numbers<[1], [0], [0], [1], [0, 0, 1, 1], [], []>} : vector<16x128xbf16>, vector<128x64xbf16>, vector<16x64xf32> -> vector<16x64xf32>
    %1039 = vector.broadcast %1030 : vector<1x64xf32> to vector<16x64xf32>
    %1040 = arith.addf %1038, %1039 : vector<16x64xf32>
    %1041 = arith.addf %1002, %1040 : vector<16x64xf32>
    %c22_335 = arith.constant 22 : index
    %c0_336 = arith.constant 0 : index
    %1042 = vector.load %arg11[%c22_335, %c0_336] : memref<24x64xf32, #tpu.memory_space<vmem>>, vector<1x64xf32>
    %c23_337 = arith.constant 23 : index
    %c0_338 = arith.constant 0 : index
    %1043 = vector.load %arg11[%c23_337, %c0_338] : memref<24x64xf32, #tpu.memory_space<vmem>>, vector<1x64xf32>
    %cst_339 = arith.constant dense<0.000000e+00> : vector<16xf32>
    %1044 = vector.multi_reduction <add>, %1041, %cst_339 [1] : vector<16x64xf32> to vector<16xf32>
    %1045 = vector.shape_cast %1044 : vector<16xf32> to vector<16x1xf32>
    %cst_340 = arith.constant 6.400000e+01 : f32
    %1046 = vector.broadcast %cst_340 : f32 to vector<16x1xf32>
    %1047 = arith.divf %1045, %1046 : vector<16x1xf32>
    %1048 = vector.broadcast %1047 : vector<16x1xf32> to vector<16x64xf32>
    %1049 = arith.subf %1041, %1048 : vector<16x64xf32>
    %1050 = arith.mulf %1049, %1049 : vector<16x64xf32>
    %cst_341 = arith.constant dense<0.000000e+00> : vector<16xf32>
    %1051 = vector.multi_reduction <add>, %1050, %cst_341 [1] : vector<16x64xf32> to vector<16xf32>
    %1052 = vector.shape_cast %1051 : vector<16xf32> to vector<16x1xf32>
    %cst_342 = arith.constant 6.400000e+01 : f32
    %1053 = vector.broadcast %cst_342 : f32 to vector<16x1xf32>
    %1054 = arith.divf %1052, %1053 : vector<16x1xf32>
    %1055 = vector.broadcast %1047 : vector<16x1xf32> to vector<16x64xf32>
    %1056 = arith.subf %1041, %1055 : vector<16x64xf32>
    %cst_343 = arith.constant 9.99999974E-6 : f32
    %1057 = vector.broadcast %cst_343 : f32 to vector<16x1xf32>
    %1058 = arith.addf %1054, %1057 : vector<16x1xf32>
    %1059 = math.rsqrt %1058 : vector<16x1xf32>
    %1060 = vector.broadcast %1059 : vector<16x1xf32> to vector<16x64xf32>
    %1061 = arith.mulf %1056, %1060 : vector<16x64xf32>
    %1062 = vector.broadcast %1042 : vector<1x64xf32> to vector<16x64xf32>
    %1063 = arith.mulf %1061, %1062 : vector<16x64xf32>
    %1064 = vector.broadcast %1043 : vector<1x64xf32> to vector<16x64xf32>
    %1065 = arith.addf %1063, %1064 : vector<16x64xf32>
    %1066 = arith.truncf %1065 : vector<16x64xf32> to vector<16x64xbf16>
    %c0_344 = arith.constant 0 : index
    %c0_345 = arith.constant 0 : index
    %1067 = vector.load %arg12[%c0_344, %c0_345] : memref<64x128xbf16, #tpu.memory_space<vmem>>, vector<64x128xbf16>
    %cst_346 = arith.constant dense<0.000000e+00> : vector<16x128xf32>
    %1068 = tpu.matmul %1066, %1067, %cst_346 {dimension_numbers = #tpu.dot_dimension_numbers<[1], [0], [0], [1], [0, 0, 1, 1], [], []>} : vector<16x64xbf16>, vector<64x128xbf16>, vector<16x128xf32> -> vector<16x128xf32>
    %c0_347 = arith.constant 0 : index
    %c0_348 = arith.constant 0 : index
    %1069 = vector.load %arg13[%c0_347, %c0_348] : memref<1x128xf32, #tpu.memory_space<vmem>>, vector<1x128xf32>
    %1070 = vector.broadcast %1069 : vector<1x128xf32> to vector<16x128xf32>
    %1071 = arith.addf %1068, %1070 : vector<16x128xf32>
    %c0_349 = arith.constant 0 : index
    %c0_350 = arith.constant 0 : index
    %1072 = vector.load %arg14[%c0_349, %c0_350] : memref<16x128xf32, #tpu.memory_space<vmem>>, vector<16x128xf32>
    tpu.vector_store %arg14[%c0_349, %c0_350], %1071 {strides = array<i32>} : memref<16x128xf32, #tpu.memory_space<vmem>>, vector<16x128xf32>,
    return
  }
  func.func @transform_0(%arg0: i32) -> (i32, i32) {
    %c0_i32 = arith.constant 0 : i32
    %c0_i32_0 = arith.constant 0 : i32
    %c0_i32_1 = arith.constant 0 : i32
    return %c0_i32, %c0_i32_0 : i32, i32
  }
  func.func @transform_1(%arg0: i32) -> (i32, i32) {
    %c0_i32 = arith.constant 0 : i32
    %c0_i32_0 = arith.constant 0 : i32
    %c0_i32_1 = arith.constant 0 : i32
    return %c0_i32, %c0_i32_0 : i32, i32
  }
  func.func @transform_2(%arg0: i32) -> (i32, i32) {
    %c0_i32 = arith.constant 0 : i32
    %c0_i32_0 = arith.constant 0 : i32
    %c0_i32_1 = arith.constant 0 : i32
    return %c0_i32, %c0_i32_0 : i32, i32
  }
  func.func @transform_3(%arg0: i32) -> (i32, i32) {
    %c0_i32 = arith.constant 0 : i32
    %c0_i32_0 = arith.constant 0 : i32
    %c0_i32_1 = arith.constant 0 : i32
    return %c0_i32, %c0_i32_0 : i32, i32
  }
  func.func @transform_4(%arg0: i32) -> (i32, i32) {
    %c0_i32 = arith.constant 0 : i32
    %c0_i32_0 = arith.constant 0 : i32
    %c0_i32_1 = arith.constant 0 : i32
    return %c0_i32, %c0_i32_0 : i32, i32
  }
  func.func @transform_5(%arg0: i32) -> (i32, i32) {
    %c0_i32 = arith.constant 0 : i32
    %c0_i32_0 = arith.constant 0 : i32
    %c0_i32_1 = arith.constant 0 : i32
    return %c0_i32, %c0_i32_0 : i32, i32
  }
  func.func @transform_6(%arg0: i32) -> (i32, i32) {
    %c0_i32 = arith.constant 0 : i32
    %c0_i32_0 = arith.constant 0 : i32
    %c0_i32_1 = arith.constant 0 : i32
    return %c0_i32, %c0_i32_0 : i32, i32
  }
  func.func @transform_7(%arg0: i32) -> (i32, i32) {
    %c0_i32 = arith.constant 0 : i32
    %c0_i32_0 = arith.constant 0 : i32
    %c0_i32_1 = arith.constant 0 : i32
    return %c0_i32, %c0_i32_0 : i32, i32
  }
  func.func @transform_8(%arg0: i32) -> (i32, i32) {
    %c0_i32 = arith.constant 0 : i32
    %c0_i32_0 = arith.constant 0 : i32
    %c0_i32_1 = arith.constant 0 : i32
    return %c0_i32, %c0_i32_0 : i32, i32
  }
  func.func @transform_9(%arg0: i32) -> (i32, i32) {
    %c0_i32 = arith.constant 0 : i32
    %c0_i32_0 = arith.constant 0 : i32
    %c0_i32_1 = arith.constant 0 : i32
    return %c0_i32, %c0_i32_0 : i32, i32
  }
  func.func @transform_10(%arg0: i32) -> (i32, i32) {
    %c0_i32 = arith.constant 0 : i32
    %c0_i32_0 = arith.constant 0 : i32
    %c0_i32_1 = arith.constant 0 : i32
    return %c0_i32, %c0_i32_0 : i32, i32
  }
  func.func @transform_11(%arg0: i32) -> (i32, i32) {
    %c0_i32 = arith.constant 0 : i32
    %c0_i32_0 = arith.constant 0 : i32
    %c0_i32_1 = arith.constant 0 : i32
    return %c0_i32, %c0_i32_0 : i32, i32
  }
  func.func @transform_12(%arg0: i32) -> (i32, i32) {
    %c0_i32 = arith.constant 0 : i32
    %c0_i32_0 = arith.constant 0 : i32
    %c0_i32_1 = arith.constant 0 : i32
    return %c0_i32, %c0_i32_0 : i32, i32
  }
  func.func @transform_13(%arg0: i32) -> (i32, i32) {
    %c0_i32 = arith.constant 0 : i32
    %c0_i32_0 = arith.constant 0 : i32
    %c0_i32_1 = arith.constant 0 : i32
    return %c0_i32, %c0_i32_0 : i32, i32
  }
}

</mosaic_0001>

<bundles_post_ra>
// kernel: transformer_forward.1
= control target key start
LH: loop header
LB: loop body
LE: loop exit
PB: predicated region body
PF: predicated region fallthrough
CT: control target
= control target key end

     0   :  { %v5352_v0 = vmov 0   ;;  %v45_v8 = vlaneseq  ;;  %v5353_v12 = vmov 0.0   ;;  %vm133_vm2 = vcmask 523264   ;;  %s6931_s0 = inlined_call_operand.vmem [shape: s32[32,1], index: 0, kind: input, shape index: {}]   ;;  %s6932_s2 = inlined_call_operand.vmem [shape: bf16[64,64], index: 2, kind: input, shape index: {}]   ;;  %s6933_s3 = inlined_call_operand.vmem [shape: f32[32,64], index: 3, kind: input, shape index: {}]   ;;  %s6934_s10 = inlined_call_operand.vmem [shape: f32[24,64], index: 10, kind: input, shape index: {}]   ;;  %s6935_s5 = inlined_call_operand.vmem [shape: f32[24,64], index: 5, kind: input, shape index: {}]   ;;  %s6936_s4 = inlined_call_operand.vmem [shape: bf16[1536,64], index: 4, kind: input, shape index: {}]   ;;  %s6937_s1 = inlined_call_operand.vmem [shape: f32[48,16], index: 1, kind: input, shape index: {}]   ;;  %s6938_s7 = inlined_call_operand.vmem [shape: f32[4,128], index: 7, kind: input, shape index: {}]   ;;  %s6939_s6 = inlined_call_operand.vmem [shape: bf16[256,128], index: 6, kind: input, shape index: {}]   ;;  %s6940_s8 = inlined_call_operand.vmem [shape: bf16[512,64], index: 8, kind: input, shape index: {}]   ;;  %s6941_s9 = inlined_call_operand.vmem [shape: f32[4,64], index: 9, kind: input, shape index: {}]   ;;  %s6942_s12 = inlined_call_operand.vmem [shape: f32[1,128], index: 12, kind: input, shape index: {}]   ;;  %s6943_s11 = inlined_call_operand.vmem [shape: bf16[64,128], index: 11, kind: input, shape index: {}]   ;;  %s6944_s13 = inlined_call_operand.vmem [shape: f32[16,128], index: 13, kind: output, shape index: {}]  }
   0x1   :  { %5047 = vset.pattern.permute.xlu0 %v5352_v0  ;;  %v67_v1 = vld [vmem:[%s6931_s0] sm:$0xff]  ;;  %5048 = vset.pattern.permute.xlu1 %v5352_v0  ;;  %v4891_v2 = vld [vmem:[%s6932_s2 + $0x18] sm:$0xff]  ;;  %v68_v3 = vld [vmem:[%s6931_s0 + $0x8] sm:$0xff]  ;;  %v5354_v25 = vmov 64.0  }
   0x2   :  { %72 = vperm.xlu0 %5047, %v67_v1   ;;  %144 = vmatpush.bf16.msra.mxu0 %v4891_v2  ;;  %v69_v4 = vld [vmem:[%s6931_s0 + $0x10] sm:$0xff]  ;;  %v4889_v6 = vld [vmem:[%s6932_s2 + $0x8] sm:$0xff]  ;;  %v4888_v7 = vld [vmem:[%s6932_s2] sm:$0xff]  ;;  %v5446_v10 = vand.u32 127, %v45_v8  ;;  %5106 = vrcp.f32 %v5354_v25 }
   0x3   :  { %5040 = vmatpush.bf16.msra.mxu2 %v4891_v2  ;;  %v4890_v5 = vld [vmem:[%s6932_s2 + $0x10] sm:$0xff]  ;;  %v105_v16 = vld [vmem:[%s6933_s3] sm:$0xff]  ;;  %v106_v20 = vld [vmem:[%s6933_s3 + $0x8] sm:$0xff] }
   0x4   :  { %v70_v24 = vld [vmem:[%s6931_s0 + $0x18] sm:$0xff]  ;;  %v4894_v50 = vld [vmem:[%s6936_s4 + $0x10] sm:$0xff]  ;;  %v4893_v53 = vld [vmem:[%s6936_s4 + $0x8] sm:$0xff]  ;;  %vm52_vm12 = vcmp.ge.s32.totalorder %v5446_v10, 16  ;;  %vm53_vm13 = vcmp.lt.s32.totalorder %v5446_v10, 32  ;;  %vm62_vm14 = vcmp.ge.s32.totalorder %v5446_v10, 48 }
   0x5   :  { %v4895_v47 = vld [vmem:[%s6936_s4 + $0x18] sm:$0xff]  ;;  %v4898_v51 = vld [vmem:[%s6936_s4 + $0x30] sm:$0xff]  ;;  %v4897_v54 = vld [vmem:[%s6936_s4 + $0x28] sm:$0xff]  ;;  %vm63_vm15 = vcmp.lt.s32.totalorder %v5446_v10, 64 }
   0x6   :  { %145 = vmatpush.bf16.msra.mxu0 %v4890_v5  ;;  %v4899_v48 = vld [vmem:[%s6936_s4 + $0x38] sm:$0xff]  ;;  %293 = vmatpush.bf16.msra.mxu1 %v4895_v47  ;;  %v4902_v52 = vld [vmem:[%s6936_s4 + $0x50] sm:$0xff]  ;;  %v4901_v55 = vld [vmem:[%s6936_s4 + $0x48] sm:$0xff] }
   0x7   :  { %5041 = vmatpush.bf16.msra.mxu2 %v4890_v5  ;;  %v4903_v49 = vld [vmem:[%s6936_s4 + $0x58] sm:$0xff]  ;;  %v4892_v57 = vld [vmem:[%s6936_s4] sm:$0xff] }
   0x8   :  { %v5107_v26 = vpop.eup %5106  ;;  %371 = vmatpush.bf16.msra.mxu3 %v4903_v49  ;;  %v4896_v58 = vld [vmem:[%s6936_s4 + $0x20] sm:$0xff] }
   0x9   :  { %v174_v27 = vmul.f32 64.0, %v5107_v26  ;;  %vm178_vm3 = vweird.f32 %v5107_v26  ;;  %v4900_v60 = vld [vmem:[%s6936_s4 + $0x40] sm:$0xff] }
   0xa   :  { %75 = vperm.xlu0 %5047, %v68_v3   ;;  %146 = vmatpush.bf16.msra.mxu0 %v4889_v6 }
   0xb   :  { %5042 = vmatpush.bf16.msra.mxu2 %v4889_v6  ;;  %v175_v28 = vsub.f32 1.0, %v174_v27  ;;  %294 = vmatpush.bf16.msra.mxu1 %v4894_v50 }
   0xc   :  { %372 = vmatpush.bf16.msra.mxu3 %v4902_v52 }
   0xd   :  { %v176_v29 = vmul.f32 %v5107_v26, %v175_v28 }
   0xe   :  { %147 = vmatpush.bf16.msra.mxu0 %v4888_v7 }
   0xf   :  { %5043 = vmatpush.bf16.msra.mxu2 %v4888_v7  ;;  %v177_v30 = vadd.f32 %v5107_v26, %v176_v29  ;;  %295 = vmatpush.bf16.msra.mxu1 %v4893_v53 }
  0x10   :  { %373 = vmatpush.bf16.msra.mxu3 %v4901_v55 }
  0x11   :  { %v5470_v31 = vsel %vm178_vm3, %v5107_v26, %v177_v30  ;;  %v5052_v30 = vld [vmem:[%s6935_s5 + $0x1] ss:$0 sm:$0xff]  ;;  %vm48_vm3 = vcmp.lt.s32.totalorder %v5446_v10, 16 }
  0x12   :  { %78 = vperm.xlu0 %5047, %v69_v4  }
  0x13   :  { %332 = vmatpush.bf16.msrb.mxu2 %v4899_v48  ;;  %296 = vmatpush.bf16.msra.mxu1 %v4892_v57 }
  0x14   :  { %374 = vmatpush.bf16.msra.mxu3 %v4900_v60 }
  0x17   :  { %333 = vmatpush.bf16.msrb.mxu2 %v4898_v51 }
  0x1b   :  { %334 = vmatpush.bf16.msrb.mxu2 %v4897_v54 }
  0x1f   :  { %335 = vmatpush.bf16.msrb.mxu2 %v4896_v58 }
  0x74   :  { %v73_v9 = vpop.permute.xlu0 %72 }
  0x75   :  { %vm83_vm0 = vcmp.eq.s32.totalorder %v5446_v10, %v73_v9 }
  0x76   :  { %v4197_v13 = vsel %vm83_vm0, 1.0, %v5353_v12  ;;  %vm57_vm0 = vcmp.ge.s32.totalorder %v5446_v10, 32 }
  0x7c   :  { %v76_v11 = vpop.permute.xlu0 %75 }
  0x7d   :  { %vm84_vm1 = vcmp.eq.s32.totalorder %v5446_v10, %v76_v11 }
  0x7e   :  { %v4198_v14 = vsel %vm84_vm1, 1.0, %v5353_v12  ;;  %vm58_vm1 = vcmp.lt.s32.totalorder %v5446_v10, 48 }
  0x7f   :  { %v95_v15 = vpack.c.bf16 %v4198_v14, %v4197_v13 }
  0x81   :  { %4217 = vmatmul.msk.bf16.vlgmr.msra.gmra.mxu0 %vm133_vm2, %v95_v15 }
  0x84   :  { %v79_v42 = vpop.permute.xlu0 %78 }
  0x85   :  { %vm85_vm4 = vcmp.eq.s32.totalorder %v5446_v10, %v79_v42 }
  0x86   :  { %v4199_v44 = vsel %vm85_vm4, 1.0, %v5353_v12  ;;  %vm54_vm4 = vmand %vm52_vm12, %vm53_vm13 }
  0xfe   :  { %v149_v17 = vpop.f32.mrf.mxu0 }
  0xff   :  { %v5456_v18 = vadd.f32 %v149_v17, %v105_v16  ;;  %v5049_v16 = vld [vmem:[%s6934_s10] ss:$0 sm:$0xff] }
 0x101   :  { %v167_v19 = vsel %vm133_vm2, %v5456_v18, 0.0 }
 0x102   :  { %168 = vadd.xlane.f32.xlu1 %v167_v19 }
 0x106   :  { %v151_v21 = vpop.f32.mrf.mxu0 }
 0x107   :  { %v5463_v22 = vadd.f32 %v151_v21, %v106_v20 }
 0x109   :  { %v170_v23 = vsel %vm133_vm2, %v5463_v22, 0.0 }
 0x10a   :  { %171 = vadd.xlane.f32.xlu1 %v170_v23  ;;  %v5050_v23 = vld [vmem:[%s6934_s10 + $0x1] ss:$0 sm:$0xff] }
 0x123   :  { %81 = vperm.xlu1 %5048, %v70_v24  }
 0x175   :  { %v169_v32 = vpop.xlane.xlu1 %168 }
 0x176   :  { %v180_v33 = vmul.f32 %v5470_v31, %v169_v32 }
 0x178   :  { %v5474_v34 = vsub.f32 %v5456_v18, %v180_v33 }
 0x17a   :  { %v184_v35 = vmul.f32 %v5474_v34, %v5474_v34 }
 0x17c   :  { %v186_v36 = vsel %vm133_vm2, %v184_v35, 0.0 }
 0x17d   :  { %187 = vadd.xlane.f32.xlu2 %v186_v36  ;;  %v172_v37 = vpop.xlane.xlu1 %171 }
 0x17e   :  { %v181_v38 = vmul.f32 %v5470_v31, %v172_v37  ;;  %v5558_v37 = vsel %vm48_vm3, 1.0, %v5353_v12 }
 0x180   :  { %v5481_v39 = vsub.f32 %v5463_v22, %v181_v38 }
 0x182   :  { %v185_v40 = vmul.f32 %v5481_v39, %v5481_v39 }
 0x184   :  { %v189_v41 = vsel %vm133_vm2, %v185_v40, 0.0 }
 0x185   :  { %190 = vadd.xlane.f32.xlu2 %v189_v41 }
 0x195   :  { %v82_v43 = vpop.permute.xlu1 %81 }
 0x196   :  { %vm86_vm5 = vcmp.eq.s32.totalorder %v5446_v10, %v82_v43 }
 0x197   :  { %v4200_v45 = vsel %vm86_vm5, 1.0, %v5353_v12  ;;  %vm64_vm5 = vmand %vm62_vm14, %vm63_vm15 }
 0x198   :  { %v96_v46 = vpack.c.bf16 %v4200_v45, %v4199_v44  ;;  %v5564_v40 = vsel %vm64_vm5, 1.0, %v5353_v12 }
 0x19a   :  { %4218 = vmatmul.msk.bf16.vlgmr.msra.gmra.mxu2 %vm133_vm2, %v96_v46 }
 0x1f0   :  { %v188_v56 = vpop.xlane.xlu2 %187 }
 0x1f1   :  { %v192_v59 = vmul.f32 %v188_v56, %v5470_v31  ;;  %v5051_v56 = vld [vmem:[%s6935_s5] ss:$0 sm:$0xff] }
 0x1f3   :  { %v194_v61 = vadd.f32 1e-05, %v192_v59 }
 0x1f5   :  { %5108 = vrsqrt.f32 %v194_v61  ;;  %vm202_vm7 = vweird.f32 %v194_v61 }
 0x1f8   :  { %v191_v62 = vpop.xlane.xlu2 %190 }
 0x1f9   :  { %v193_v63 = vmul.f32 %v191_v62, %v5470_v31 }
 0x1fb   :  { %v5109_v0 = vpop.eup %5108  ;;  %v195_v1 = vadd.f32 1e-05, %v193_v63 }
 0x1fc   :  { %v197_v2 = vmul.f32 %v5109_v0, %v194_v61  ;;  %vm203_vm6 = vweird.f32 %v5109_v0 }
 0x1fd   :  { %5110 = vrsqrt.f32 %v195_v1  ;;  %vm204_vm8 = vmor %vm202_vm7, %vm203_vm6  ;;  %vm212_vm10 = vweird.f32 %v195_v1  ;;  %vm410_vm7 = vcmask 130048  }
 0x1fe   :  { %v198_v3 = vmul.f32 %v5109_v0, %v197_v2  ;;  %vm59_vm6 = vmand %vm57_vm0, %vm58_vm1 }
 0x1ff   :  { %v5567_v41 = vsel %vm59_vm6, 1.0, %v5353_v12 }
 0x200   :  { %v199_v4 = vmul.f32 0.5, %v198_v3 }
 0x202   :  { %v200_v5 = vsub.f32 1.5, %v199_v4 }
 0x203   :  { %v5111_v6 = vpop.eup %5110 }
 0x204   :  { %v201_v7 = vmul.f32 %v5109_v0, %v200_v5  ;;  %v207_v8 = vmul.f32 %v5111_v6, %v195_v1  ;;  %vm213_vm9 = vweird.f32 %v5111_v6 }
 0x205   :  { %vm214_vm11 = vmor %vm212_vm10, %vm213_vm9 }
 0x206   :  { %v208_v9 = vmul.f32 %v5111_v6, %v207_v8  ;;  %v205_v11 = vsel %vm204_vm8, %v5109_v0, %v201_v7 }
 0x207   :  { %v216_v15 = vmul.f32 %v205_v11, %v5474_v34  ;;  %v5053_v34 = vld [vmem:[%s6935_s5 + $0x2] ss:$0 sm:$0xff] }
 0x208   :  { %v209_v13 = vmul.f32 0.5, %v208_v9 }
 0x209   :  { %v219_v21 = vmul.f32 %v5049_v16, %v216_v15 }
 0x20a   :  { %v210_v14 = vsub.f32 1.5, %v209_v13 }
 0x20b   :  { %v222_v25 = vadd.f32 %v5050_v23, %v219_v21  ;;  %v5603_v21 = vld [vmem:[%s6937_s1 + $0x8] sm:$0xff] }
 0x20c   :  { %v211_v17 = vmul.f32 %v5111_v6, %v210_v14 }
 0x20e   :  { %v215_v19 = vsel %vm214_vm11, %v5111_v6, %v211_v17 }
 0x20f   :  { %v217_v20 = vmul.f32 %v215_v19, %v5481_v39  ;;  %v5561_v39 = vsel %vm54_vm4, 1.0, %v5353_v12  ;;  %v5598_v19 = vld [vmem:[%s6937_s1] sm:$0xff] }
 0x211   :  { %v220_v24 = vmul.f32 %v5049_v16, %v217_v20 }
 0x213   :  { %v223_v26 = vadd.f32 %v5050_v23, %v220_v24 }
 0x215   :  { %v260_v27 = vpack.c.bf16 %v223_v26, %v222_v25 }
 0x217   :  { %4235 = vmatmul.msk.bf16.vlgmr.msra.gmra.mxu1 %vm133_vm2, %v260_v27  ;;  %4252 = vmatmul.msk.bf16.vlgmr.msrb.gmra.mxu2 %vm133_vm2, %v260_v27 }
 0x218   :  { %4269 = vmatmul.msk.bf16.vlgmr.msra.gmra.mxu3 %vm133_vm2, %v260_v27 }
 0x21d   :  { %v5540_v28 = vpop.f32.mrf.mxu2 }
 0x225   :  { %v5542_v29 = vpop.f32.mrf.mxu2 }
 0x294   :  { %v298_v33 = vpop.f32.mrf.mxu1 }
 0x295   :  { %v299_v9 = vadd.f32 %v5051_v56, %v298_v33 }
 0x297   :  { %v381_v15 = vmul.f32 0.25, %v299_v9 }
 0x29a   :  { %v337_v32 = vpop.f32.mrf.mxu2 }
 0x29b   :  { %v376_v35 = vpop.f32.mrf.mxu3  ;;  %v338_v36 = vadd.f32 %v5052_v30, %v337_v32 }
 0x29c   :  { %v377_v38 = vadd.f32 %v5053_v34, %v376_v35  ;;  %v300_v12 = vpop.f32.mrf.mxu1 }
 0x29d   :  { %v384_v10 = vmul.f32 %v5558_v37, %v338_v36  ;;  %v434_v46 = vmul.f32 %v5561_v39, %v338_v36  ;;  %v579_v47 = vmul.f32 %v5564_v40, %v338_v36  ;;  %v514_v51 = vmul.f32 %v5567_v41, %v338_v36 }
 0x29e   :  { %v582_v43 = vmul.f32 %v5564_v40, %v377_v38  ;;  %v437_v49 = vmul.f32 %v5561_v39, %v377_v38  ;;  %v387_v50 = vmul.f32 %v5558_v37, %v377_v38  ;;  %v301_v1 = vadd.f32 %v5051_v56, %v300_v12 }
 0x29f   :  { %v517_v5 = vmul.f32 %v5567_v41, %v377_v38 }
 0x2a0   :  { %v382_v14 = vmul.f32 0.25, %v301_v1 }
 0x2a2   :  { %v339_v42 = vpop.f32.mrf.mxu2  ;;  %v383_v16 = vpack.c.bf16 %v382_v14, %v381_v15 }
 0x2a3   :  { %v340_v44 = vadd.f32 %v5052_v30, %v339_v42  ;;  %v378_v45 = vpop.f32.mrf.mxu3 }
 0x2a4   :  { %v379_v48 = vadd.f32 %v5053_v34, %v378_v45 }
 0x2a5   :  { %v385_v52 = vmul.f32 %v5558_v37, %v340_v44  ;;  %v435_v53 = vmul.f32 %v5561_v39, %v340_v44  ;;  %v580_v54 = vmul.f32 %v5564_v40, %v340_v44  ;;  %v515_v55 = vmul.f32 %v5567_v41, %v340_v44 }
 0x2a6   :  { %v438_v57 = vmul.f32 %v5561_v39, %v379_v48  ;;  %v388_v58 = vmul.f32 %v5558_v37, %v379_v48  ;;  %v583_v59 = vmul.f32 %v5564_v40, %v379_v48  ;;  %v518_v60 = vmul.f32 %v5567_v41, %v379_v48 }
 0x2a7   :  { %v386_v61 = vpack.c.bf16 %v385_v52, %v384_v10  ;;  %v436_v62 = vpack.c.bf16 %v435_v53, %v434_v46  ;;  %v581_v63 = vpack.c.bf16 %v580_v54, %v579_v47  ;;  %v516_v0 = vpack.c.bf16 %v515_v55, %v514_v51 }
 0x2a8   :  { %v439_v2 = vpack.c.bf16 %v438_v57, %v437_v49  ;;  %v389_v3 = vpack.c.bf16 %v388_v58, %v387_v50  ;;  %v584_v4 = vpack.c.bf16 %v583_v59, %v582_v43  ;;  %v519_v13 = vpack.c.bf16 %v518_v60, %v517_v5 }
 0x2a9   :  { %v394_v6 = vsel %vm133_vm2, %v386_v61, 0  ;;  %v441_v7 = vsel %vm133_vm2, %v436_v62, 0  ;;  %v586_v8 = vsel %vm133_vm2, %v581_v63, 0  ;;  %v521_v11 = vsel %vm133_vm2, %v516_v0, 0 }
 0x2aa   :  { %490 = vmatpush.bf16.msrb.mxu3 %v439_v2  ;;  %507 = vmatpush.bf16.msrb.mxu0 %v389_v3 }
 0x2ab   :  { %403 = vmatpush.bf16.xpose.msrb.mxu1 %v394_v6  ;;  %450 = vmatpush.bf16.xpose.msra.mxu2 %v441_v7 }
 0x2ae   :  { %595 = vmatpush.bf16.xpose.msra.mxu3 %v586_v8  ;;  %635 = vmatpush.bf16.msra.mxu0 %v584_v4 }
 0x2b2   :  { %4270 = vmatmul.msk.bf16.vlgmr.msrb.gmra.mxu1 %vm133_vm2, %v383_v16  ;;  %4271 = vmatmul.msk.bf16.vlgmr.msra.gmra.mxu2 %vm133_vm2, %v383_v16 }
 0x2b3   :  { %530 = vmatpush.bf16.xpose.msra.mxu1 %v521_v11  ;;  %570 = vmatpush.bf16.msrb.mxu2 %v519_v13 }
 0x2c2   :  { %4274 = vmatmul.msk.bf16.vlgmr.msra.gmra.mxu1 %vm133_vm2, %v383_v16 }
 0x32f   :  { %v405_v17 = vpop.f32.mrf.mxu1 }
 0x330   :  { %v406_v47 = vadd.f32 %v405_v17, %v5598_v19 }
 0x332   :  { %v411_v49 = vsel %vm410_vm7, %v406_v47, -inf }
 0x335   :  { %v452_v20 = vpop.f32.mrf.mxu2 }
 0x336   :  { %v453_v23 = vadd.f32 %v452_v20, %v5598_v19 }
 0x337   :  { %v407_v24 = vpop.f32.mrf.mxu1 }
 0x338   :  { %v408_v25 = vadd.f32 %v407_v24, %v5603_v21  ;;  %v457_v26 = vsel %vm410_vm7, %v453_v23, -inf }
 0x339   :  { %458 = vmax.xlane.f32.xlu2 %v457_v26 }
 0x33a   :  { %v414_v27 = vsel %vm410_vm7, %v408_v25, -inf }
 0x33b   :  { %415 = vmax.xlane.f32.xlu1 %v414_v27 }
 0x33d   :  { %v454_v30 = vpop.f32.mrf.mxu2 }
 0x33e   :  { %v455_v32 = vadd.f32 %v454_v30, %v5603_v21 }
 0x33f   :  { %v532_v48 = vpop.f32.mrf.mxu1 }
 0x340   :  { %v460_v33 = vsel %vm410_vm7, %v455_v32, -inf  ;;  %v533_v50 = vadd.f32 %v532_v48, %v5598_v19 }
 0x341   :  { %461 = vmax.xlane.f32.xlu0 %v460_v33 }
 0x342   :  { %v537_v51 = vsel %vm410_vm7, %v533_v50, -inf }
 0x347   :  { %v534_v12 = vpop.f32.mrf.mxu1 }
 0x348   :  { %v535_v52 = vadd.f32 %v534_v12, %v5603_v21 }
 0x34a   :  { %v540_v53 = vsel %vm410_vm7, %v535_v52, -inf }
 0x3ac   :  { %v459_v34 = vpop.xlane.xlu2 %458 }
 0x3ad   :  { %v463_v35 = vsub.f32 %v453_v23, %v459_v34 }
 0x3ae   :  { %v416_v2 = vpop.xlane.xlu1 %415 }
 0x3af   :  { %v465_v36 = vmul.f32 1.442695, %v463_v35  ;;  %v418_v5 = vsub.f32 %v408_v25, %v416_v2 }
 0x3b1   :  { %5112 = vpow2.f32 %v465_v36  ;;  %v421_v9 = vmul.f32 1.442695, %v418_v5 }
 0x3b4   :  { %v462_v38 = vpop.xlane.xlu0 %461 }
 0x3b5   :  { %v464_v42 = vsub.f32 %v455_v32, %v462_v38 }
 0x3b7   :  { %v5113_v10 = vpop.eup %5112  ;;  %v467_v43 = vmul.f32 1.442695, %v464_v42 }
 0x3b8   :  { %v469_v44 = vsel %vm410_vm7, %v5113_v10, 0.0 }
 0x3b9   :  { %5114 = vpow2.f32 %v467_v43  ;;  %470 = vadd.xlane.f32.xlu2 %v469_v44 }
 0x3bf   :  { %v5115_v45 = vpop.eup %5114 }
 0x3c0   :  { %v472_v46 = vsel %vm410_vm7, %v5115_v45, 0.0 }
 0x3c1   :  { %473 = vadd.xlane.f32.xlu2 %v472_v46 }
 0x3c9   :  { %412 = vmax.xlane.f32.xlu2 %v411_v49 }
 0x3d1   :  { %538 = vmax.xlane.f32.xlu2 %v537_v51 }
 0x3d9   :  { %541 = vmax.xlane.f32.xlu2 %v540_v53 }
 0x42c   :  { %v471_v54 = vpop.xlane.xlu2 %470 }
 0x42d   :  { %5116 = vrcp.f32 %v471_v54 }
 0x433   :  { %v5117_v56 = vpop.eup %5116 }
 0x434   :  { %v474_v55 = vpop.xlane.xlu2 %473  ;;  %v477_v58 = vmul.f32 %v5117_v56, %v5113_v10 }
 0x435   :  { %5118 = vrcp.f32 %v474_v55 }
 0x43b   :  { %v5119_v57 = vpop.eup %5118 }
 0x43c   :  { %v478_v59 = vmul.f32 %v5119_v57, %v5115_v45  ;;  %v413_v62 = vpop.xlane.xlu2 %412 }
 0x43d   :  { %v417_v0 = vsub.f32 %v406_v47, %v413_v62 }
 0x43e   :  { %v479_v60 = vpack.c.bf16 %v478_v59, %v477_v58 }
 0x43f   :  { %v419_v3 = vmul.f32 1.442695, %v417_v0 }
 0x440   :  { %4272 = vmatmul.msk.bf16.vlgmr.msrb.gmra.mxu3 %vm410_vm7, %v479_v60 }
 0x441   :  { %5120 = vpow2.f32 %v419_v3 }
 0x442   :  { %5122 = vpow2.f32 %v421_v9 }
 0x444   :  { %v539_v1 = vpop.xlane.xlu2 %538 }
 0x445   :  { %v543_v7 = vsub.f32 %v533_v50, %v539_v1 }
 0x447   :  { %v545_v11 = vmul.f32 1.442695, %v543_v7  ;;  %v5121_v14 = vpop.eup %5120  ;;  %v4905_v7 = vld [vmem:[%s6936_s4 + $0x68] sm:$0xff] }
 0x448   :  { %v423_v23 = vsel %vm410_vm7, %v5121_v14, 0.0  ;;  %v5123_v25 = vpop.eup %5122 }
 0x449   :  { %5124 = vpow2.f32 %v545_v11  ;;  %v426_v27 = vsel %vm410_vm7, %v5123_v25, 0.0 }
 0x44c   :  { %v542_v13 = vpop.xlane.xlu2 %541 }
 0x44d   :  { %v544_v17 = vsub.f32 %v535_v52, %v542_v13 }
 0x44f   :  { %v547_v24 = vmul.f32 1.442695, %v544_v17  ;;  %v5125_v26 = vpop.eup %5124 }
 0x450   :  { %4276 = vmatmul.msk.bf16.vlgmr.msra.gmra.mxu3 %vm133_vm2, %v383_v16  ;;  %v549_v30 = vsel %vm410_vm7, %v5125_v26, 0.0 }
 0x451   :  { %5126 = vpow2.f32 %v547_v24 }
 0x457   :  { %v5127_v32 = vpop.eup %5126 }
 0x458   :  { %v552_v33 = vsel %vm410_vm7, %v5127_v32, 0.0 }
 0x4c3   :  { %v5621_v61 = vpop.f32.mrf.mxu3 }
 0x4cb   :  { %v5623_v63 = vpop.f32.mrf.mxu3 }
 0x4d3   :  { %v597_v4 = vpop.f32.mrf.mxu3 }
 0x4d4   :  { %v598_v6 = vadd.f32 %v597_v4, %v5598_v19  ;;  %v4907_v4 = vld [vmem:[%s6936_s4 + $0x78] sm:$0xff] }
 0x4d5   :  { %677 = vmatpush.bf16.msrb.mxu1 %v4907_v4 }
 0x4d6   :  { %v602_v8 = vsel %vm410_vm7, %v598_v6, -inf }
 0x4d7   :  { %603 = vmax.xlane.f32.xlu2 %v602_v8  ;;  %v4904_v8 = vld [vmem:[%s6936_s4 + $0x60] sm:$0xff] }
 0x4db   :  { %v599_v15 = vpop.f32.mrf.mxu3 }
 0x4dc   :  { %v600_v16 = vadd.f32 %v599_v15, %v5603_v21 }
 0x4de   :  { %v605_v20 = vsel %vm410_vm7, %v600_v16, -inf }
 0x4df   :  { %606 = vmax.xlane.f32.xlu0 %v605_v20  ;;  %424 = vadd.xlane.f32.xlu2 %v423_v23 }
 0x4e7   :  { %427 = vadd.xlane.f32.xlu0 %v426_v27  ;;  %550 = vadd.xlane.f32.xlu2 %v549_v30  ;;  %v5054_v30 = vld [vmem:[%s6935_s5 + $0x3] ss:$0 sm:$0xff] }
 0x4ef   :  { %553 = vadd.xlane.f32.xlu0 %v552_v33 }
 0x54a   :  { %v604_v34 = vpop.xlane.xlu2 %603 }
 0x54b   :  { %v608_v35 = vsub.f32 %v598_v6, %v604_v34  ;;  %v4906_v6 = vld [vmem:[%s6936_s4 + $0x70] sm:$0xff] }
 0x54c   :  { %678 = vmatpush.bf16.msrb.mxu1 %v4906_v6 }
 0x54d   :  { %v610_v36 = vmul.f32 1.442695, %v608_v35 }
 0x54f   :  { %5128 = vpow2.f32 %v610_v36 }
 0x550   :  { %679 = vmatpush.bf16.msrb.mxu1 %v4905_v7 }
 0x552   :  { %v607_v38 = vpop.xlane.xlu0 %606  ;;  %v425_v10 = vpop.xlane.xlu2 %424 }
 0x553   :  { %v609_v42 = vsub.f32 %v600_v16, %v607_v38 }
 0x554   :  { %680 = vmatpush.bf16.msrb.mxu1 %v4904_v8 }
 0x555   :  { %v5129_v43 = vpop.eup %5128  ;;  %v612_v44 = vmul.f32 1.442695, %v609_v42 }
 0x556   :  { %v614_v45 = vsel %vm410_vm7, %v5129_v43, 0.0 }
 0x557   :  { %5130 = vpow2.f32 %v612_v44  ;;  %615 = vadd.xlane.f32.xlu1 %v614_v45 }
 0x558   :  { %5132 = vrcp.f32 %v425_v10 }
 0x55a   :  { %v428_v46 = vpop.xlane.xlu0 %427  ;;  %v551_v48 = vpop.xlane.xlu2 %550 }
 0x55b   :  { %5134 = vrcp.f32 %v428_v46 }
 0x55c   :  { %5136 = vrcp.f32 %v551_v48 }
 0x55d   :  { %v5131_v47 = vpop.eup %5130 }
 0x55e   :  { %v617_v49 = vsel %vm410_vm7, %v5131_v47, 0.0  ;;  %v5133_v50 = vpop.eup %5132 }
 0x55f   :  { %618 = vadd.xlane.f32.xlu2 %v617_v49  ;;  %v431_v12 = vmul.f32 %v5133_v50, %v5121_v14  ;;  %v4911_v49 = vld [vmem:[%s6939_s6 + $0x18] sm:$0xff]  ;;  %v4910_v50 = vld [vmem:[%s6939_s6 + $0x10] sm:$0xff] }
 0x560   :  { %800 = vmatpush.bf16.msra.mxu2 %v4911_v49 }
 0x561   :  { %v5135_v51 = vpop.eup %5134 }
 0x562   :  { %v432_v52 = vmul.f32 %v5135_v51, %v5123_v25  ;;  %v554_v53 = vpop.xlane.xlu0 %553  ;;  %v5137_v55 = vpop.eup %5136  ;;  %v4909_v51 = vld [vmem:[%s6939_s6 + $0x8] sm:$0xff] }
 0x563   :  { %5138 = vrcp.f32 %v554_v53  ;;  %v557_v57 = vmul.f32 %v5137_v55, %v5125_v26  ;;  %v4919_v55 = vld [vmem:[%s6940_s8 + $0x38] sm:$0xff] }
 0x564   :  { %v433_v54 = vpack.c.bf16 %v432_v52, %v431_v12  ;;  %801 = vmatpush.bf16.msra.mxu2 %v4910_v50  ;;  %862 = vmatpush.bf16.msrb.mxu3 %v4919_v55 }
 0x566   :  { %4273 = vmatmul.msk.bf16.vlgmr.msrb.gmra.mxu0 %vm410_vm7, %v433_v54  ;;  %v4908_v54 = vld [vmem:[%s6939_s6] sm:$0xff] }
 0x568   :  { %802 = vmatpush.bf16.msra.mxu2 %v4909_v51 }
 0x569   :  { %v5139_v56 = vpop.eup %5138 }
 0x56a   :  { %v558_v58 = vmul.f32 %v5139_v56, %v5127_v32 }
 0x56c   :  { %v559_v59 = vpack.c.bf16 %v558_v58, %v557_v57  ;;  %803 = vmatpush.bf16.msra.mxu2 %v4908_v54  ;;  %v4918_v58 = vld [vmem:[%s6940_s8 + $0x30] sm:$0xff] }
 0x56d   :  { %863 = vmatpush.bf16.msrb.mxu3 %v4918_v58 }
 0x56e   :  { %4275 = vmatmul.msk.bf16.vlgmr.msrb.gmra.mxu2 %vm410_vm7, %v559_v59 }
 0x5ca   :  { %v616_v60 = vpop.xlane.xlu1 %615 }
 0x5cb   :  { %5140 = vrcp.f32 %v616_v60 }
 0x5d1   :  { %v5141_v0 = vpop.eup %5140 }
 0x5d2   :  { %v619_v62 = vpop.xlane.xlu2 %618  ;;  %v622_v2 = vmul.f32 %v5141_v0, %v5129_v43  ;;  %v4917_v0 = vld [vmem:[%s6940_s8 + $0x28] sm:$0xff] }
 0x5d3   :  { %5142 = vrcp.f32 %v619_v62  ;;  %864 = vmatpush.bf16.msrb.mxu3 %v4917_v0  ;;  %v4927_v0 = vld [vmem:[%s6936_s4 + $0xb8] sm:$0xff] }
 0x5d4   :  { %1038 = vmatpush.bf16.msra.mxu1 %v4927_v0 }
 0x5d9   :  { %v5143_v1 = vpop.eup %5142 }
 0x5da   :  { %v623_v3 = vmul.f32 %v5143_v1, %v5131_v47 }
 0x5dc   :  { %v624_v5 = vpack.c.bf16 %v623_v3, %v622_v2  ;;  %v4916_v3 = vld [vmem:[%s6940_s8 + $0x20] sm:$0xff] }
 0x5dd   :  { %865 = vmatpush.bf16.msrb.mxu3 %v4916_v3  ;;  %v4926_v3 = vld [vmem:[%s6936_s4 + $0xb0] sm:$0xff] }
 0x5de   :  { %4277 = vmatmul.msk.bf16.vlgmr.msra.gmra.mxu0 %vm410_vm7, %v624_v5  ;;  %1039 = vmatpush.bf16.msra.mxu1 %v4926_v3 }
 0x5e3   :  { %v509_v9 = vpop.f32.mrf.mxu0 }
 0x5e4   :  { %v510_v16 = vadd.f32 %v509_v9, %v5621_v61 }
 0x5eb   :  { %v511_v11 = vpop.f32.mrf.mxu0 }
 0x5ec   :  { %v512_v17 = vadd.f32 %v511_v11, %v5623_v63 }
 0x5f1   :  { %v572_v13 = vpop.f32.mrf.mxu2 }
 0x5f2   :  { %v577_v20 = vadd.f32 %v572_v13, %v510_v16 }
 0x5f9   :  { %v574_v15 = vpop.f32.mrf.mxu2 }
 0x5fa   :  { %v578_v23 = vadd.f32 %v574_v15, %v512_v17 }
 0x65b   :  { %v637_v14 = vpop.f32.mrf.mxu0 }
 0x65c   :  { %v642_v25 = vadd.f32 %v637_v14, %v577_v20  ;;  %v5055_v14 = vld [vmem:[%s6934_s10 + $0x2] ss:$0 sm:$0xff]  ;;  %v5056_v20 = vld [vmem:[%s6934_s10 + $0x3] ss:$0 sm:$0xff] }
 0x663   :  { %v639_v24 = vpop.f32.mrf.mxu0 }
 0x664   :  { %v643_v26 = vadd.f32 %v639_v24, %v578_v23 }
 0x666   :  { %v644_v27 = vpack.c.bf16 %v643_v26, %v642_v25 }
 0x668   :  { %4294 = vmatmul.msk.bf16.vlgmr.msrb.gmra.mxu1 %vm133_vm2, %v644_v27 }
 0x6e5   :  { %v682_v32 = vpop.f32.mrf.mxu1 }
 0x6e6   :  { %v683_v33 = vadd.f32 %v5054_v30, %v682_v32  ;;  %v4915_v32 = vld [vmem:[%s6940_s8 + $0x18] sm:$0xff] }
 0x6e7   :  { %866 = vmatpush.bf16.msrb.mxu3 %v4915_v32 }
 0x6e8   :  { %v5657_v34 = vadd.f32 %v683_v33, %v5456_v18  ;;  %v4914_v33 = vld [vmem:[%s6940_s8 + $0x10] sm:$0xff] }
 0x6ea   :  { %v691_v61 = vsel %vm133_vm2, %v5657_v34, 0.0 }
 0x6eb   :  { %692 = vadd.xlane.f32.xlu0 %v691_v61  ;;  %867 = vmatpush.bf16.msrb.mxu3 %v4914_v33  ;;  %v4913_v61 = vld [vmem:[%s6940_s8 + $0x8] sm:$0xff] }
 0x6ed   :  { %v684_v63 = vpop.f32.mrf.mxu1 }
 0x6ee   :  { %v685_v35 = vadd.f32 %v5054_v30, %v684_v63  ;;  %v4912_v63 = vld [vmem:[%s6940_s8] sm:$0xff] }
 0x6ef   :  { %868 = vmatpush.bf16.msrb.mxu3 %v4913_v61 }
 0x6f0   :  { %v5662_v36 = vadd.f32 %v685_v35, %v5463_v22 }
 0x6f2   :  { %v694_v38 = vsel %vm133_vm2, %v5662_v36, 0.0 }
 0x6f3   :  { %695 = vadd.xlane.f32.xlu1 %v694_v38  ;;  %869 = vmatpush.bf16.msrb.mxu3 %v4912_v63  ;;  %v5057_v38 = vld [vmem:[%s6938_s7] ss:$0 sm:$0xff] }
 0x75e   :  { %v693_v42 = vpop.xlane.xlu0 %692 }
 0x75f   :  { %v697_v10 = vmul.f32 %v693_v42, %v5470_v31 }
 0x761   :  { %v699_v43 = vsub.f32 %v5657_v34, %v697_v10 }
 0x763   :  { %v701_v18 = vmul.f32 %v699_v43, %v699_v43 }
 0x765   :  { %v703_v44 = vsel %vm133_vm2, %v701_v18, 0.0 }
 0x766   :  { %v696_v45 = vpop.xlane.xlu1 %695  ;;  %704 = vadd.xlane.f32.xlu2 %v703_v44 }
 0x767   :  { %v698_v46 = vmul.f32 %v696_v45, %v5470_v31 }
 0x769   :  { %v700_v47 = vsub.f32 %v5662_v36, %v698_v46  ;;  %v5058_v46 = vld [vmem:[%s6941_s9] ss:$0 sm:$0xff] }
 0x76b   :  { %v702_v22 = vmul.f32 %v700_v47, %v700_v47 }
 0x76d   :  { %v706_v48 = vsel %vm133_vm2, %v702_v22, 0.0 }
 0x76e   :  { %707 = vadd.xlane.f32.xlu0 %v706_v48 }
 0x7d9   :  { %v705_v12 = vpop.xlane.xlu2 %704 }
 0x7da   :  { %v709_v52 = vmul.f32 %v705_v12, %v5470_v31 }
 0x7dc   :  { %v711_v53 = vadd.f32 1e-05, %v709_v52 }
 0x7de   :  { %5144 = vrsqrt.f32 %v711_v53  ;;  %vm719_vm9 = vweird.f32 %v711_v53 }
 0x7e1   :  { %v708_v56 = vpop.xlane.xlu0 %707 }
 0x7e2   :  { %v710_v57 = vmul.f32 %v708_v56, %v5470_v31 }
 0x7e4   :  { %v5145_v59 = vpop.eup %5144  ;;  %v712_v60 = vadd.f32 1e-05, %v710_v57 }
 0x7e5   :  { %v714_v62 = vmul.f32 %v5145_v59, %v711_v53  ;;  %vm720_vm8 = vweird.f32 %v5145_v59 }
 0x7e6   :  { %5146 = vrsqrt.f32 %v712_v60  ;;  %vm721_vm10 = vmor %vm719_vm9, %vm720_vm8  ;;  %vm729_vm12 = vweird.f32 %v712_v60 }
 0x7e7   :  { %v715_v1 = vmul.f32 %v5145_v59, %v714_v62  ;;  %v4923_v62 = vld [vmem:[%s6936_s4 + $0x98] sm:$0xff] }
 0x7e8   :  { %999 = vmatpush.bf16.msrb.mxu0 %v4923_v62 }
 0x7e9   :  { %v716_v2 = vmul.f32 0.5, %v715_v1  ;;  %v4931_v1 = vld [vmem:[%s6936_s4 + $0xd8] sm:$0xff] }
 0x7ea   :  { %1077 = vmatpush.bf16.msrb.mxu2 %v4931_v1 }
 0x7eb   :  { %v717_v4 = vsub.f32 1.5, %v716_v2  ;;  %v4922_v2 = vld [vmem:[%s6936_s4 + $0x90] sm:$0xff] }
 0x7ec   :  { %v5147_v5 = vpop.eup %5146  ;;  %1000 = vmatpush.bf16.msrb.mxu0 %v4922_v2 }
 0x7ed   :  { %v718_v6 = vmul.f32 %v5145_v59, %v717_v4  ;;  %v724_v7 = vmul.f32 %v5147_v5, %v712_v60  ;;  %vm730_vm11 = vweird.f32 %v5147_v5  ;;  %v4930_v4 = vld [vmem:[%s6936_s4 + $0xd0] sm:$0xff] }
 0x7ee   :  { %vm731_vm13 = vmor %vm729_vm12, %vm730_vm11  ;;  %1078 = vmatpush.bf16.msrb.mxu2 %v4930_v4 }
 0x7ef   :  { %v725_v8 = vmul.f32 %v5147_v5, %v724_v7  ;;  %v722_v9 = vsel %vm721_vm10, %v5145_v59, %v718_v6  ;;  %v4925_v6 = vld [vmem:[%s6936_s4 + $0xa8] sm:$0xff] }
 0x7f0   :  { %v733_v15 = vmul.f32 %v722_v9, %v699_v43  ;;  %v4929_v7 = vld [vmem:[%s6936_s4 + $0xc8] sm:$0xff]  ;;  %1040 = vmatpush.bf16.msra.mxu1 %v4925_v6 }
 0x7f1   :  { %v726_v11 = vmul.f32 0.5, %v725_v8 }
 0x7f2   :  { %v736_v23 = vmul.f32 %v5055_v14, %v733_v15  ;;  %1079 = vmatpush.bf16.msrb.mxu2 %v4929_v7  ;;  %v4928_v15 = vld [vmem:[%s6936_s4 + $0xc0] sm:$0xff] }
 0x7f3   :  { %v727_v13 = vsub.f32 1.5, %v726_v11 }
 0x7f4   :  { %v739_v26 = vadd.f32 %v5056_v20, %v736_v23 }
 0x7f5   :  { %v728_v16 = vmul.f32 %v5147_v5, %v727_v13  ;;  %v4920_v13 = vld [vmem:[%s6936_s4 + $0x80] sm:$0xff] }
 0x7f6   :  { %1080 = vmatpush.bf16.msrb.mxu2 %v4928_v15 }
 0x7f7   :  { %v732_v17 = vsel %vm731_vm13, %v5147_v5, %v728_v16  ;;  %v4921_v5 = vld [vmem:[%s6936_s4 + $0x88] sm:$0xff] }
 0x7f8   :  { %v734_v24 = vmul.f32 %v732_v17, %v700_v47  ;;  %1001 = vmatpush.bf16.msrb.mxu0 %v4921_v5 }
 0x7fa   :  { %v737_v25 = vmul.f32 %v5055_v14, %v734_v24  ;;  %v4924_v14 = vld [vmem:[%s6936_s4 + $0xa0] sm:$0xff] }
 0x7fb   :  { %1041 = vmatpush.bf16.msra.mxu1 %v4924_v14 }
 0x7fc   :  { %v740_v27 = vadd.f32 %v5056_v20, %v737_v25  ;;  %1002 = vmatpush.bf16.msrb.mxu0 %v4920_v13 }
 0x7fe   :  { %v767_v30 = vpack.c.bf16 %v740_v27, %v739_v26 }
 0x800   :  { %4311 = vmatmul.msk.bf16.vlgmr.msra.gmra.mxu2 %vm133_vm2, %v767_v30 }
 0x883   :  { %v805_v35 = vpop.f32.mrf.mxu2 }
 0x884   :  { %v806_v42 = vadd.f32 %v5057_v38, %v805_v35 }
 0x886   :  { %v810_v18 = vmax.f32 %v806_v42, 0.0  ;;  %v5059_v42 = vld [vmem:[%s6934_s10 + $0x4] ss:$0 sm:$0xff] }
 0x88b   :  { %v807_v10 = vpop.f32.mrf.mxu2 }
 0x88c   :  { %v808_v43 = vadd.f32 %v5057_v38, %v807_v10 }
 0x88e   :  { %v811_v44 = vmax.f32 %v808_v43, 0.0 }
 0x890   :  { %v812_v45 = vpack.c.bf16 %v811_v44, %v810_v18  ;;  %v5060_v44 = vld [vmem:[%s6934_s10 + $0x5] ss:$0 sm:$0xff] }
 0x892   :  { %870 = vmatmul.bf16.vlgmr.msrb.gmra.mxu3 %v812_v45 }
 0x915   :  { %v871_v47 = vpop.f32.mrf.mxu3 }
 0x916   :  { %v872_v22 = vadd.f32 %v5058_v46, %v871_v47 }
 0x918   :  { %v5724_v48 = vadd.f32 %v872_v22, %v5657_v34 }
 0x91a   :  { %v880_v49 = vsel %vm133_vm2, %v5724_v48, 0.0 }
 0x91b   :  { %881 = vadd.xlane.f32.xlu1 %v880_v49 }
 0x91d   :  { %v873_v50 = vpop.f32.mrf.mxu3 }
 0x91e   :  { %v874_v51 = vadd.f32 %v5058_v46, %v873_v50 }
 0x920   :  { %v5729_v12 = vadd.f32 %v874_v51, %v5662_v36 }
 0x922   :  { %v883_v52 = vsel %vm133_vm2, %v5729_v12, 0.0 }
 0x923   :  { %884 = vadd.xlane.f32.xlu2 %v883_v52 }
 0x98e   :  { %v882_v53 = vpop.xlane.xlu1 %881 }
 0x98f   :  { %v886_v54 = vmul.f32 %v882_v53, %v5470_v31  ;;  %v5062_v53 = vld [vmem:[%s6935_s5 + $0x5] ss:$0 sm:$0xff] }
 0x991   :  { %v888_v55 = vsub.f32 %v5724_v48, %v886_v54 }
 0x993   :  { %v890_v34 = vmul.f32 %v888_v55, %v888_v55 }
 0x995   :  { %v892_v56 = vsel %vm133_vm2, %v890_v34, 0.0  ;;  %v5063_v34 = vld [vmem:[%s6935_s5 + $0x6] ss:$0 sm:$0xff] }
 0x996   :  { %v885_v57 = vpop.xlane.xlu2 %884  ;;  %893 = vadd.xlane.f32.xlu0 %v892_v56 }
 0x997   :  { %v887_v58 = vmul.f32 %v885_v57, %v5470_v31 }
 0x999   :  { %v889_v59 = vsub.f32 %v5729_v12, %v887_v58 }
 0x99b   :  { %v891_v36 = vmul.f32 %v889_v59, %v889_v59 }
 0x99d   :  { %v895_v60 = vsel %vm133_vm2, %v891_v36, 0.0 }
 0x99e   :  { %896 = vadd.xlane.f32.xlu1 %v895_v60 }
 0xa09   :  { %v894_v8 = vpop.xlane.xlu0 %893 }
 0xa0a   :  { %v898_v9 = vmul.f32 %v894_v8, %v5470_v31 }
 0xa0c   :  { %v900_v11 = vadd.f32 1e-05, %v898_v9 }
 0xa0e   :  { %5148 = vrsqrt.f32 %v900_v11  ;;  %vm908_vm15 = vweird.f32 %v900_v11 }
 0xa11   :  { %v897_v16 = vpop.xlane.xlu1 %896 }
 0xa12   :  { %v899_v17 = vmul.f32 %v897_v16, %v5470_v31 }
 0xa14   :  { %v5149_v20 = vpop.eup %5148  ;;  %v901_v23 = vadd.f32 1e-05, %v899_v17 }
 0xa15   :  { %v903_v24 = vmul.f32 %v5149_v20, %v900_v11  ;;  %vm909_vm14 = vweird.f32 %v5149_v20 }
 0xa16   :  { %5150 = vrsqrt.f32 %v901_v23  ;;  %vm910_vm0 = vmor %vm908_vm15, %vm909_vm14  ;;  %vm918_vm3 = vweird.f32 %v901_v23 }
 0xa17   :  { %v904_v25 = vmul.f32 %v5149_v20, %v903_v24 }
 0xa19   :  { %v905_v26 = vmul.f32 0.5, %v904_v25 }
 0xa1b   :  { %v906_v27 = vsub.f32 1.5, %v905_v26 }
 0xa1c   :  { %v5151_v30 = vpop.eup %5150 }
 0xa1d   :  { %v907_v32 = vmul.f32 %v5149_v20, %v906_v27  ;;  %v913_v33 = vmul.f32 %v5151_v30, %v901_v23  ;;  %vm919_vm1 = vweird.f32 %v5151_v30 }
 0xa1e   :  { %vm920_vm4 = vmor %vm918_vm3, %vm919_vm1 }
 0xa1f   :  { %v914_v61 = vmul.f32 %v5151_v30, %v913_v33  ;;  %v911_v63 = vsel %vm910_vm0, %v5149_v20, %v907_v32 }
 0xa20   :  { %v922_v10 = vmul.f32 %v911_v63, %v888_v55 }
 0xa21   :  { %v915_v35 = vmul.f32 0.5, %v914_v61 }
 0xa22   :  { %v925_v45 = vmul.f32 %v5059_v42, %v922_v10 }
 0xa23   :  { %v916_v38 = vsub.f32 1.5, %v915_v35 }
 0xa24   :  { %v928_v22 = vadd.f32 %v5060_v44, %v925_v45 }
 0xa25   :  { %v917_v43 = vmul.f32 %v5151_v30, %v916_v38 }
 0xa27   :  { %v921_v18 = vsel %vm920_vm4, %v5151_v30, %v917_v43 }
 0xa28   :  { %v923_v46 = vmul.f32 %v921_v18, %v889_v59  ;;  %v5061_v59 = vld [vmem:[%s6935_s5 + $0x4] ss:$0 sm:$0xff] }
 0xa2a   :  { %v926_v47 = vmul.f32 %v5059_v42, %v923_v46 }
 0xa2c   :  { %v929_v49 = vadd.f32 %v5060_v44, %v926_v47 }
 0xa2e   :  { %v966_v50 = vpack.c.bf16 %v929_v49, %v928_v22 }
 0xa30   :  { %4360 = vmatmul.msk.bf16.vlgmr.msrb.gmra.mxu0 %vm133_vm2, %v966_v50  ;;  %4377 = vmatmul.msk.bf16.vlgmr.msra.gmra.mxu1 %vm133_vm2, %v966_v50 }
 0xa31   :  { %4394 = vmatmul.msk.bf16.vlgmr.msrb.gmra.mxu2 %vm133_vm2, %v966_v50 }
 0xaad   :  { %v1004_v51 = vpop.f32.mrf.mxu0  ;;  %v1043_v52 = vpop.f32.mrf.mxu1 }
 0xaae   :  { %v1044_v54 = vadd.f32 %v5062_v53, %v1043_v52  ;;  %v1005_v9 = vadd.f32 %v5061_v59, %v1004_v51 }
 0xab0   :  { %v1090_v36 = vmul.f32 %v5558_v37, %v1044_v54  ;;  %v1139_v60 = vmul.f32 %v5561_v39, %v1044_v54  ;;  %v1219_v1 = vmul.f32 %v5567_v41, %v1044_v54  ;;  %v1284_v16 = vmul.f32 %v5564_v40, %v1044_v54 }
 0xab1   :  { %v1087_v63 = vmul.f32 0.25, %v1005_v9 }
 0xab4   :  { %v1082_v55 = vpop.f32.mrf.mxu2 }
 0xab5   :  { %v1045_v56 = vpop.f32.mrf.mxu1  ;;  %v1006_v57 = vpop.f32.mrf.mxu0  ;;  %v1083_v3 = vadd.f32 %v5063_v34, %v1082_v55 }
 0xab6   :  { %v1046_v58 = vadd.f32 %v5062_v53, %v1045_v56  ;;  %v1007_v4 = vadd.f32 %v5061_v59, %v1006_v57 }
 0xab7   :  { %v1093_v17 = vmul.f32 %v5558_v37, %v1083_v3  ;;  %v1142_v20 = vmul.f32 %v5561_v39, %v1083_v3  ;;  %v1222_v24 = vmul.f32 %v5567_v41, %v1083_v3  ;;  %v1287_v25 = vmul.f32 %v5564_v40, %v1083_v3 }
 0xab8   :  { %v1091_v62 = vmul.f32 %v5558_v37, %v1046_v58  ;;  %v1140_v0 = vmul.f32 %v5561_v39, %v1046_v58  ;;  %v1220_v2 = vmul.f32 %v5567_v41, %v1046_v58  ;;  %v1285_v8 = vmul.f32 %v5564_v40, %v1046_v58 }
 0xab9   :  { %v1088_v26 = vmul.f32 0.25, %v1007_v4 }
 0xaba   :  { %v1092_v5 = vpack.c.bf16 %v1091_v62, %v1090_v36  ;;  %v1141_v6 = vpack.c.bf16 %v1140_v0, %v1139_v60  ;;  %v1221_v7 = vpack.c.bf16 %v1220_v2, %v1219_v1  ;;  %v1286_v27 = vpack.c.bf16 %v1285_v8, %v1284_v16 }
 0xabb   :  { %v5814_v43 = vpack.c.bf16 %v1088_v26, %v1087_v63 }
 0xabc   :  { %v1084_v11 = vpop.f32.mrf.mxu2  ;;  %v1100_v13 = vsel %vm133_vm2, %v1092_v5, 0  ;;  %v1146_v14 = vsel %vm133_vm2, %v1141_v6, 0  ;;  %v1226_v15 = vsel %vm133_vm2, %v1221_v7, 0  ;;  %v1291_v18 = vsel %vm133_vm2, %v1286_v27, 0 }
 0xabd   :  { %v1085_v23 = vadd.f32 %v5063_v34, %v1084_v11  ;;  %1109 = vmatpush.bf16.xpose.msra.mxu0 %v1100_v13  ;;  %1155 = vmatpush.bf16.xpose.msrb.mxu1 %v1146_v14 }
 0xabf   :  { %v1143_v30 = vmul.f32 %v5561_v39, %v1085_v23  ;;  %v1094_v32 = vmul.f32 %v5558_v37, %v1085_v23  ;;  %v1223_v33 = vmul.f32 %v5567_v41, %v1085_v23  ;;  %v1288_v61 = vmul.f32 %v5564_v40, %v1085_v23 }
 0xac1   :  { %v1144_v35 = vpack.c.bf16 %v1143_v30, %v1142_v20  ;;  %v1095_v38 = vpack.c.bf16 %v1094_v32, %v1093_v17  ;;  %v1224_v42 = vpack.c.bf16 %v1223_v33, %v1222_v24  ;;  %v1289_v10 = vpack.c.bf16 %v1288_v61, %v1287_v25  ;;  %v108_v30 = vld [vmem:[%s6933_s3 + $0x18] sm:$0xff] }
 0xac2   :  { %v5851_v32 = vadd.f32 %v5542_v29, %v108_v30 }
 0xac3   :  { %1195 = vmatpush.bf16.msra.mxu2 %v1144_v35  ;;  %1212 = vmatpush.bf16.msra.mxu3 %v1095_v38 }
 0xac4   :  { %4395 = vmatmul.msk.bf16.vlgmr.msra.gmra.mxu0 %vm133_vm2, %v5814_v43  ;;  %4396 = vmatmul.msk.bf16.vlgmr.msrb.gmra.mxu1 %vm133_vm2, %v5814_v43  ;;  %v1640_v33 = vsel %vm133_vm2, %v5851_v32, 0.0 }
 0xac5   :  { %1235 = vmatpush.bf16.xpose.msrb.mxu0 %v1226_v15  ;;  %1275 = vmatpush.bf16.msra.mxu1 %v1224_v42 }
 0xac7   :  { %1300 = vmatpush.bf16.xpose.msrb.mxu2 %v1291_v18  ;;  %1340 = vmatpush.bf16.msrb.mxu3 %v1289_v10 }
 0xad4   :  { %4399 = vmatmul.msk.bf16.vlgmr.msrb.gmra.mxu0 %vm133_vm2, %v5814_v43 }
 0xb41   :  { %v1157_v44 = vpop.f32.mrf.mxu1  ;;  %v1111_v50 = vpop.f32.mrf.mxu0 }
 0xb42   :  { %v1158_v45 = vadd.f32 %v1157_v44, %v5598_v19  ;;  %v5828_v51 = vadd.f32 %v1111_v50, %v5598_v19 }
 0xb44   :  { %v1162_v46 = vsel %vm410_vm7, %v1158_v45, -inf  ;;  %v1116_v52 = vsel %vm410_vm7, %v5828_v51, -inf }
 0xb45   :  { %1163 = vmax.xlane.f32.xlu2 %v1162_v46 }
 0xb49   :  { %v1159_v47 = vpop.f32.mrf.mxu1  ;;  %v1113_v58 = vpop.f32.mrf.mxu0 }
 0xb4a   :  { %v1160_v22 = vadd.f32 %v1159_v47, %v5603_v21  ;;  %v1114_v60 = vadd.f32 %v1113_v58, %v5603_v21 }
 0xb4c   :  { %v1165_v49 = vsel %vm410_vm7, %v1160_v22, -inf  ;;  %v1119_v1 = vsel %vm410_vm7, %v1114_v60, -inf }
 0xb4d   :  { %1166 = vmax.xlane.f32.xlu0 %v1165_v49 }
 0xb51   :  { %v1237_v2 = vpop.f32.mrf.mxu0 }
 0xb52   :  { %v1238_v3 = vadd.f32 %v1237_v2, %v5598_v19 }
 0xb54   :  { %v1242_v4 = vsel %vm410_vm7, %v1238_v3, -inf }
 0xb55   :  { %1117 = vmax.xlane.f32.xlu0 %v1116_v52 }
 0xb59   :  { %v1239_v18 = vpop.f32.mrf.mxu0 }
 0xbb8   :  { %v1164_v53 = vpop.xlane.xlu2 %1163 }
 0xbb9   :  { %v1168_v54 = vsub.f32 %v1158_v45, %v1164_v53 }
 0xbbb   :  { %v1170_v55 = vmul.f32 1.442695, %v1168_v54 }
 0xbbd   :  { %5152 = vpow2.f32 %v1170_v55 }
 0xbc0   :  { %v1167_v34 = vpop.xlane.xlu0 %1166 }
 0xbc1   :  { %v1169_v56 = vsub.f32 %v1160_v22, %v1167_v34 }
 0xbc3   :  { %v5153_v57 = vpop.eup %5152  ;;  %v1172_v59 = vmul.f32 1.442695, %v1169_v56 }
 0xbc4   :  { %v1174_v36 = vsel %vm410_vm7, %v5153_v57, 0.0 }
 0xbc5   :  { %5154 = vpow2.f32 %v1172_v59  ;;  %1175 = vadd.xlane.f32.xlu1 %v1174_v36 }
 0xbc8   :  { %v1118_v35 = vpop.xlane.xlu0 %1117 }
 0xbc9   :  { %v1122_v10 = vsub.f32 %v5828_v51, %v1118_v35 }
 0xbcb   :  { %v5155_v62 = vpop.eup %5154  ;;  %v1124_v44 = vmul.f32 1.442695, %v1122_v10 }
 0xbcc   :  { %v1177_v0 = vsel %vm410_vm7, %v5155_v62, 0.0 }
 0xbcd   :  { %1178 = vadd.xlane.f32.xlu2 %v1177_v0  ;;  %1120 = vmax.xlane.f32.xlu1 %v1119_v1 }
 0xbd5   :  { %1243 = vmax.xlane.f32.xlu1 %v1242_v4  ;;  %v107_v4 = vld [vmem:[%s6933_s3 + $0x10] sm:$0xff] }
 0xc38   :  { %v1176_v5 = vpop.xlane.xlu1 %1175 }
 0xc39   :  { %5156 = vrcp.f32 %v1176_v5 }
 0xc3f   :  { %v5157_v11 = vpop.eup %5156 }
 0xc40   :  { %v1179_v6 = vpop.xlane.xlu2 %1178  ;;  %v1121_v7 = vpop.xlane.xlu1 %1120  ;;  %v1182_v14 = vmul.f32 %v5157_v11, %v5153_v57 }
 0xc41   :  { %5158 = vrcp.f32 %v1179_v6  ;;  %v1123_v8 = vsub.f32 %v1114_v60, %v1121_v7 }
 0xc43   :  { %v1126_v9 = vmul.f32 1.442695, %v1123_v8 }
 0xc45   :  { %5160 = vpow2.f32 %v1126_v9  ;;  %v5877_v9 = vadd.f32 %v5540_v28, %v107_v4 }
 0xc47   :  { %v5159_v13 = vpop.eup %5158 }
 0xc48   :  { %v1183_v15 = vmul.f32 %v5159_v13, %v5155_v62  ;;  %v1244_v16 = vpop.xlane.xlu1 %1243 }
 0xc49   :  { %v1248_v17 = vsub.f32 %v1238_v3, %v1244_v16 }
 0xc4a   :  { %v1184_v20 = vpack.c.bf16 %v1183_v15, %v1182_v14  ;;  %v1637_v15 = vsel %vm133_vm2, %v5877_v9, 0.0 }
 0xc4b   :  { %v5838_v23 = vpop.eup %5160  ;;  %v1250_v24 = vmul.f32 1.442695, %v1248_v17 }
 0xc4c   :  { %4397 = vmatmul.msk.bf16.vlgmr.msra.gmra.mxu2 %vm410_vm7, %v1184_v20  ;;  %v1131_v25 = vsel %vm410_vm7, %v5838_v23, 0.0 }
 0xc4d   :  { %5162 = vpow2.f32 %v1250_v24  ;;  %1132 = vadd.xlane.f32.xlu1 %v1131_v25 }
 0xc4e   :  { %5164 = vpow2.f32 %v1124_v44 }
 0xc53   :  { %v5843_v26 = vpop.eup %5162 }
 0xc54   :  { %v1254_v27 = vsel %vm410_vm7, %v5843_v26, 0.0 }
 0xc55   :  { %1255 = vadd.xlane.f32.xlu1 %v1254_v27 }
 0xc5c   :  { %4401 = vmatmul.msk.bf16.vlgmr.msrb.gmra.mxu2 %vm133_vm2, %v5814_v43  ;;  %v1240_v43 = vadd.f32 %v1239_v18, %v5603_v21 }
 0xc5d   :  { %1641 = vadd.xlane.f32.xlu1 %v1640_v33 }
 0xc5e   :  { %v1245_v47 = vsel %vm410_vm7, %v1240_v43, -inf }
 0xcc0   :  { %v1133_v52 = vpop.xlane.xlu1 %1132 }
 0xcc8   :  { %v1256_v59 = vpop.xlane.xlu1 %1255 }
 0xccf   :  { %v5857_v61 = vpop.f32.mrf.mxu2 }
 0xcd0   :  { %v1642_v5 = vpop.xlane.xlu1 %1641 }
 0xcd1   :  { %v1644_v11 = vmul.f32 %v1642_v5, %v5470_v31 }
 0xcd3   :  { %v5882_v14 = vsub.f32 %v5851_v32, %v1644_v11 }
 0xcd5   :  { %v1648_v16 = vmul.f32 %v5882_v14, %v5882_v14 }
 0xcd7   :  { %v5859_v63 = vpop.f32.mrf.mxu2  ;;  %v1652_v17 = vsel %vm133_vm2, %v1648_v16, 0.0 }
 0xcdf   :  { %v1302_v38 = vpop.f32.mrf.mxu2 }
 0xce0   :  { %v1303_v42 = vadd.f32 %v1302_v38, %v5598_v19  ;;  %v5165_v19 = vpop.eup %5164 }
 0xce1   :  { %v1128_v49 = vsel %vm410_vm7, %v5165_v19, 0.0 }
 0xce2   :  { %v1307_v29 = vsel %vm410_vm7, %v1303_v42, -inf }
 0xce3   :  { %1308 = vmax.xlane.f32.xlu2 %v1307_v29 }
 0xce7   :  { %v1304_v45 = vpop.f32.mrf.mxu2 }
 0xce8   :  { %v1305_v46 = vadd.f32 %v1304_v45, %v5603_v21 }
 0xcea   :  { %v1310_v22 = vsel %vm410_vm7, %v1305_v46, -inf }
 0xceb   :  { %1246 = vmax.xlane.f32.xlu2 %v1245_v47  ;;  %1311 = vmax.xlane.f32.xlu0 %v1310_v22  ;;  %v4935_v47 = vld [vmem:[%s6936_s4 + $0xf8] sm:$0xff] }
 0xcec   :  { %1382 = vmatpush.bf16.msra.mxu0 %v4935_v47 }
 0xcf3   :  { %1129 = vadd.xlane.f32.xlu0 %v1128_v49  ;;  %v4951_v49 = vld [vmem:[%s6936_s4 + $0x118] sm:$0xff] }
 0xd56   :  { %v1309_v50 = vpop.xlane.xlu2 %1308 }
 0xd57   :  { %v1313_v51 = vsub.f32 %v1303_v42, %v1309_v50 }
 0xd59   :  { %v1315_v53 = vmul.f32 1.442695, %v1313_v51  ;;  %v4933_v51 = vld [vmem:[%s6936_s4 + $0xe8] sm:$0xff] }
 0xd5b   :  { %5166 = vpow2.f32 %v1315_v53  ;;  %v4932_v53 = vld [vmem:[%s6936_s4 + $0xe0] sm:$0xff] }
 0xd5e   :  { %v1247_v54 = vpop.xlane.xlu2 %1246  ;;  %v1312_v55 = vpop.xlane.xlu0 %1311 }
 0xd5f   :  { %v1249_v34 = vsub.f32 %v1240_v43, %v1247_v54  ;;  %v1314_v21 = vsub.f32 %v1305_v46, %v1312_v55  ;;  %v4949_v54 = vld [vmem:[%s6936_s4 + $0x108] sm:$0xff]  ;;  %v4955_v55 = vld [vmem:[%s6936_s4 + $0x138] sm:$0xff] }
 0xd61   :  { %v5167_v56 = vpop.eup %5166  ;;  %v1252_v57 = vmul.f32 1.442695, %v1249_v34  ;;  %v1317_v58 = vmul.f32 1.442695, %v1314_v21 }
 0xd62   :  { %v1319_v36 = vsel %vm410_vm7, %v5167_v56, 0.0 }
 0xd63   :  { %5168 = vpow2.f32 %v1252_v57  ;;  %1320 = vadd.xlane.f32.xlu2 %v1319_v36  ;;  %v4954_v57 = vld [vmem:[%s6936_s4 + $0x130] sm:$0xff] }
 0xd64   :  { %5170 = vpow2.f32 %v1317_v58 }
 0xd65   :  { %5172 = vrcp.f32 %v1133_v52  ;;  %v4950_v52 = vld [vmem:[%s6936_s4 + $0x110] sm:$0xff] }
 0xd66   :  { %v1130_v60 = vpop.xlane.xlu0 %1129 }
 0xd67   :  { %5174 = vrcp.f32 %v1130_v60 }
 0xd68   :  { %5176 = vrcp.f32 %v1256_v59  ;;  %v4953_v59 = vld [vmem:[%s6936_s4 + $0x128] sm:$0xff] }
 0xd69   :  { %v5169_v62 = vpop.eup %5168 }
 0xd6a   :  { %v5171_v0 = vpop.eup %5170  ;;  %v1257_v1 = vsel %vm410_vm7, %v5169_v62, 0.0 }
 0xd6b   :  { %v5173_v2 = vpop.eup %5172  ;;  %1258 = vadd.xlane.f32.xlu2 %v1257_v1  ;;  %v1322_v3 = vsel %vm410_vm7, %v5171_v0, 0.0 }
 0xd6c   :  { %1323 = vadd.xlane.f32.xlu0 %v1322_v3  ;;  %v1137_v7 = vmul.f32 %v5173_v2, %v5838_v23 }
 0xd6d   :  { %v5175_v6 = vpop.eup %5174 }
 0xd6e   :  { %v1136_v8 = vmul.f32 %v5175_v6, %v5165_v19  ;;  %v5177_v24 = vpop.eup %5176  ;;  %v4934_v19 = vld [vmem:[%s6936_s4 + $0xf0] sm:$0xff] }
 0xd6f   :  { %v1262_v33 = vmul.f32 %v5177_v24, %v5843_v26  ;;  %1383 = vmatpush.bf16.msra.mxu0 %v4934_v19  ;;  %v5064_v24 = vld [vmem:[%s6934_s10 + $0xa] ss:$0 sm:$0xff] }
 0xd70   :  { %v1138_v13 = vpack.c.bf16 %v1137_v7, %v1136_v8 }
 0xd72   :  { %4398 = vmatmul.msk.bf16.vlgmr.msra.gmra.mxu3 %vm410_vm7, %v1138_v13 }
 0xd73   :  { %1756 = vmatpush.bf16.msra.mxu3 %v4951_v49  ;;  %1384 = vmatpush.bf16.msra.mxu0 %v4933_v51 }
 0xd74   :  { %1638 = vadd.xlane.f32.xlu0 %v1637_v15 }
 0xd77   :  { %1757 = vmatpush.bf16.msra.mxu3 %v4950_v52  ;;  %1385 = vmatpush.bf16.msra.mxu0 %v4932_v53 }
 0xd7b   :  { %1758 = vmatpush.bf16.msra.mxu3 %v4949_v54  ;;  %1795 = vmatpush.bf16.msrb.mxu0 %v4955_v55 }
 0xd7c   :  { %1653 = vadd.xlane.f32.xlu0 %v1652_v17 }
 0xd7f   :  { %1796 = vmatpush.bf16.msrb.mxu0 %v4954_v57  ;;  %v5067_v57 = vld [vmem:[%s6935_s5 + $0x8] ss:$0 sm:$0xff] }
 0xd83   :  { %1797 = vmatpush.bf16.msrb.mxu0 %v4953_v59 }
 0xdd6   :  { %v1321_v28 = vpop.xlane.xlu2 %1320 }
 0xdd7   :  { %5178 = vrcp.f32 %v1321_v28 }
 0xddd   :  { %v5179_v25 = vpop.eup %5178 }
 0xdde   :  { %v1259_v20 = vpop.xlane.xlu2 %1258  ;;  %v1327_v38 = vmul.f32 %v5179_v25, %v5167_v56  ;;  %v4948_v56 = vld [vmem:[%s6936_s4 + $0x100] sm:$0xff] }
 0xddf   :  { %5180 = vrcp.f32 %v1259_v20  ;;  %v1324_v23 = vpop.xlane.xlu0 %1323  ;;  %1759 = vmatpush.bf16.msra.mxu3 %v4948_v56 }
 0xde0   :  { %5182 = vrcp.f32 %v1324_v23 }
 0xde5   :  { %v5181_v27 = vpop.eup %5180 }
 0xde6   :  { %v5183_v30 = vpop.eup %5182  ;;  %v1263_v35 = vmul.f32 %v5181_v27, %v5169_v62 }
 0xde7   :  { %v1328_v42 = vmul.f32 %v5183_v30, %v5171_v0  ;;  %v1639_v10 = vpop.xlane.xlu0 %1638  ;;  %v4952_v0 = vld [vmem:[%s6936_s4 + $0x120] sm:$0xff] }
 0xde8   :  { %v1264_v29 = vpack.c.bf16 %v1263_v35, %v1262_v33  ;;  %v1643_v18 = vmul.f32 %v1639_v10, %v5470_v31  ;;  %1798 = vmatpush.bf16.msrb.mxu0 %v4952_v0 }
 0xde9   :  { %v1329_v44 = vpack.c.bf16 %v1328_v42, %v1327_v38 }
 0xdea   :  { %v5892_v43 = vsub.f32 %v5877_v9, %v1643_v18  ;;  %4400 = vmatmul.msk.bf16.vlgmr.msra.gmra.mxu1 %vm410_vm7, %v1264_v29 }
 0xdeb   :  { %4402 = vmatmul.msk.bf16.vlgmr.msrb.gmra.mxu3 %vm410_vm7, %v1329_v44 }
 0xdec   :  { %v1647_v45 = vmul.f32 %v5892_v43, %v5892_v43 }
 0xdee   :  { %v1649_v26 = vsel %vm133_vm2, %v1647_v45, 0.0 }
 0xdef   :  { %1650 = vadd.xlane.f32.xlu2 %v1649_v26  ;;  %v1654_v46 = vpop.xlane.xlu0 %1653 }
 0xdf0   :  { %v1656_v22 = vmul.f32 %v1654_v46, %v5470_v31  ;;  %v5066_v46 = vld [vmem:[%s6935_s5 + $0x7] ss:$0 sm:$0xff] }
 0xdf2   :  { %v1658_v50 = vadd.f32 1e-05, %v1656_v22 }
 0xdf4   :  { %5184 = vrsqrt.f32 %v1658_v50  ;;  %vm1675_vm6 = vweird.f32 %v1658_v50 }
 0xdf5   :  { %v1214_v21 = vpop.f32.mrf.mxu3 }
 0xdf6   :  { %v1215_v28 = vadd.f32 %v1214_v21, %v5857_v61  ;;  %v5065_v61 = vld [vmem:[%s6934_s10 + $0xb] ss:$0 sm:$0xff] }
 0xdfa   :  { %v5185_v34 = vpop.eup %5184 }
 0xdfb   :  { %v1670_v58 = vmul.f32 %v5185_v34, %v1658_v50  ;;  %vm1676_vm5 = vweird.f32 %v5185_v34 }
 0xdfc   :  { %vm1677_vm8 = vmor %vm1675_vm6, %vm1676_vm5 }
 0xdfd   :  { %v1671_v36 = vmul.f32 %v5185_v34, %v1670_v58  ;;  %v1216_v3 = vpop.f32.mrf.mxu3 }
 0xdfe   :  { %v1217_v20 = vadd.f32 %v1216_v3, %v5859_v63 }
 0xdff   :  { %v1672_v2 = vmul.f32 0.5, %v1671_v36 }
 0xe01   :  { %v1673_v5 = vsub.f32 1.5, %v1672_v2 }
 0xe03   :  { %v1674_v7 = vmul.f32 %v5185_v34, %v1673_v5 }
 0xe05   :  { %v1678_v15 = vsel %vm1677_vm8, %v5185_v34, %v1674_v7 }
 0xe06   :  { %v1680_v25 = vmul.f32 %v1678_v15, %v5882_v14 }
 0xe08   :  { %v1683_v63 = vmul.f32 %v5064_v24, %v1680_v25 }
 0xe0a   :  { %v1686_v14 = vadd.f32 %v5065_v61, %v1683_v63 }
 0xe62   :  { %v1651_v60 = vpop.xlane.xlu2 %1650 }
 0xe63   :  { %v1655_v62 = vmul.f32 %v1651_v60, %v5470_v31 }
 0xe65   :  { %v1657_v1 = vadd.f32 1e-05, %v1655_v62 }
 0xe67   :  { %5186 = vrsqrt.f32 %v1657_v1  ;;  %v1277_v4 = vpop.f32.mrf.mxu1  ;;  %vm1665_vm10 = vweird.f32 %v1657_v1 }
 0xe68   :  { %v1282_v27 = vadd.f32 %v1277_v4, %v1215_v28 }
 0xe6d   :  { %v5187_v6 = vpop.eup %5186 }
 0xe6e   :  { %v1660_v8 = vmul.f32 %v5187_v6, %v1657_v1  ;;  %v1342_v11 = vpop.f32.mrf.mxu3  ;;  %vm1666_vm9 = vweird.f32 %v5187_v6 }
 0xe6f   :  { %v1279_v17 = vpop.f32.mrf.mxu1  ;;  %vm1667_vm11 = vmor %vm1665_vm10, %vm1666_vm9  ;;  %v1347_v38 = vadd.f32 %v1342_v11, %v1282_v27 }
 0xe70   :  { %v1661_v13 = vmul.f32 %v5187_v6, %v1660_v8  ;;  %v1283_v30 = vadd.f32 %v1279_v17, %v1217_v20 }
 0xe72   :  { %v1662_v16 = vmul.f32 0.5, %v1661_v13 }
 0xe74   :  { %v1663_v23 = vsub.f32 1.5, %v1662_v16 }
 0xe76   :  { %v1664_v33 = vmul.f32 %v5187_v6, %v1663_v23  ;;  %v1344_v35 = vpop.f32.mrf.mxu3 }
 0xe77   :  { %v1348_v42 = vadd.f32 %v1344_v35, %v1283_v30 }
 0xe78   :  { %v1668_v10 = vsel %vm1667_vm11, %v5187_v6, %v1664_v33 }
 0xe79   :  { %v1679_v29 = vmul.f32 %v1668_v10, %v5892_v43  ;;  %v1349_v18 = vpack.c.bf16 %v1348_v42, %v1347_v38  ;;  %v6015_v42 = vld [vmem:[%s6937_s1 + $0x10] sm:$0xff] }
 0xe7b   :  { %v1682_v44 = vmul.f32 %v5064_v24, %v1679_v29  ;;  %4419 = vmatmul.msk.bf16.vlgmr.msra.gmra.mxu0 %vm133_vm2, %v1349_v18  ;;  %v6025_v29 = vld [vmem:[%s6937_s1 + $0x18] sm:$0xff] }
 0xe7d   :  { %v1685_v45 = vadd.f32 %v5065_v61, %v1682_v44 }
 0xe7f   :  { %v5948_v26 = vpack.c.bf16 %v1686_v14, %v1685_v45 }
 0xe81   :  { %4485 = vmatmul.msk.bf16.vlgmr.msra.gmra.mxu3 %vm133_vm2, %v5948_v26 }
 0xe8b   :  { %4502 = vmatmul.msk.bf16.vlgmr.msrb.gmra.mxu0 %vm133_vm2, %v5948_v26 }
 0xef8   :  { %v1387_v47 = vpop.f32.mrf.mxu0 }
 0xef9   :  { %v1388_v43 = vadd.f32 %v5066_v46, %v1387_v47 }
 0xefb   :  { %v5958_v22 = vadd.f32 %v1388_v43, %v5724_v48  ;;  %v5068_v48 = vld [vmem:[%s6935_s5 + $0x9] ss:$0 sm:$0xff]  ;;  %v4939_v43 = vld [vmem:[%s6939_s6 + $0x38] sm:$0xff] }
 0xefc   :  { %1505 = vmatpush.bf16.msrb.mxu1 %v4939_v43 }
 0xefd   :  { %v1396_v19 = vsel %vm133_vm2, %v5958_v22, 0.0 }
 0xefe   :  { %1397 = vadd.xlane.f32.xlu1 %v1396_v19  ;;  %v4938_v19 = vld [vmem:[%s6939_s6 + $0x30] sm:$0xff] }
 0xf00   :  { %v1389_v49 = vpop.f32.mrf.mxu0  ;;  %1506 = vmatpush.bf16.msrb.mxu1 %v4938_v19 }
 0xf01   :  { %v1390_v50 = vadd.f32 %v5066_v46, %v1389_v49  ;;  %v4937_v49 = vld [vmem:[%s6939_s6 + $0x28] sm:$0xff] }
 0xf03   :  { %v5963_v51 = vadd.f32 %v1390_v50, %v5729_v12 }
 0xf04   :  { %v1761_v53 = vpop.f32.mrf.mxu3  ;;  %1507 = vmatpush.bf16.msrb.mxu1 %v4937_v49 }
 0xf05   :  { %v1399_v52 = vsel %vm133_vm2, %v5963_v51, 0.0  ;;  %v1762_v7 = vadd.f32 %v5067_v57, %v1761_v53  ;;  %v4936_v53 = vld [vmem:[%s6939_s6 + $0x20] sm:$0xff] }
 0xf06   :  { %1400 = vadd.xlane.f32.xlu2 %v1399_v52 }
 0xf07   :  { %v1844_v16 = vmul.f32 0.25, %v1762_v7 }
 0xf08   :  { %v1800_v54 = vpop.f32.mrf.mxu0  ;;  %1508 = vmatpush.bf16.msrb.mxu1 %v4936_v53 }
 0xf09   :  { %v1801_v55 = vadd.f32 %v5068_v48, %v1800_v54 }
 0xf0b   :  { %v1847_v12 = vmul.f32 %v5558_v37, %v1801_v55  ;;  %v1896_v58 = vmul.f32 %v5561_v39, %v1801_v55  ;;  %v1976_v59 = vmul.f32 %v5567_v41, %v1801_v55  ;;  %v5977_v36 = vmul.f32 %v5564_v40, %v1801_v55 }
 0xf0c   :  { %v1763_v21 = vpop.f32.mrf.mxu3 }
 0xf0d   :  { %v1764_v2 = vadd.f32 %v5067_v57, %v1763_v21  ;;  %v4958_v21 = vld [vmem:[%s6936_s4 + $0x150] sm:$0xff] }
 0xf0f   :  { %v1845_v15 = vmul.f32 0.25, %v1764_v2 }
 0xf10   :  { %v1802_v34 = vpop.f32.mrf.mxu0 }
 0xf11   :  { %v1803_v56 = vadd.f32 %v5068_v48, %v1802_v34  ;;  %v5990_v17 = vpack.c.bf16 %v1845_v15, %v1844_v16  ;;  %v4959_v48 = vld [vmem:[%s6936_s4 + $0x158] sm:$0xff] }
 0xf12   :  { %1834 = vmatpush.bf16.msra.mxu1 %v4959_v48 }
 0xf13   :  { %v1848_v60 = vmul.f32 %v5558_v37, %v1803_v56  ;;  %v1897_v62 = vmul.f32 %v5561_v39, %v1803_v56  ;;  %v1977_v0 = vmul.f32 %v5567_v41, %v1803_v56  ;;  %v5983_v1 = vmul.f32 %v5564_v40, %v1803_v56 }
 0xf15   :  { %v1849_v3 = vpack.c.bf16 %v1848_v60, %v1847_v12  ;;  %v1898_v4 = vpack.c.bf16 %v1897_v62, %v1896_v58  ;;  %v1978_v5 = vpack.c.bf16 %v1977_v0, %v1976_v59  ;;  %v2043_v6 = vpack.c.bf16 %v5983_v1, %v5977_v36  ;;  %v4957_v59 = vld [vmem:[%s6936_s4 + $0x148] sm:$0xff]  ;;  %v4956_v0 = vld [vmem:[%s6936_s4 + $0x140] sm:$0xff] }
 0xf16   :  { %1835 = vmatpush.bf16.msra.mxu1 %v4958_v21  ;;  %v4943_v21 = vld [vmem:[%s6940_s8 + $0x58] sm:$0xff] }
 0xf17   :  { %v1857_v8 = vsel %vm133_vm2, %v1849_v3, 0  ;;  %v1903_v11 = vsel %vm133_vm2, %v1898_v4, 0  ;;  %v1983_v13 = vsel %vm133_vm2, %v1978_v5, 0 }
 0xf18   :  { %1866 = vmatpush.bf16.xpose.msrb.mxu3 %v1857_v8  ;;  %1912 = vmatpush.bf16.xpose.msra.mxu0 %v1903_v11 }
 0xf1a   :  { %1836 = vmatpush.bf16.msra.mxu1 %v4957_v59 }
 0xf1e   :  { %1837 = vmatpush.bf16.msra.mxu1 %v4956_v0 }
 0xf1f   :  { %4520 = vmatmul.msk.bf16.vlgmr.msrb.gmra.mxu3 %vm133_vm2, %v5990_v17  ;;  %4521 = vmatmul.msk.bf16.vlgmr.msra.gmra.mxu0 %vm133_vm2, %v5990_v17 }
 0xf20   :  { %1992 = vmatpush.bf16.xpose.msra.mxu3 %v1983_v13  ;;  %v5069_v13 = vld [vmem:[%s6934_s10 + $0x6] ss:$0 sm:$0xff] }
 0xf2f   :  { %4524 = vmatmul.msk.bf16.vlgmr.msra.gmra.mxu3 %vm133_vm2, %v5990_v17 }
 0xf71   :  { %v1398_v28 = vpop.xlane.xlu1 %1397 }
 0xf72   :  { %v1402_v20 = vmul.f32 %v1398_v28, %v5470_v31 }
 0xf74   :  { %v6000_v23 = vsub.f32 %v5958_v22, %v1402_v20  ;;  %v5070_v20 = vld [vmem:[%s6934_s10 + $0x7] ss:$0 sm:$0xff] }
 0xf76   :  { %v1406_v24 = vmul.f32 %v6000_v23, %v6000_v23 }
 0xf78   :  { %v1408_v25 = vsel %vm133_vm2, %v1406_v24, 0.0 }
 0xf79   :  { %1409 = vadd.xlane.f32.xlu0 %v1408_v25  ;;  %v1401_v27 = vpop.xlane.xlu2 %1400 }
 0xf7a   :  { %v1403_v30 = vmul.f32 %v1401_v27, %v5470_v31 }
 0xf7c   :  { %v6007_v33 = vsub.f32 %v5963_v51, %v1403_v30 }
 0xf7e   :  { %v1407_v35 = vmul.f32 %v6007_v33, %v6007_v33 }
 0xf80   :  { %v1411_v38 = vsel %vm133_vm2, %v1407_v35, 0.0 }
 0xf81   :  { %1412 = vadd.xlane.f32.xlu1 %v1411_v38  ;;  %v4947_v38 = vld [vmem:[%s6940_s8 + $0x78] sm:$0xff] }
 0xf82   :  { %1567 = vmatpush.bf16.msra.mxu2 %v4947_v38 }
 0xf9c   :  { %v1914_v10 = vpop.f32.mrf.mxu0 }
 0xf9d   :  { %v6018_v61 = vadd.f32 %v1914_v10, %v6015_v42 }
 0xf9f   :  { %v1919_v63 = vsel %vm410_vm7, %v6018_v61, -inf }
 0xfa0   :  { %1920 = vmax.xlane.f32.xlu2 %v1919_v63 }
 0xfa2   :  { %v1868_v45 = vpop.f32.mrf.mxu3 }
 0xfa3   :  { %v6033_v46 = vadd.f32 %v1868_v45, %v6015_v42  ;;  %v4944_v45 = vld [vmem:[%s6940_s8 + $0x60] sm:$0xff] }
 0xfa4   :  { %v1916_v18 = vpop.f32.mrf.mxu0 }
 0xfa5   :  { %v6028_v44 = vadd.f32 %v1916_v18, %v6025_v29  ;;  %v1873_v47 = vsel %vm410_vm7, %v6033_v46, -inf }
 0xfa7   :  { %v1922_v14 = vsel %vm410_vm7, %v6028_v44, -inf }
 0xfa8   :  { %1923 = vmax.xlane.f32.xlu0 %v1922_v14 }
 0xfaa   :  { %v1870_v49 = vpop.f32.mrf.mxu3 }
 0xfb0   :  { %1874 = vmax.xlane.f32.xlu0 %v1873_v47 }
 0xfb2   :  { %v1994_v48 = vpop.f32.mrf.mxu3 }
 0xfec   :  { %v1410_v50 = vpop.xlane.xlu0 %1409 }
 0xfed   :  { %v1414_v52 = vmul.f32 %v1410_v50, %v5470_v31 }
 0xfef   :  { %v1416_v54 = vadd.f32 1e-05, %v1414_v52  ;;  %v1871_v52 = vadd.f32 %v1870_v49, %v6025_v29 }
 0xff1   :  { %5188 = vrsqrt.f32 %v1416_v54  ;;  %vm1424_vm13 = vweird.f32 %v1416_v54 }
 0xff4   :  { %v1413_v55 = vpop.xlane.xlu1 %1412 }
 0xff5   :  { %v1415_v34 = vmul.f32 %v1413_v55, %v5470_v31  ;;  %v1995_v55 = vadd.f32 %v1994_v48, %v6015_v42 }
 0xff7   :  { %v5189_v56 = vpop.eup %5188  ;;  %v1417_v57 = vadd.f32 1e-05, %v1415_v34  ;;  %v1999_v34 = vsel %vm410_vm7, %v1995_v55, -inf }
 0xff8   :  { %v1419_v12 = vmul.f32 %v5189_v56, %v1416_v54  ;;  %vm1425_vm12 = vweird.f32 %v5189_v56  ;;  %v1876_v54 = vsel %vm410_vm7, %v1871_v52, -inf }
 0xff9   :  { %5190 = vrsqrt.f32 %v1417_v57  ;;  %vm1426_vm14 = vmor %vm1424_vm13, %vm1425_vm12  ;;  %vm1434_vm0 = vweird.f32 %v1417_v57 }
 0xffa   :  { %v1420_v58 = vmul.f32 %v5189_v56, %v1419_v12 }
 0xffc   :  { %v1421_v60 = vmul.f32 0.5, %v1420_v58  ;;  %v5071_v58 = vld [vmem:[%s6938_s7 + $0x1] ss:$0 sm:$0xff] }
 0xffe   :  { %v1422_v62 = vsub.f32 1.5, %v1421_v60 }
 0xfff   :  { %v5191_v2 = vpop.eup %5190 }
0x1000   :  { %v1423_v3 = vmul.f32 %v5189_v56, %v1422_v62  ;;  %v1429_v4 = vmul.f32 %v5191_v2, %v1417_v57  ;;  %vm1435_vm15 = vweird.f32 %v5191_v2  ;;  %v4940_v57 = vld [vmem:[%s6940_s8 + $0x40] sm:$0xff] }
0x1001   :  { %vm1436_vm1 = vmor %vm1434_vm0, %vm1435_vm15 }
0x1002   :  { %v1430_v5 = vmul.f32 %v5191_v2, %v1429_v4  ;;  %v1427_v7 = vsel %vm1426_vm14, %v5189_v56, %v1423_v3  ;;  %v4941_v56 = vld [vmem:[%s6940_s8 + $0x48] sm:$0xff] }
0x1003   :  { %v1438_v15 = vmul.f32 %v1427_v7, %v6000_v23  ;;  %v4946_v23 = vld [vmem:[%s6940_s8 + $0x70] sm:$0xff] }
0x1004   :  { %v1431_v8 = vmul.f32 0.5, %v1430_v5  ;;  %1568 = vmatpush.bf16.msra.mxu2 %v4946_v23 }
0x1005   :  { %v1441_v24 = vmul.f32 %v5069_v13, %v1438_v15  ;;  %v5072_v15 = vld [vmem:[%s6935_s5 + $0xa] ss:$0 sm:$0xff] }
0x1006   :  { %v1432_v11 = vsub.f32 1.5, %v1431_v8 }
0x1007   :  { %v1444_v30 = vadd.f32 %v5070_v20, %v1441_v24 }
0x1008   :  { %v1433_v16 = vmul.f32 %v5191_v2, %v1432_v11 }
0x100a   :  { %v1437_v28 = vsel %vm1436_vm1, %v5191_v2, %v1433_v16 }
0x100b   :  { %v1439_v25 = vmul.f32 %v1437_v28, %v6007_v33  ;;  %v4945_v33 = vld [vmem:[%s6940_s8 + $0x68] sm:$0xff] }
0x100c   :  { %1569 = vmatpush.bf16.msra.mxu2 %v4945_v33 }
0x100d   :  { %v1442_v27 = vmul.f32 %v5069_v13, %v1439_v25 }
0x100f   :  { %v1445_v35 = vadd.f32 %v5070_v20, %v1442_v27 }
0x1010   :  { %1570 = vmatpush.bf16.msra.mxu2 %v4944_v45 }
0x1011   :  { %v1472_v10 = vpack.c.bf16 %v1445_v35, %v1444_v30 }
0x1013   :  { %v1921_v63 = vpop.xlane.xlu2 %1920  ;;  %4436 = vmatmul.msk.bf16.vlgmr.msrb.gmra.mxu1 %vm133_vm2, %v1472_v10 }
0x1014   :  { %v1925_v18 = vsub.f32 %v6018_v61, %v1921_v63  ;;  %1571 = vmatpush.bf16.msra.mxu2 %v4943_v21 }
0x1016   :  { %v1927_v14 = vmul.f32 1.442695, %v1925_v18 }
0x1018   :  { %5192 = vpow2.f32 %v1927_v14 }
0x101b   :  { %v1924_v47 = vpop.xlane.xlu0 %1923 }
0x101c   :  { %v1926_v43 = vsub.f32 %v6028_v44, %v1924_v47 }
0x101e   :  { %v6086_v19 = vpop.eup %5192  ;;  %v1929_v50 = vmul.f32 1.442695, %v1926_v43 }
0x101f   :  { %v1931_v61 = vsel %vm410_vm7, %v6086_v19, 0.0 }
0x1020   :  { %5194 = vpow2.f32 %v1929_v50  ;;  %1932 = vadd.xlane.f32.xlu1 %v1931_v61 }
0x1023   :  { %4519 = vmatmul.msk.bf16.vlgmr.msra.gmra.mxu1 %vm133_vm2, %v5948_v26  ;;  %v4942_v26 = vld [vmem:[%s6940_s8 + $0x50] sm:$0xff] }
0x1024   :  { %1572 = vmatpush.bf16.msra.mxu2 %v4942_v26 }
0x1026   :  { %v5195_v53 = vpop.eup %5194 }
0x1027   :  { %v1934_v44 = vsel %vm410_vm7, %v5195_v53, 0.0 }
0x1028   :  { %1877 = vmax.xlane.f32.xlu1 %v1876_v54  ;;  %1935 = vadd.xlane.f32.xlu2 %v1934_v44 }
0x1029   :  { %1573 = vmatpush.bf16.msra.mxu2 %v4941_v56 }
0x102d   :  { %1574 = vmatpush.bf16.msra.mxu2 %v4940_v57 }
0x1030   :  { %2000 = vmax.xlane.f32.xlu1 %v1999_v34 }
0x1090   :  { %v1510_v12 = vpop.f32.mrf.mxu1 }
0x1091   :  { %v1511_v60 = vadd.f32 %v5071_v58, %v1510_v12 }
0x1093   :  { %v1933_v59 = vpop.xlane.xlu1 %1932  ;;  %v1515_v2 = vmax.f32 %v1511_v60, 0.0 }
0x1098   :  { %v1512_v62 = vpop.f32.mrf.mxu1 }
0x1099   :  { %v1513_v0 = vadd.f32 %v5071_v58, %v1512_v62 }
0x109b   :  { %v1516_v3 = vmax.f32 %v1513_v0, 0.0  ;;  %v1878_v4 = vpop.xlane.xlu1 %1877  ;;  %v1936_v11 = vpop.xlane.xlu2 %1935 }
0x109c   :  { %v1880_v5 = vsub.f32 %v1871_v52, %v1878_v4  ;;  %v1996_v0 = vpop.f32.mrf.mxu3 }
0x109d   :  { %v1517_v7 = vpack.c.bf16 %v1516_v3, %v1515_v2  ;;  %v1997_v2 = vadd.f32 %v1996_v0, %v6025_v29  ;;  %v4961_v0 = vld [vmem:[%s6936_s4 + $0x168] sm:$0xff] }
0x109e   :  { %v1883_v8 = vmul.f32 1.442695, %v1880_v5 }
0x109f   :  { %1575 = vmatmul.bf16.vlgmr.msra.gmra.mxu2 %v1517_v7  ;;  %v2002_v7 = vsel %vm410_vm7, %v1997_v2, -inf }
0x10a0   :  { %5196 = vpow2.f32 %v1883_v8  ;;  %v1839_v13 = vpop.f32.mrf.mxu1 }
0x10a1   :  { %5198 = vrcp.f32 %v1936_v11  ;;  %v1840_v24 = vadd.f32 %v5072_v15, %v1839_v13 }
0x10a2   :  { %5200 = vrcp.f32 %v1933_v59 }
0x10a3   :  { %v2001_v16 = vpop.xlane.xlu1 %2000  ;;  %v1850_v10 = vmul.f32 %v5558_v37, %v1840_v24  ;;  %v1899_v23 = vmul.f32 %v5561_v39, %v1840_v24  ;;  %v1979_v63 = vmul.f32 %v5567_v41, %v1840_v24  ;;  %v2044_v18 = vmul.f32 %v5564_v40, %v1840_v24 }
0x10a4   :  { %v2005_v28 = vsub.f32 %v1995_v55, %v2001_v16 }
0x10a6   :  { %v6115_v20 = vpop.eup %5196  ;;  %v2007_v25 = vmul.f32 1.442695, %v2005_v28 }
0x10a7   :  { %v1888_v27 = vsel %vm410_vm7, %v6115_v20, 0.0  ;;  %v5199_v35 = vpop.eup %5198 }
0x10a8   :  { %5202 = vpow2.f32 %v2007_v25  ;;  %1889 = vadd.xlane.f32.xlu1 %v1888_v27  ;;  %v1841_v30 = vpop.f32.mrf.mxu1  ;;  %v5201_v14 = vpop.eup %5200  ;;  %v1940_v49 = vmul.f32 %v5199_v35, %v5195_v53  ;;  %v2048_v53 = vsel %vm133_vm2, %v2043_v6, 0 }
0x10a9   :  { %v1842_v38 = vadd.f32 %v5072_v15, %v1841_v30  ;;  %v1939_v48 = vmul.f32 %v5201_v14, %v6086_v19  ;;  %v5073_v19 = vld [vmem:[%s6941_s9 + $0x1] ss:$0 sm:$0xff] }
0x10ab   :  { %v1900_v33 = vmul.f32 %v5561_v39, %v1842_v38  ;;  %v1851_v45 = vmul.f32 %v5558_v37, %v1842_v38  ;;  %v1980_v47 = vmul.f32 %v5567_v41, %v1842_v38  ;;  %v2045_v43 = vmul.f32 %v5564_v40, %v1842_v38 }
0x10ac   :  { %v1941_v34 = vpack.c.bf16 %v1940_v49, %v1939_v48 }
0x10ad   :  { %v1901_v50 = vpack.c.bf16 %v1900_v33, %v1899_v23  ;;  %v1852_v61 = vpack.c.bf16 %v1851_v45, %v1850_v10  ;;  %v1981_v52 = vpack.c.bf16 %v1980_v47, %v1979_v63  ;;  %v2046_v54 = vpack.c.bf16 %v2045_v43, %v2044_v18 }
0x10ae   :  { %v6127_v44 = vpop.eup %5202 }
0x10af   :  { %1952 = vmatpush.bf16.msrb.mxu1 %v1901_v50  ;;  %1969 = vmatpush.bf16.msrb.mxu2 %v1852_v61  ;;  %v2011_v55 = vsel %vm410_vm7, %v6127_v44, 0.0 }
0x10b0   :  { %2032 = vmatpush.bf16.msrb.mxu0 %v1981_v52  ;;  %2012 = vadd.xlane.f32.xlu1 %v2011_v55 }
0x10b2   :  { %4522 = vmatmul.msk.bf16.vlgmr.msrb.gmra.mxu1 %vm410_vm7, %v1941_v34 }
0x10b3   :  { %2057 = vmatpush.bf16.xpose.msra.mxu1 %v2048_v53  ;;  %2097 = vmatpush.bf16.msra.mxu2 %v2046_v54 }
0x10c2   :  { %4526 = vmatmul.msk.bf16.vlgmr.msra.gmra.mxu1 %vm133_vm2, %v5990_v17  ;;  %v1875_v17 = vpop.xlane.xlu0 %1874 }
0x10c3   :  { %v1879_v60 = vsub.f32 %v6033_v46, %v1875_v17 }
0x111b   :  { %v1890_v30 = vpop.xlane.xlu1 %1889 }
0x1122   :  { %v1576_v21 = vpop.f32.mrf.mxu2 }
0x1123   :  { %v1577_v26 = vadd.f32 %v5073_v19, %v1576_v21  ;;  %v2013_v52 = vpop.xlane.xlu1 %2012 }
0x1125   :  { %v1581_v43 = vadd.f32 %v1577_v26, %v5958_v22 }
0x1127   :  { %v1585_v50 = vsel %vm133_vm2, %v1581_v43, 0.0 }
0x112a   :  { %v1578_v56 = vpop.f32.mrf.mxu2 }
0x112b   :  { %v1579_v57 = vadd.f32 %v5073_v19, %v1578_v56 }
0x112d   :  { %v6143_v12 = vadd.f32 %v1579_v57, %v5963_v51  ;;  %v1881_v51 = vmul.f32 1.442695, %v1879_v60 }
0x112f   :  { %v6145_v36 = vpop.f32.mrf.mxu1  ;;  %v1588_v1 = vsel %vm133_vm2, %v6143_v12, 0.0  ;;  %5204 = vpow2.f32 %v1881_v51  ;;  %v4960_v51 = vld [vmem:[%s6936_s4 + $0x160] sm:$0xff] }
0x1130   :  { %1589 = vadd.xlane.f32.xlu1 %v1588_v1 }
0x1137   :  { %v6149_v6 = vpop.f32.mrf.mxu1 }
0x113f   :  { %v2059_v58 = vpop.f32.mrf.mxu1 }
0x1140   :  { %v2060_v59 = vadd.f32 %v2059_v58, %v6015_v42  ;;  %v5205_v42 = vpop.eup %5204 }
0x1141   :  { %v1885_v46 = vsel %vm410_vm7, %v5205_v42, 0.0 }
0x1142   :  { %v2064_v62 = vsel %vm410_vm7, %v2060_v59, -inf }
0x1143   :  { %2065 = vmax.xlane.f32.xlu2 %v2064_v62  ;;  %v4962_v62 = vld [vmem:[%s6936_s4 + $0x170] sm:$0xff] }
0x1147   :  { %v2061_v3 = vpop.f32.mrf.mxu1 }
0x1148   :  { %v2062_v4 = vadd.f32 %v2061_v3, %v6025_v29 }
0x114a   :  { %v2067_v5 = vsel %vm410_vm7, %v2062_v4, -inf }
0x114b   :  { %2068 = vmax.xlane.f32.xlu0 %v2067_v5  ;;  %2003 = vmax.xlane.f32.xlu2 %v2002_v7 }
0x1153   :  { %1886 = vadd.xlane.f32.xlu0 %v1885_v46 }
0x11b6   :  { %v2066_v8 = vpop.xlane.xlu2 %2065 }
0x11b7   :  { %v2070_v11 = vsub.f32 %v2060_v59, %v2066_v8 }
0x11b9   :  { %v2072_v13 = vmul.f32 1.442695, %v2070_v11 }
0x11bb   :  { %5206 = vpow2.f32 %v2072_v13 }
0x11be   :  { %v2004_v15 = vpop.xlane.xlu2 %2003  ;;  %v2069_v16 = vpop.xlane.xlu0 %2068 }
0x11bf   :  { %v2006_v28 = vsub.f32 %v1997_v2, %v2004_v15  ;;  %v2071_v24 = vsub.f32 %v2062_v4, %v2069_v16 }
0x11c1   :  { %v5207_v29 = vpop.eup %5206  ;;  %v2009_v25 = vmul.f32 1.442695, %v2006_v28  ;;  %v2074_v27 = vmul.f32 1.442695, %v2071_v24  ;;  %v5076_v24 = vld [vmem:[%s6935_s5 + $0xb] ss:$0 sm:$0xff] }
0x11c2   :  { %v2076_v35 = vsel %vm410_vm7, %v5207_v29, 0.0 }
0x11c3   :  { %5208 = vpow2.f32 %v2009_v25  ;;  %2077 = vadd.xlane.f32.xlu2 %v2076_v35 }
0x11c4   :  { %5210 = vpow2.f32 %v2074_v27 }
0x11c5   :  { %5212 = vrcp.f32 %v1890_v30 }
0x11c6   :  { %v1887_v38 = vpop.xlane.xlu0 %1886 }
0x11c7   :  { %5214 = vrcp.f32 %v1887_v38 }
0x11c8   :  { %5216 = vrcp.f32 %v2013_v52 }
0x11c9   :  { %v5209_v10 = vpop.eup %5208 }
0x11ca   :  { %v5211_v23 = vpop.eup %5210  ;;  %v2014_v63 = vsel %vm410_vm7, %v5209_v10, 0.0 }
0x11cb   :  { %v5213_v18 = vpop.eup %5212  ;;  %2015 = vadd.xlane.f32.xlu2 %v2014_v63  ;;  %v2079_v14 = vsel %vm410_vm7, %v5211_v23, 0.0 }
0x11cc   :  { %2080 = vadd.xlane.f32.xlu0 %v2079_v14  ;;  %v1894_v45 = vmul.f32 %v5213_v18, %v6115_v20 }
0x11cd   :  { %v5215_v33 = vpop.eup %5214 }
0x11ce   :  { %v1893_v47 = vmul.f32 %v5215_v33, %v5205_v42  ;;  %v5217_v55 = vpop.eup %5216  ;;  %v4971_v33 = vld [vmem:[%s6936_s4 + $0x1b8] sm:$0xff] }
0x11cf   :  { %v2019_v22 = vmul.f32 %v5217_v55, %v6127_v44  ;;  %v4963_v44 = vld [vmem:[%s6936_s4 + $0x178] sm:$0xff]  ;;  %2315 = vmatpush.bf16.msrb.mxu1 %v4971_v33  ;;  %v4972_v55 = vld [vmem:[%s6936_s4 + $0x1c0] sm:$0xff] }
0x11d0   :  { %v1895_v49 = vpack.c.bf16 %v1894_v45, %v1893_v47  ;;  %2139 = vmatpush.bf16.msrb.mxu3 %v4963_v44  ;;  %v4975_v45 = vld [vmem:[%s6936_s4 + $0x1d8] sm:$0xff]  ;;  %v4970_v47 = vld [vmem:[%s6936_s4 + $0x1b0] sm:$0xff] }
0x11d2   :  { %4523 = vmatmul.msk.bf16.vlgmr.msrb.gmra.mxu2 %vm410_vm7, %v1895_v49  ;;  %v4969_v49 = vld [vmem:[%s6936_s4 + $0x1a8] sm:$0xff] }
0x11d3   :  { %2354 = vmatpush.bf16.msrb.mxu2 %v4975_v45  ;;  %2316 = vmatpush.bf16.msrb.mxu1 %v4970_v47 }
0x11d4   :  { %1586 = vadd.xlane.f32.xlu0 %v1585_v50  ;;  %2140 = vmatpush.bf16.msrb.mxu3 %v4962_v62  ;;  %v4973_v50 = vld [vmem:[%s6936_s4 + $0x1c8] sm:$0xff] }
0x11d7   :  { %2317 = vmatpush.bf16.msrb.mxu1 %v4969_v49 }
0x11d8   :  { %2141 = vmatpush.bf16.msrb.mxu3 %v4961_v0 }
0x11dc   :  { %2142 = vmatpush.bf16.msrb.mxu3 %v4960_v51 }
0x1236   :  { %v2078_v61 = vpop.xlane.xlu2 %2077 }
0x1237   :  { %5218 = vrcp.f32 %v2078_v61 }
0x123d   :  { %v5219_v34 = vpop.eup %5218 }
0x123e   :  { %v2016_v54 = vpop.xlane.xlu2 %2015  ;;  %v2084_v21 = vmul.f32 %v5219_v34, %v5207_v29  ;;  %v1590_v29 = vpop.xlane.xlu1 %1589 }
0x123f   :  { %5220 = vrcp.f32 %v2016_v54  ;;  %v2081_v48 = vpop.xlane.xlu0 %2080  ;;  %v1592_v27 = vmul.f32 %v1590_v29, %v5470_v31 }
0x1240   :  { %5222 = vrcp.f32 %v2081_v48  ;;  %v4968_v48 = vld [vmem:[%s6936_s4 + $0x1a0] sm:$0xff] }
0x1241   :  { %2318 = vmatpush.bf16.msrb.mxu1 %v4968_v48  ;;  %v5077_v48 = vld [vmem:[%s6934_s10 + $0xc] ss:$0 sm:$0xff] }
0x1245   :  { %v5221_v20 = vpop.eup %5220 }
0x1246   :  { %v5223_v53 = vpop.eup %5222  ;;  %v2020_v19 = vmul.f32 %v5221_v20, %v5209_v10 }
0x1247   :  { %v2085_v26 = vmul.f32 %v5223_v53, %v5211_v23  ;;  %v1587_v56 = vpop.xlane.xlu0 %1586 }
0x1248   :  { %v2021_v57 = vpack.c.bf16 %v2020_v19, %v2019_v22  ;;  %v1591_v1 = vmul.f32 %v1587_v56, %v5470_v31 }
0x1249   :  { %v2086_v17 = vpack.c.bf16 %v2085_v26, %v2084_v21 }
0x124a   :  { %v6168_v58 = vsub.f32 %v1581_v43, %v1591_v1  ;;  %4525 = vmatmul.msk.bf16.vlgmr.msrb.gmra.mxu0 %vm410_vm7, %v2021_v57  ;;  %v4974_v43 = vld [vmem:[%s6936_s4 + $0x1d0] sm:$0xff] }
0x124b   :  { %4527 = vmatmul.msk.bf16.vlgmr.msra.gmra.mxu2 %vm410_vm7, %v2086_v17 }
0x124c   :  { %v1595_v59 = vmul.f32 %v6168_v58, %v6168_v58  ;;  %2355 = vmatpush.bf16.msrb.mxu2 %v4974_v43 }
0x124e   :  { %v1597_v60 = vsel %vm133_vm2, %v1595_v59, 0.0 }
0x124f   :  { %1598 = vadd.xlane.f32.xlu1 %v1597_v60 }
0x1250   :  { %2356 = vmatpush.bf16.msrb.mxu2 %v4973_v50 }
0x1254   :  { %2357 = vmatpush.bf16.msrb.mxu2 %v4972_v55 }
0x1255   :  { %v1971_v2 = vpop.f32.mrf.mxu2 }
0x1256   :  { %v1972_v42 = vadd.f32 %v1971_v2, %v6145_v36 }
0x125d   :  { %v1973_v3 = vpop.f32.mrf.mxu2 }
0x125e   :  { %v1974_v46 = vadd.f32 %v1973_v3, %v6149_v6  ;;  %v6198_v6 = vsub.f32 %v6143_v12, %v1592_v27  ;;  %v4966_v27 = vld [vmem:[%s6936_s4 + $0x190] sm:$0xff] }
0x1260   :  { %v1596_v23 = vmul.f32 %v6198_v6, %v6198_v6 }
0x12c2   :  { %v1599_v12 = vpop.xlane.xlu1 %1598 }
0x12c3   :  { %v1603_v14 = vmul.f32 %v1599_v12, %v5470_v31 }
0x12c7   :  { %v2034_v4 = vpop.f32.mrf.mxu0 }
0x12c8   :  { %v2039_v8 = vadd.f32 %v2034_v4, %v1972_v42  ;;  %v5074_v42 = vld [vmem:[%s6934_s10 + $0x8] ss:$0 sm:$0xff] }
0x12ce   :  { %v2099_v5 = vpop.f32.mrf.mxu2 }
0x12cf   :  { %v2036_v7 = vpop.f32.mrf.mxu0  ;;  %v2104_v15 = vadd.f32 %v2099_v5, %v2039_v8 }
0x12d0   :  { %v2040_v11 = vadd.f32 %v2036_v7, %v1974_v46 }
0x12d6   :  { %v2101_v13 = vpop.f32.mrf.mxu2 }
0x12d7   :  { %v2105_v16 = vadd.f32 %v2101_v13, %v2040_v11  ;;  %v5075_v13 = vld [vmem:[%s6934_s10 + $0x9] ss:$0 sm:$0xff] }
0x12d9   :  { %v2106_v28 = vpack.c.bf16 %v2105_v16, %v2104_v15 }
0x12db   :  { %4544 = vmatmul.msk.bf16.vlgmr.msrb.gmra.mxu3 %vm133_vm2, %v2106_v28 }
0x135e   :  { %v2144_v25 = vpop.f32.mrf.mxu3 }
0x135f   :  { %v2145_v30 = vadd.f32 %v5076_v24, %v2144_v25 }
0x1361   :  { %v6195_v36 = vadd.f32 %v2145_v30, %v5877_v9  ;;  %v1600_v9 = vsel %vm133_vm2, %v1596_v23, 0.0  ;;  %v4965_v30 = vld [vmem:[%s6936_s4 + $0x188] sm:$0xff] }
0x1363   :  { %v2153_v35 = vsel %vm133_vm2, %v6195_v36, 0.0 }
0x1364   :  { %2154 = vadd.xlane.f32.xlu2 %v2153_v35 }
0x1366   :  { %v2146_v38 = vpop.f32.mrf.mxu3 }
0x1367   :  { %v2147_v10 = vadd.f32 %v5076_v24, %v2146_v38  ;;  %v4964_v38 = vld [vmem:[%s6936_s4 + $0x180] sm:$0xff] }
0x1369   :  { %v6205_v63 = vadd.f32 %v2147_v10, %v5851_v32  ;;  %v1605_v32 = vadd.f32 1e-05, %v1603_v14 }
0x136b   :  { %v2156_v18 = vsel %vm133_vm2, %v6205_v63, 0.0  ;;  %5224 = vrsqrt.f32 %v1605_v32  ;;  %vm1613_vm4 = vweird.f32 %v1605_v32 }
0x136c   :  { %2157 = vadd.xlane.f32.xlu0 %v2156_v18  ;;  %1601 = vadd.xlane.f32.xlu2 %v1600_v9 }
0x1371   :  { %v5225_v52 = vpop.eup %5224 }
0x1372   :  { %v1608_v20 = vmul.f32 %v5225_v52, %v1605_v32  ;;  %vm1614_vm3 = vweird.f32 %v5225_v52 }
0x1373   :  { %vm1615_vm5 = vmor %vm1613_vm4, %vm1614_vm3 }
0x1374   :  { %v1609_v19 = vmul.f32 %v5225_v52, %v1608_v20 }
0x1376   :  { %v1610_v59 = vmul.f32 0.5, %v1609_v19 }
0x1378   :  { %v1611_v62 = vsub.f32 1.5, %v1610_v59 }
0x137a   :  { %v1612_v51 = vmul.f32 %v5225_v52, %v1611_v62 }
0x137c   :  { %v1616_v4 = vsel %vm1615_vm5, %v5225_v52, %v1612_v51 }
0x137d   :  { %v1627_v46 = vmul.f32 %v1616_v4, %v6168_v58  ;;  %v4967_v58 = vld [vmem:[%s6936_s4 + $0x198] sm:$0xff] }
0x137e   :  { %2273 = vmatpush.bf16.msra.mxu0 %v4967_v58 }
0x137f   :  { %v1630_v15 = vmul.f32 %v5074_v42, %v1627_v46 }
0x1381   :  { %v1633_v24 = vadd.f32 %v5075_v13, %v1630_v15 }
0x1382   :  { %2274 = vmatpush.bf16.msra.mxu0 %v4966_v27 }
0x1386   :  { %2275 = vmatpush.bf16.msra.mxu0 %v4965_v30 }
0x138a   :  { %2276 = vmatpush.bf16.msra.mxu0 %v4964_v38 }
0x13d7   :  { %v2155_v61 = vpop.xlane.xlu2 %2154 }
0x13d8   :  { %v2159_v54 = vmul.f32 %v2155_v61, %v5470_v31 }
0x13da   :  { %v6237_v34 = vsub.f32 %v6195_v36, %v2159_v54 }
0x13dc   :  { %v2163_v53 = vmul.f32 %v6237_v34, %v6237_v34 }
0x13de   :  { %v2165_v22 = vsel %vm133_vm2, %v2163_v53, 0.0 }
0x13df   :  { %2166 = vadd.xlane.f32.xlu0 %v2165_v22  ;;  %v1602_v21 = vpop.xlane.xlu2 %1601  ;;  %v2158_v26 = vpop.xlane.xlu0 %2157  ;;  %v5078_v22 = vld [vmem:[%s6934_s10 + $0xd] ss:$0 sm:$0xff] }
0x13e0   :  { %v1604_v56 = vmul.f32 %v1602_v21, %v5470_v31  ;;  %v2160_v57 = vmul.f32 %v2158_v26, %v5470_v31 }
0x13e2   :  { %v1606_v1 = vadd.f32 1e-05, %v1604_v56  ;;  %v6245_v17 = vsub.f32 %v6205_v63, %v2160_v57 }
0x13e4   :  { %5226 = vrsqrt.f32 %v1606_v1  ;;  %v2164_v60 = vmul.f32 %v6245_v17, %v6245_v17  ;;  %vm1623_vm8 = vweird.f32 %v1606_v1 }
0x13e6   :  { %v2168_v44 = vsel %vm133_vm2, %v2164_v60, 0.0  ;;  %v5080_v60 = vld [vmem:[%s6935_s5 + $0xe] ss:$0 sm:$0xff] }
0x13e7   :  { %2169 = vadd.xlane.f32.xlu1 %v2168_v44 }
0x13ea   :  { %v5227_v0 = vpop.eup %5226 }
0x13eb   :  { %v1618_v2 = vmul.f32 %v5227_v0, %v1606_v1  ;;  %vm1624_vm6 = vweird.f32 %v5227_v0 }
0x13ec   :  { %vm1625_vm9 = vmor %vm1623_vm8, %vm1624_vm6 }
0x13ed   :  { %v1619_v3 = vmul.f32 %v5227_v0, %v1618_v2 }
0x13ef   :  { %v1620_v5 = vmul.f32 0.5, %v1619_v3 }
0x13f1   :  { %v1621_v7 = vsub.f32 1.5, %v1620_v5 }
0x13f3   :  { %v1622_v8 = vmul.f32 %v5227_v0, %v1621_v7 }
0x13f5   :  { %v1626_v11 = vsel %vm1625_vm9, %v5227_v0, %v1622_v8 }
0x13f6   :  { %v1628_v16 = vmul.f32 %v1626_v11, %v6198_v6 }
0x13f8   :  { %v1631_v28 = vmul.f32 %v5074_v42, %v1628_v16 }
0x13fa   :  { %v1634_v29 = vadd.f32 %v5075_v13, %v1631_v28 }
0x13fc   :  { %v6258_v25 = vpack.c.bf16 %v1634_v29, %v1633_v24 }
0x13fe   :  { %4578 = vmatmul.msk.bf16.vlgmr.msrb.gmra.mxu1 %vm133_vm2, %v6258_v25  ;;  %4595 = vmatmul.msk.bf16.vlgmr.msrb.gmra.mxu2 %vm133_vm2, %v6258_v25 }
0x1452   :  { %v2167_v6 = vpop.xlane.xlu0 %2166 }
0x1453   :  { %v2171_v35 = vmul.f32 %v2167_v6, %v5470_v31 }
0x1455   :  { %v2173_v10 = vadd.f32 1e-05, %v2171_v35 }
0x1457   :  { %5228 = vrsqrt.f32 %v2173_v10  ;;  %vm2181_vm11 = vweird.f32 %v2173_v10 }
0x145a   :  { %v2170_v23 = vpop.xlane.xlu1 %2169 }
0x145b   :  { %v2172_v18 = vmul.f32 %v2170_v23, %v5470_v31 }
0x145d   :  { %v5229_v9 = vpop.eup %5228  ;;  %v2174_v12 = vadd.f32 1e-05, %v2172_v18 }
0x145e   :  { %v2176_v14 = vmul.f32 %v5229_v9, %v2173_v10  ;;  %vm2182_vm10 = vweird.f32 %v5229_v9 }
0x145f   :  { %5230 = vrsqrt.f32 %v2174_v12  ;;  %vm2183_vm12 = vmor %vm2181_vm11, %vm2182_vm10  ;;  %vm2191_vm14 = vweird.f32 %v2174_v12 }
0x1460   :  { %v2177_v33 = vmul.f32 %v5229_v9, %v2176_v14 }
0x1462   :  { %v2178_v45 = vmul.f32 0.5, %v2177_v33 }
0x1464   :  { %v2179_v32 = vsub.f32 1.5, %v2178_v45 }
0x1465   :  { %v5231_v47 = vpop.eup %5230 }
0x1466   :  { %v2180_v43 = vmul.f32 %v5229_v9, %v2179_v32  ;;  %v2186_v49 = vmul.f32 %v5231_v47, %v2174_v12  ;;  %vm2192_vm13 = vweird.f32 %v5231_v47 }
0x1467   :  { %vm2193_vm15 = vmor %vm2191_vm14, %vm2192_vm13 }
0x1468   :  { %v2187_v50 = vmul.f32 %v5231_v47, %v2186_v49  ;;  %v2184_v61 = vsel %vm2183_vm12, %v5229_v9, %v2180_v43  ;;  %v5081_v43 = vld [vmem:[%s6935_s5 + $0xc] ss:$0 sm:$0xff] }
0x1469   :  { %v2195_v55 = vmul.f32 %v2184_v61, %v6237_v34  ;;  %v5079_v34 = vld [vmem:[%s6935_s5 + $0xd] ss:$0 sm:$0xff] }
0x146a   :  { %v2188_v52 = vmul.f32 0.5, %v2187_v50 }
0x146b   :  { %v2198_v19 = vmul.f32 %v5077_v48, %v2195_v55  ;;  %v6327_v55 = vld [vmem:[%s6937_s1 + $0x20] sm:$0xff] }
0x146c   :  { %v2189_v54 = vsub.f32 1.5, %v2188_v52 }
0x146d   :  { %v2201_v56 = vadd.f32 %v5078_v22, %v2198_v19  ;;  %v6334_v19 = vld [vmem:[%s6937_s1 + $0x28] sm:$0xff] }
0x146e   :  { %v2190_v20 = vmul.f32 %v5231_v47, %v2189_v54 }
0x1470   :  { %v2194_v53 = vsel %vm2193_vm15, %v5231_v47, %v2190_v20 }
0x1471   :  { %v2196_v21 = vmul.f32 %v2194_v53, %v6245_v17 }
0x1473   :  { %v2199_v26 = vmul.f32 %v5077_v48, %v2196_v21 }
0x1475   :  { %v2202_v57 = vadd.f32 %v5078_v22, %v2199_v26 }
0x1477   :  { %v2239_v1 = vpack.c.bf16 %v2202_v57, %v2201_v56 }
0x1479   :  { %4561 = vmatmul.msk.bf16.vlgmr.msra.gmra.mxu0 %vm133_vm2, %v2239_v1 }
0x147b   :  { %v2320_v59 = vpop.f32.mrf.mxu1 }
0x147c   :  { %v2321_v62 = vadd.f32 %v5079_v34, %v2320_v59 }
0x147e   :  { %v2367_v2 = vmul.f32 %v5558_v37, %v2321_v62  ;;  %v2416_v3 = vmul.f32 %v5561_v39, %v2321_v62  ;;  %v2496_v4 = vmul.f32 %v5567_v41, %v2321_v62  ;;  %v2561_v8 = vmul.f32 %v5564_v40, %v2321_v62 }
0x1481   :  { %v2359_v44 = vpop.f32.mrf.mxu2 }
0x1482   :  { %v2360_v51 = vadd.f32 %v5080_v60, %v2359_v44 }
0x1483   :  { %v2322_v0 = vpop.f32.mrf.mxu1 }
0x1484   :  { %v2323_v17 = vadd.f32 %v5079_v34, %v2322_v0  ;;  %v2370_v11 = vmul.f32 %v5558_v37, %v2360_v51  ;;  %v2419_v24 = vmul.f32 %v5561_v39, %v2360_v51  ;;  %v2499_v29 = vmul.f32 %v5567_v41, %v2360_v51 }
0x1485   :  { %v2564_v58 = vmul.f32 %v5564_v40, %v2360_v51 }
0x1486   :  { %v2368_v5 = vmul.f32 %v5558_v37, %v2323_v17  ;;  %v2417_v7 = vmul.f32 %v5561_v39, %v2323_v17  ;;  %v2497_v42 = vmul.f32 %v5567_v41, %v2323_v17  ;;  %v2562_v46 = vmul.f32 %v5564_v40, %v2323_v17 }
0x1488   :  { %v2369_v15 = vpack.c.bf16 %v2368_v5, %v2367_v2  ;;  %v2418_v16 = vpack.c.bf16 %v2417_v7, %v2416_v3  ;;  %v2498_v28 = vpack.c.bf16 %v2497_v42, %v2496_v4  ;;  %v2563_v38 = vpack.c.bf16 %v2562_v46, %v2561_v8 }
0x1489   :  { %v2361_v13 = vpop.f32.mrf.mxu2 }
0x148a   :  { %v2362_v27 = vadd.f32 %v5080_v60, %v2361_v13  ;;  %v2377_v30 = vsel %vm133_vm2, %v2369_v15, 0  ;;  %v2423_v6 = vsel %vm133_vm2, %v2418_v16, 0  ;;  %v2503_v35 = vsel %vm133_vm2, %v2498_v28, 0 }
0x148b   :  { %2386 = vmatpush.bf16.xpose.msra.mxu3 %v2377_v30  ;;  %2432 = vmatpush.bf16.xpose.msrb.mxu0 %v2423_v6  ;;  %v2568_v32 = vsel %vm133_vm2, %v2563_v38, 0 }
0x148c   :  { %v2371_v10 = vmul.f32 %v5558_v37, %v2362_v27  ;;  %v2420_v23 = vmul.f32 %v5561_v39, %v2362_v27  ;;  %v2500_v18 = vmul.f32 %v5567_v41, %v2362_v27  ;;  %v2565_v9 = vmul.f32 %v5564_v40, %v2362_v27 }
0x148e   :  { %v2421_v12 = vpack.c.bf16 %v2420_v23, %v2419_v24  ;;  %v2372_v14 = vpack.c.bf16 %v2371_v10, %v2370_v11  ;;  %v2501_v33 = vpack.c.bf16 %v2500_v18, %v2499_v29  ;;  %v2566_v45 = vpack.c.bf16 %v2565_v9, %v2564_v58 }
0x1490   :  { %2472 = vmatpush.bf16.msra.mxu1 %v2421_v12  ;;  %2489 = vmatpush.bf16.msra.mxu2 %v2372_v14 }
0x1493   :  { %2512 = vmatpush.bf16.xpose.msrb.mxu3 %v2503_v35  ;;  %2552 = vmatpush.bf16.msra.mxu0 %v2501_v33 }
0x1494   :  { %2577 = vmatpush.bf16.xpose.msrb.mxu1 %v2568_v32  ;;  %2617 = vmatpush.bf16.msrb.mxu2 %v2566_v45 }
0x14f6   :  { %v2278_v47 = vpop.f32.mrf.mxu0 }
0x14f7   :  { %v2279_v49 = vadd.f32 %v5081_v43, %v2278_v47 }
0x14f9   :  { %v2364_v52 = vmul.f32 0.25, %v2279_v49 }
0x14fe   :  { %v2280_v50 = vpop.f32.mrf.mxu0 }
0x14ff   :  { %v2281_v61 = vadd.f32 %v5081_v43, %v2280_v50 }
0x1501   :  { %v2365_v54 = vmul.f32 0.25, %v2281_v61 }
0x1503   :  { %v6316_v48 = vpack.c.bf16 %v2365_v54, %v2364_v52 }
0x1505   :  { %4596 = vmatmul.msk.bf16.vlgmr.msra.gmra.mxu3 %vm133_vm2, %v6316_v48  ;;  %4597 = vmatmul.msk.bf16.vlgmr.msrb.gmra.mxu0 %vm133_vm2, %v6316_v48 }
0x1515   :  { %4600 = vmatmul.msk.bf16.vlgmr.msrb.gmra.mxu3 %vm133_vm2, %v6316_v48 }
0x1582   :  { %v2434_v20 = vpop.f32.mrf.mxu0 }
0x1583   :  { %v2435_v53 = vadd.f32 %v2434_v20, %v6327_v55 }
0x1585   :  { %v2439_v22 = vsel %vm410_vm7, %v2435_v53, -inf }
0x1586   :  { %2440 = vmax.xlane.f32.xlu2 %v2439_v22 }
0x1588   :  { %v2388_v57 = vpop.f32.mrf.mxu3 }
0x1589   :  { %v2389_v1 = vadd.f32 %v2388_v57, %v6327_v55 }
0x158a   :  { %v2436_v21 = vpop.f32.mrf.mxu0 }
0x158b   :  { %v2437_v26 = vadd.f32 %v2436_v21, %v6334_v19  ;;  %v2393_v59 = vsel %vm410_vm7, %v2389_v1, -inf }
0x158d   :  { %v2442_v56 = vsel %vm410_vm7, %v2437_v26, -inf }
0x158e   :  { %2443 = vmax.xlane.f32.xlu0 %v2442_v56 }
0x1590   :  { %v2390_v17 = vpop.f32.mrf.mxu3 }
0x1591   :  { %v2391_v4 = vadd.f32 %v2390_v17, %v6334_v19 }
0x1593   :  { %v2396_v42 = vsel %vm410_vm7, %v2391_v4, -inf }
0x1596   :  { %2394 = vmax.xlane.f32.xlu0 %v2393_v59 }
0x1598   :  { %v2514_v46 = vpop.f32.mrf.mxu3 }
0x1599   :  { %v2515_v8 = vadd.f32 %v2514_v46, %v6327_v55 }
0x159b   :  { %v2519_v11 = vsel %vm410_vm7, %v2515_v8, -inf }
0x15a0   :  { %v2516_v50 = vpop.f32.mrf.mxu3 }
0x15a1   :  { %v2517_v52 = vadd.f32 %v2516_v50, %v6334_v19 }
0x15f9   :  { %v2441_v34 = vpop.xlane.xlu2 %2440 }
0x15fa   :  { %v2445_v60 = vsub.f32 %v2435_v53, %v2441_v34 }
0x15fc   :  { %v2447_v44 = vmul.f32 1.442695, %v2445_v60 }
0x15fe   :  { %5232 = vpow2.f32 %v2447_v44 }
0x1601   :  { %v2444_v62 = vpop.xlane.xlu0 %2443 }
0x1602   :  { %v2446_v0 = vsub.f32 %v2437_v26, %v2444_v62 }
0x1604   :  { %v5233_v51 = vpop.eup %5232  ;;  %v2449_v2 = vmul.f32 1.442695, %v2446_v0 }
0x1605   :  { %v2451_v3 = vsel %vm410_vm7, %v5233_v51, 0.0 }
0x1606   :  { %5234 = vpow2.f32 %v2449_v2  ;;  %2452 = vadd.xlane.f32.xlu1 %v2451_v3 }
0x1609   :  { %v2395_v45 = vpop.xlane.xlu0 %2394 }
0x160a   :  { %v2399_v43 = vsub.f32 %v2389_v1, %v2395_v45 }
0x160c   :  { %v5235_v5 = vpop.eup %5234  ;;  %v2401_v61 = vmul.f32 1.442695, %v2399_v43 }
0x160d   :  { %v2454_v7 = vsel %vm410_vm7, %v5235_v5, 0.0 }
0x160e   :  { %2455 = vadd.xlane.f32.xlu2 %v2454_v7  ;;  %2397 = vmax.xlane.f32.xlu1 %v2396_v42 }
0x1616   :  { %2520 = vmax.xlane.f32.xlu1 %v2519_v11 }
0x1679   :  { %v2453_v13 = vpop.xlane.xlu1 %2452 }
0x167a   :  { %5236 = vrcp.f32 %v2453_v13 }
0x1680   :  { %v5237_v29 = vpop.eup %5236 }
0x1681   :  { %v2456_v15 = vpop.xlane.xlu2 %2455  ;;  %v2398_v16 = vpop.xlane.xlu1 %2397  ;;  %v2459_v27 = vmul.f32 %v5237_v29, %v5233_v51 }
0x1682   :  { %5238 = vrcp.f32 %v2456_v15  ;;  %v2400_v28 = vsub.f32 %v2391_v4, %v2398_v16 }
0x1684   :  { %v2403_v24 = vmul.f32 1.442695, %v2400_v28 }
0x1686   :  { %5240 = vpow2.f32 %v2403_v24 }
0x1688   :  { %v5239_v58 = vpop.eup %5238 }
0x1689   :  { %v2460_v30 = vmul.f32 %v5239_v58, %v5235_v5  ;;  %v2521_v6 = vpop.xlane.xlu1 %2520 }
0x168a   :  { %v2525_v35 = vsub.f32 %v2515_v8, %v2521_v6 }
0x168b   :  { %v2461_v38 = vpack.c.bf16 %v2460_v30, %v2459_v27 }
0x168c   :  { %v5241_v10 = vpop.eup %5240  ;;  %v2527_v23 = vmul.f32 1.442695, %v2525_v35 }
0x168d   :  { %4598 = vmatmul.msk.bf16.vlgmr.msra.gmra.mxu1 %vm410_vm7, %v2461_v38  ;;  %v2408_v18 = vsel %vm410_vm7, %v5241_v10, 0.0 }
0x168e   :  { %5242 = vpow2.f32 %v2527_v23  ;;  %2409 = vadd.xlane.f32.xlu1 %v2408_v18  ;;  %v4979_v23 = vld [vmem:[%s6936_s4 + $0x1f8] sm:$0xff]  ;;  %v4978_v18 = vld [vmem:[%s6936_s4 + $0x1f0] sm:$0xff] }
0x168f   :  { %5244 = vpow2.f32 %v2401_v61  ;;  %2659 = vmatpush.bf16.msra.mxu3 %v4979_v23 }
0x1693   :  { %2660 = vmatpush.bf16.msra.mxu3 %v4978_v18 }
0x1694   :  { %v6348_v9 = vpop.eup %5242 }
0x1695   :  { %v2531_v12 = vsel %vm410_vm7, %v6348_v9, 0.0  ;;  %v5245_v22 = vpop.eup %5244 }
0x1696   :  { %2532 = vadd.xlane.f32.xlu1 %v2531_v12  ;;  %v4976_v12 = vld [vmem:[%s6936_s4 + $0x1e0] sm:$0xff] }
0x169d   :  { %4602 = vmatmul.msk.bf16.vlgmr.msrb.gmra.mxu1 %vm133_vm2, %v6316_v48  ;;  %v2522_v48 = vsel %vm410_vm7, %v2517_v52, -inf }
0x1701   :  { %v2410_v62 = vpop.xlane.xlu1 %2409 }
0x1709   :  { %v2533_v13 = vpop.xlane.xlu1 %2532 }
0x170a   :  { %v6354_v14 = vpop.f32.mrf.mxu1 }
0x1712   :  { %v6356_v33 = vpop.f32.mrf.mxu1 }
0x171a   :  { %v2579_v32 = vpop.f32.mrf.mxu1 }
0x171b   :  { %v2580_v47 = vadd.f32 %v2579_v32, %v6327_v55  ;;  %v2405_v55 = vsel %vm410_vm7, %v5245_v22, 0.0 }
0x171d   :  { %v2584_v49 = vsel %vm410_vm7, %v2580_v47, -inf }
0x171e   :  { %2585 = vmax.xlane.f32.xlu2 %v2584_v49 }
0x1722   :  { %v2581_v54 = vpop.f32.mrf.mxu1 }
0x1723   :  { %v2582_v20 = vadd.f32 %v2581_v54, %v6334_v19 }
0x1725   :  { %v2587_v53 = vsel %vm410_vm7, %v2582_v20, -inf }
0x1726   :  { %2523 = vmax.xlane.f32.xlu2 %v2522_v48  ;;  %2588 = vmax.xlane.f32.xlu0 %v2587_v53 }
0x172e   :  { %2406 = vadd.xlane.f32.xlu0 %v2405_v55  ;;  %v5082_v55 = vld [vmem:[%s6935_s5 + $0xf] ss:$0 sm:$0xff] }
0x1791   :  { %v2586_v21 = vpop.xlane.xlu2 %2585 }
0x1792   :  { %v2590_v26 = vsub.f32 %v2580_v47, %v2586_v21 }
0x1794   :  { %v2592_v56 = vmul.f32 1.442695, %v2590_v26 }
0x1796   :  { %5246 = vpow2.f32 %v2592_v56 }
0x1799   :  { %v2524_v57 = vpop.xlane.xlu2 %2523  ;;  %v2589_v1 = vpop.xlane.xlu0 %2588 }
0x179a   :  { %v2526_v59 = vsub.f32 %v2517_v52, %v2524_v57  ;;  %v2591_v34 = vsub.f32 %v2582_v20, %v2589_v1 }
0x179c   :  { %v5247_v19 = vpop.eup %5246  ;;  %v2529_v60 = vmul.f32 1.442695, %v2526_v59  ;;  %v2594_v44 = vmul.f32 1.442695, %v2591_v34 }
0x179d   :  { %v2596_v0 = vsel %vm410_vm7, %v5247_v19, 0.0 }
0x179e   :  { %5248 = vpow2.f32 %v2529_v60  ;;  %2597 = vadd.xlane.f32.xlu2 %v2596_v0 }
0x179f   :  { %5250 = vpow2.f32 %v2594_v44 }
0x17a0   :  { %5252 = vrcp.f32 %v2410_v62 }
0x17a1   :  { %v2407_v51 = vpop.xlane.xlu0 %2406 }
0x17a2   :  { %5254 = vrcp.f32 %v2407_v51 }
0x17a3   :  { %5256 = vrcp.f32 %v2533_v13 }
0x17a4   :  { %v5249_v17 = vpop.eup %5248 }
0x17a5   :  { %v5251_v2 = vpop.eup %5250  ;;  %v2534_v3 = vsel %vm410_vm7, %v5249_v17, 0.0 }
0x17a6   :  { %v5253_v4 = vpop.eup %5252  ;;  %2535 = vadd.xlane.f32.xlu2 %v2534_v3  ;;  %v2599_v5 = vsel %vm410_vm7, %v5251_v2, 0.0  ;;  %v4982_v3 = vld [vmem:[%s6939_s6 + $0x50] sm:$0xff] }
0x17a7   :  { %2600 = vadd.xlane.f32.xlu0 %v2599_v5  ;;  %v2414_v42 = vmul.f32 %v5253_v4, %v5241_v10  ;;  %v4981_v4 = vld [vmem:[%s6939_s6 + $0x48] sm:$0xff] }
0x17a8   :  { %v5255_v7 = vpop.eup %5254 }
0x17a9   :  { %v2413_v46 = vmul.f32 %v5255_v7, %v5245_v22  ;;  %v5257_v28 = vpop.eup %5256 }
0x17aa   :  { %v2539_v27 = vmul.f32 %v5257_v28, %v6348_v9  ;;  %v4977_v9 = vld [vmem:[%s6936_s4 + $0x1e8] sm:$0xff] }
0x17ab   :  { %v2415_v8 = vpack.c.bf16 %v2414_v42, %v2413_v46  ;;  %2661 = vmatpush.bf16.msra.mxu3 %v4977_v9  ;;  %v4980_v46 = vld [vmem:[%s6939_s6 + $0x40] sm:$0xff] }
0x17ad   :  { %4599 = vmatmul.msk.bf16.vlgmr.msra.gmra.mxu2 %vm410_vm7, %v2415_v8  ;;  %v4991_v8 = vld [vmem:[%s6940_s8 + $0xb8] sm:$0xff] }
0x17ae   :  { %2844 = vmatpush.bf16.msra.mxu1 %v4991_v8 }
0x17af   :  { %2662 = vmatpush.bf16.msra.mxu3 %v4976_v12 }
0x1811   :  { %v2598_v11 = vpop.xlane.xlu2 %2597 }
0x1812   :  { %5258 = vrcp.f32 %v2598_v11 }
0x1818   :  { %v5259_v24 = vpop.eup %5258 }
0x1819   :  { %v2536_v15 = vpop.xlane.xlu2 %2535  ;;  %v2604_v6 = vmul.f32 %v5259_v24, %v5247_v19 }
0x181a   :  { %5260 = vrcp.f32 %v2536_v15  ;;  %v2601_v16 = vpop.xlane.xlu0 %2600  ;;  %v4990_v15 = vld [vmem:[%s6940_s8 + $0xb0] sm:$0xff] }
0x181b   :  { %5262 = vrcp.f32 %v2601_v16  ;;  %2845 = vmatpush.bf16.msra.mxu1 %v4990_v15  ;;  %v4995_v15 = vld [vmem:[%s6936_s4 + $0x218] sm:$0xff] }
0x181c   :  { %2981 = vmatpush.bf16.msra.mxu2 %v4995_v15 }
0x1820   :  { %v5261_v29 = vpop.eup %5260 }
0x1821   :  { %v5263_v58 = vpop.eup %5262  ;;  %v2540_v30 = vmul.f32 %v5261_v29, %v5249_v17  ;;  %v4989_v29 = vld [vmem:[%s6940_s8 + $0xa8] sm:$0xff] }
0x1822   :  { %v2605_v35 = vmul.f32 %v5263_v58, %v5251_v2  ;;  %v4983_v2 = vld [vmem:[%s6939_s6 + $0x58] sm:$0xff]  ;;  %2846 = vmatpush.bf16.msra.mxu1 %v4989_v29  ;;  %v4998_v29 = vld [vmem:[%s6936_s4 + $0x230] sm:$0xff] }
0x1823   :  { %v2541_v38 = vpack.c.bf16 %v2540_v30, %v2539_v27  ;;  %2782 = vmatpush.bf16.msrb.mxu0 %v4983_v2  ;;  %v4988_v30 = vld [vmem:[%s6940_s8 + $0xa0] sm:$0xff] }
0x1824   :  { %v2606_v10 = vpack.c.bf16 %v2605_v35, %v2604_v6 }
0x1825   :  { %4601 = vmatmul.msk.bf16.vlgmr.msra.gmra.mxu0 %vm410_vm7, %v2541_v38 }
0x1826   :  { %4603 = vmatmul.msk.bf16.vlgmr.msrb.gmra.mxu2 %vm410_vm7, %v2606_v10  ;;  %2847 = vmatpush.bf16.msra.mxu1 %v4988_v30  ;;  %v4997_v30 = vld [vmem:[%s6936_s4 + $0x228] sm:$0xff] }
0x1827   :  { %2783 = vmatpush.bf16.msrb.mxu0 %v4982_v3 }
0x182b   :  { %2784 = vmatpush.bf16.msrb.mxu0 %v4981_v4 }
0x182f   :  { %2785 = vmatpush.bf16.msrb.mxu0 %v4980_v46 }
0x1830   :  { %v2491_v45 = vpop.f32.mrf.mxu2 }
0x1831   :  { %v2492_v50 = vadd.f32 %v2491_v45, %v6354_v14  ;;  %v5083_v45 = vld [vmem:[%s6934_s10 + $0xe] ss:$0 sm:$0xff] }
0x1838   :  { %v2493_v32 = vpop.f32.mrf.mxu2 }
0x1839   :  { %v2494_v61 = vadd.f32 %v2493_v32, %v6356_v33 }
0x18a2   :  { %v2554_v47 = vpop.f32.mrf.mxu0 }
0x18a3   :  { %v2559_v52 = vadd.f32 %v2554_v47, %v2492_v50 }
0x18a9   :  { %v2619_v43 = vpop.f32.mrf.mxu2 }
0x18aa   :  { %v2556_v49 = vpop.f32.mrf.mxu0  ;;  %v2624_v48 = vadd.f32 %v2619_v43, %v2559_v52 }
0x18ab   :  { %v2560_v54 = vadd.f32 %v2556_v49, %v2494_v61  ;;  %v5084_v49 = vld [vmem:[%s6934_s10 + $0xf] ss:$0 sm:$0xff] }
0x18b1   :  { %v2621_v20 = vpop.f32.mrf.mxu2 }
0x18b2   :  { %v2625_v53 = vadd.f32 %v2621_v20, %v2560_v54 }
0x18b4   :  { %v2626_v22 = vpack.c.bf16 %v2625_v53, %v2624_v48  ;;  %v4987_v53 = vld [vmem:[%s6940_s8 + $0x98] sm:$0xff] }
0x18b5   :  { %2848 = vmatpush.bf16.msra.mxu1 %v4987_v53 }
0x18b6   :  { %4620 = vmatmul.msk.bf16.vlgmr.msra.gmra.mxu3 %vm133_vm2, %v2626_v22  ;;  %v4986_v22 = vld [vmem:[%s6940_s8 + $0x90] sm:$0xff] }
0x18b9   :  { %2849 = vmatpush.bf16.msra.mxu1 %v4986_v22 }
0x1939   :  { %v2664_v21 = vpop.f32.mrf.mxu3 }
0x193a   :  { %v2665_v26 = vadd.f32 %v5082_v55, %v2664_v21  ;;  %v4984_v21 = vld [vmem:[%s6940_s8 + $0x80] sm:$0xff] }
0x193c   :  { %v6391_v56 = vadd.f32 %v2665_v26, %v6195_v36 }
0x193e   :  { %v2673_v14 = vsel %vm133_vm2, %v6391_v56, 0.0 }
0x193f   :  { %2674 = vadd.xlane.f32.xlu0 %v2673_v14  ;;  %v5085_v14 = vld [vmem:[%s6938_s7 + $0x2] ss:$0 sm:$0xff] }
0x1941   :  { %v2666_v33 = vpop.f32.mrf.mxu3 }
0x1942   :  { %v2667_v57 = vadd.f32 %v5082_v55, %v2666_v33  ;;  %v4985_v55 = vld [vmem:[%s6940_s8 + $0x88] sm:$0xff] }
0x1943   :  { %2850 = vmatpush.bf16.msra.mxu1 %v4985_v55 }
0x1944   :  { %v6396_v1 = vadd.f32 %v2667_v57, %v6205_v63 }
0x1946   :  { %v2676_v59 = vsel %vm133_vm2, %v6396_v1, 0.0 }
0x1947   :  { %2677 = vadd.xlane.f32.xlu1 %v2676_v59  ;;  %2851 = vmatpush.bf16.msra.mxu1 %v4984_v21  ;;  %v5087_v21 = vld [vmem:[%s6934_s10 + $0x10] ss:$0 sm:$0xff] }
0x19b2   :  { %v2675_v34 = vpop.xlane.xlu0 %2674 }
0x19b3   :  { %v2679_v19 = vmul.f32 %v2675_v34, %v5470_v31 }
0x19b5   :  { %v2681_v60 = vsub.f32 %v6391_v56, %v2679_v19 }
0x19b7   :  { %v2683_v36 = vmul.f32 %v2681_v60, %v2681_v60 }
0x19b9   :  { %v2685_v44 = vsel %vm133_vm2, %v2683_v36, 0.0  ;;  %v5086_v36 = vld [vmem:[%s6941_s9 + $0x2] ss:$0 sm:$0xff] }
0x19ba   :  { %v2678_v62 = vpop.xlane.xlu1 %2677  ;;  %2686 = vadd.xlane.f32.xlu2 %v2685_v44 }
0x19bb   :  { %v2680_v0 = vmul.f32 %v2678_v62, %v5470_v31 }
0x19bd   :  { %v2682_v51 = vsub.f32 %v6396_v1, %v2680_v0 }
0x19bf   :  { %v2684_v63 = vmul.f32 %v2682_v51, %v2682_v51 }
0x19c1   :  { %v2688_v17 = vsel %vm133_vm2, %v2684_v63, 0.0 }
0x19c2   :  { %2689 = vadd.xlane.f32.xlu0 %v2688_v17 }
0x1a2d   :  { %v2687_v5 = vpop.xlane.xlu2 %2686 }
0x1a2e   :  { %v2691_v7 = vmul.f32 %v2687_v5, %v5470_v31 }
0x1a30   :  { %v2693_v42 = vadd.f32 1e-05, %v2691_v7 }
0x1a32   :  { %5264 = vrsqrt.f32 %v2693_v42  ;;  %vm2701_vm1 = vweird.f32 %v2693_v42 }
0x1a35   :  { %v2690_v11 = vpop.xlane.xlu0 %2689 }
0x1a36   :  { %v2692_v13 = vmul.f32 %v2690_v11, %v5470_v31 }
0x1a38   :  { %v5265_v16 = vpop.eup %5264  ;;  %v2694_v28 = vadd.f32 1e-05, %v2692_v13 }
0x1a39   :  { %v2696_v24 = vmul.f32 %v5265_v16, %v2693_v42  ;;  %vm2702_vm0 = vweird.f32 %v5265_v16 }
0x1a3a   :  { %5266 = vrsqrt.f32 %v2694_v28  ;;  %vm2703_vm3 = vmor %vm2701_vm1, %vm2702_vm0  ;;  %vm2711_vm5 = vweird.f32 %v2694_v28 }
0x1a3b   :  { %v2697_v58 = vmul.f32 %v5265_v16, %v2696_v24  ;;  %v4994_v24 = vld [vmem:[%s6936_s4 + $0x210] sm:$0xff] }
0x1a3c   :  { %2982 = vmatpush.bf16.msra.mxu2 %v4994_v24 }
0x1a3d   :  { %v2698_v27 = vmul.f32 0.5, %v2697_v58  ;;  %v5002_v58 = vld [vmem:[%s6936_s4 + $0x250] sm:$0xff] }
0x1a3f   :  { %v2699_v6 = vsub.f32 1.5, %v2698_v27  ;;  %v4993_v27 = vld [vmem:[%s6936_s4 + $0x208] sm:$0xff] }
0x1a40   :  { %v5267_v35 = vpop.eup %5266  ;;  %2983 = vmatpush.bf16.msra.mxu2 %v4993_v27 }
0x1a41   :  { %v2700_v38 = vmul.f32 %v5265_v16, %v2699_v6  ;;  %v2706_v10 = vmul.f32 %v5267_v35, %v2694_v28  ;;  %vm2712_vm4 = vweird.f32 %v5267_v35  ;;  %v5003_v28 = vld [vmem:[%s6936_s4 + $0x258] sm:$0xff]  ;;  %v5001_v6 = vld [vmem:[%s6936_s4 + $0x248] sm:$0xff] }
0x1a42   :  { %vm2713_vm6 = vmor %vm2711_vm5, %vm2712_vm4  ;;  %3059 = vmatpush.bf16.msra.mxu0 %v5003_v28 }
0x1a43   :  { %v2707_v23 = vmul.f32 %v5267_v35, %v2706_v10  ;;  %v2704_v18 = vsel %vm2703_vm3, %v5265_v16, %v2700_v38  ;;  %v4999_v16 = vld [vmem:[%s6936_s4 + $0x238] sm:$0xff] }
0x1a44   :  { %v2715_v32 = vmul.f32 %v2704_v18, %v2681_v60  ;;  %3020 = vmatpush.bf16.msrb.mxu3 %v4999_v16  ;;  %v4996_v18 = vld [vmem:[%s6936_s4 + $0x220] sm:$0xff] }
0x1a45   :  { %v2708_v9 = vmul.f32 0.5, %v2707_v23  ;;  %v4992_v23 = vld [vmem:[%s6936_s4 + $0x200] sm:$0xff] }
0x1a46   :  { %v2718_v50 = vmul.f32 %v5083_v45, %v2715_v32  ;;  %3060 = vmatpush.bf16.msra.mxu0 %v5002_v58  ;;  %2984 = vmatpush.bf16.msra.mxu2 %v4992_v23 }
0x1a47   :  { %v2709_v12 = vsub.f32 1.5, %v2708_v9  ;;  %v5000_v9 = vld [vmem:[%s6936_s4 + $0x240] sm:$0xff] }
0x1a48   :  { %v2721_v54 = vadd.f32 %v5084_v49, %v2718_v50  ;;  %3021 = vmatpush.bf16.msrb.mxu3 %v4998_v29 }
0x1a49   :  { %v2710_v47 = vmul.f32 %v5267_v35, %v2709_v12 }
0x1a4a   :  { %3061 = vmatpush.bf16.msra.mxu0 %v5001_v6  ;;  %v5090_v6 = vld [vmem:[%s6935_s5 + $0x10] ss:$0 sm:$0xff] }
0x1a4b   :  { %v2714_v43 = vsel %vm2713_vm6, %v5267_v35, %v2710_v47 }
0x1a4c   :  { %v2716_v61 = vmul.f32 %v2714_v43, %v2682_v51  ;;  %3022 = vmatpush.bf16.msrb.mxu3 %v4997_v30 }
0x1a4e   :  { %v2719_v52 = vmul.f32 %v5083_v45, %v2716_v61  ;;  %3062 = vmatpush.bf16.msra.mxu0 %v5000_v9 }
0x1a50   :  { %v2722_v20 = vadd.f32 %v5084_v49, %v2719_v52  ;;  %3023 = vmatpush.bf16.msrb.mxu3 %v4996_v18 }
0x1a52   :  { %v2749_v48 = vpack.c.bf16 %v2722_v20, %v2721_v54 }
0x1a54   :  { %4637 = vmatmul.msk.bf16.vlgmr.msrb.gmra.mxu0 %vm133_vm2, %v2749_v48 }
0x1ad1   :  { %v2787_v26 = vpop.f32.mrf.mxu0 }
0x1ad2   :  { %v2788_v33 = vadd.f32 %v5085_v14, %v2787_v26 }
0x1ad4   :  { %v2792_v34 = vmax.f32 %v2788_v33, 0.0 }
0x1ad9   :  { %v2789_v57 = vpop.f32.mrf.mxu0 }
0x1ada   :  { %v2790_v59 = vadd.f32 %v5085_v14, %v2789_v57  ;;  %v5088_v57 = vld [vmem:[%s6934_s10 + $0x11] ss:$0 sm:$0xff] }
0x1adc   :  { %v2793_v19 = vmax.f32 %v2790_v59, 0.0 }
0x1ade   :  { %v2794_v60 = vpack.c.bf16 %v2793_v19, %v2792_v34 }
0x1ae0   :  { %2852 = vmatmul.bf16.vlgmr.msra.gmra.mxu1 %v2794_v60 }
0x1b5d   :  { %v2853_v44 = vpop.f32.mrf.mxu1 }
0x1b5e   :  { %v2854_v62 = vadd.f32 %v5086_v36, %v2853_v44 }
0x1b60   :  { %v6458_v0 = vadd.f32 %v2854_v62, %v6391_v56 }
0x1b62   :  { %v2862_v51 = vsel %vm133_vm2, %v6458_v0, 0.0 }
0x1b63   :  { %2863 = vadd.xlane.f32.xlu1 %v2862_v51  ;;  %v5089_v51 = vld [vmem:[%s6935_s5 + $0x12] ss:$0 sm:$0xff] }
0x1b65   :  { %v2855_v63 = vpop.f32.mrf.mxu1 }
0x1b66   :  { %v2856_v17 = vadd.f32 %v5086_v36, %v2855_v63 }
0x1b68   :  { %v6463_v2 = vadd.f32 %v2856_v17, %v6396_v1 }
0x1b6a   :  { %v2865_v3 = vsel %vm133_vm2, %v6463_v2, 0.0 }
0x1b6b   :  { %2866 = vadd.xlane.f32.xlu2 %v2865_v3 }
0x1bd6   :  { %v2864_v4 = vpop.xlane.xlu1 %2863 }
0x1bd7   :  { %v2868_v5 = vmul.f32 %v2864_v4, %v5470_v31  ;;  %v5091_v4 = vld [vmem:[%s6935_s5 + $0x11] ss:$0 sm:$0xff] }
0x1bd9   :  { %v2870_v7 = vsub.f32 %v6458_v0, %v2868_v5 }
0x1bdb   :  { %v2872_v56 = vmul.f32 %v2870_v7, %v2870_v7 }
0x1bdd   :  { %v2874_v42 = vsel %vm133_vm2, %v2872_v56, 0.0 }
0x1bde   :  { %v2867_v46 = vpop.xlane.xlu2 %2866  ;;  %2875 = vadd.xlane.f32.xlu0 %v2874_v42 }
0x1bdf   :  { %v2869_v8 = vmul.f32 %v2867_v46, %v5470_v31 }
0x1be1   :  { %v2871_v11 = vsub.f32 %v6463_v2, %v2869_v8 }
0x1be3   :  { %v2873_v1 = vmul.f32 %v2871_v11, %v2871_v11 }
0x1be5   :  { %v2877_v13 = vsel %vm133_vm2, %v2873_v1, 0.0 }
0x1be6   :  { %2878 = vadd.xlane.f32.xlu1 %v2877_v13 }
0x1c51   :  { %v2876_v35 = vpop.xlane.xlu0 %2875 }
0x1c52   :  { %v2880_v38 = vmul.f32 %v2876_v35, %v5470_v31 }
0x1c54   :  { %v2882_v10 = vadd.f32 1e-05, %v2880_v38 }
0x1c56   :  { %5268 = vrsqrt.f32 %v2882_v10  ;;  %vm2890_vm9 = vweird.f32 %v2882_v10 }
0x1c59   :  { %v2879_v12 = vpop.xlane.xlu1 %2878 }
0x1c5a   :  { %v2881_v45 = vmul.f32 %v2879_v12, %v5470_v31 }
0x1c5c   :  { %v5269_v32 = vpop.eup %5268  ;;  %v2883_v47 = vadd.f32 1e-05, %v2881_v45 }
0x1c5d   :  { %v2885_v43 = vmul.f32 %v5269_v32, %v2882_v10  ;;  %vm2891_vm8 = vweird.f32 %v5269_v32 }
0x1c5e   :  { %5270 = vrsqrt.f32 %v2883_v47  ;;  %vm2892_vm10 = vmor %vm2890_vm9, %vm2891_vm8  ;;  %vm2900_vm12 = vweird.f32 %v2883_v47 }
0x1c5f   :  { %v2886_v49 = vmul.f32 %v5269_v32, %v2885_v43 }
0x1c61   :  { %v2887_v50 = vmul.f32 0.5, %v2886_v49 }
0x1c63   :  { %v2888_v61 = vsub.f32 1.5, %v2887_v50 }
0x1c64   :  { %v5271_v52 = vpop.eup %5270 }
0x1c65   :  { %v2889_v54 = vmul.f32 %v5269_v32, %v2888_v61  ;;  %v2895_v20 = vmul.f32 %v5271_v52, %v2883_v47  ;;  %vm2901_vm11 = vweird.f32 %v5271_v52 }
0x1c66   :  { %vm2902_vm13 = vmor %vm2900_vm12, %vm2901_vm11 }
0x1c67   :  { %v2896_v48 = vmul.f32 %v5271_v52, %v2895_v20  ;;  %v2893_v53 = vsel %vm2892_vm10, %v5269_v32, %v2889_v54 }
0x1c68   :  { %v2904_v26 = vmul.f32 %v2893_v53, %v2870_v7 }
0x1c69   :  { %v2897_v22 = vmul.f32 0.5, %v2896_v48 }
0x1c6a   :  { %v2907_v59 = vmul.f32 %v5087_v21, %v2904_v26 }
0x1c6b   :  { %v2898_v55 = vsub.f32 1.5, %v2897_v22 }
0x1c6c   :  { %v2910_v60 = vadd.f32 %v5088_v57, %v2907_v59 }
0x1c6d   :  { %v2899_v14 = vmul.f32 %v5271_v52, %v2898_v55 }
0x1c6f   :  { %v2903_v33 = vsel %vm2902_vm13, %v5271_v52, %v2899_v14 }
0x1c70   :  { %v2905_v34 = vmul.f32 %v2903_v33, %v2871_v11  ;;  %v6560_v33 = vld [vmem:[%s6937_s1 + $0x10] sm:$0xff] }
0x1c72   :  { %v2908_v19 = vmul.f32 %v5087_v21, %v2905_v34 }
0x1c74   :  { %v2911_v36 = vadd.f32 %v5088_v57, %v2908_v19 }
0x1c76   :  { %v2948_v44 = vpack.c.bf16 %v2911_v36, %v2910_v60  ;;  %v6567_v60 = vld [vmem:[%s6937_s1 + $0x18] sm:$0xff] }
0x1c78   :  { %4686 = vmatmul.msk.bf16.vlgmr.msra.gmra.mxu2 %vm133_vm2, %v2948_v44  ;;  %4703 = vmatmul.msk.bf16.vlgmr.msrb.gmra.mxu3 %vm133_vm2, %v2948_v44 }
0x1c79   :  { %4720 = vmatmul.msk.bf16.vlgmr.msra.gmra.mxu0 %vm133_vm2, %v2948_v44 }
0x1cf6   :  { %v3064_v62 = vpop.f32.mrf.mxu0 }
0x1cf7   :  { %v3065_v3 = vadd.f32 %v5089_v51, %v3064_v62 }
0x1cf9   :  { %v3075_v56 = vmul.f32 %v5558_v37, %v3065_v3  ;;  %v3124_v42 = vmul.f32 %v5561_v39, %v3065_v3  ;;  %v3269_v46 = vmul.f32 %v5564_v40, %v3065_v3  ;;  %v3204_v49 = vmul.f32 %v5567_v41, %v3065_v3 }
0x1cfb   :  { %v2986_v63 = vpop.f32.mrf.mxu2  ;;  %v3025_v17 = vpop.f32.mrf.mxu3 }
0x1cfc   :  { %v3026_v8 = vadd.f32 %v5091_v4, %v3025_v17  ;;  %v2987_v61 = vadd.f32 %v5090_v6, %v2986_v63 }
0x1cfe   :  { %v3066_v5 = vpop.f32.mrf.mxu0  ;;  %v3072_v27 = vmul.f32 %v5558_v37, %v3026_v8  ;;  %v3121_v30 = vmul.f32 %v5561_v39, %v3026_v8  ;;  %v3266_v10 = vmul.f32 %v5564_v40, %v3026_v8  ;;  %v3201_v9 = vmul.f32 %v5567_v41, %v3026_v8 }
0x1cff   :  { %v3067_v7 = vadd.f32 %v5089_v51, %v3066_v5  ;;  %v3069_v55 = vmul.f32 0.25, %v2987_v61 }
0x1d01   :  { %v3076_v11 = vmul.f32 %v5558_v37, %v3067_v7  ;;  %v3125_v1 = vmul.f32 %v5561_v39, %v3067_v7  ;;  %v3270_v13 = vmul.f32 %v5564_v40, %v3067_v7  ;;  %v3205_v18 = vmul.f32 %v5567_v41, %v3067_v7 }
0x1d03   :  { %v3027_v15 = vpop.f32.mrf.mxu3  ;;  %v3126_v16 = vpack.c.bf16 %v3125_v1, %v3124_v42  ;;  %v3077_v28 = vpack.c.bf16 %v3076_v11, %v3075_v56  ;;  %v3271_v24 = vpack.c.bf16 %v3270_v13, %v3269_v46  ;;  %v2988_v58 = vpop.f32.mrf.mxu2  ;;  %v3206_v53 = vpack.c.bf16 %v3205_v18, %v3204_v49 }
0x1d04   :  { %v3028_v29 = vadd.f32 %v5091_v4, %v3027_v15  ;;  %v2989_v45 = vadd.f32 %v5090_v6, %v2988_v58 }
0x1d05   :  { %3177 = vmatpush.bf16.msrb.mxu0 %v3126_v16  ;;  %3194 = vmatpush.bf16.msrb.mxu1 %v3077_v28 }
0x1d06   :  { %v3073_v35 = vmul.f32 %v5558_v37, %v3028_v29  ;;  %v3122_v38 = vmul.f32 %v5561_v39, %v3028_v29  ;;  %v3267_v23 = vmul.f32 %v5564_v40, %v3028_v29  ;;  %v3202_v12 = vmul.f32 %v5567_v41, %v3028_v29 }
0x1d07   :  { %v3070_v22 = vmul.f32 0.25, %v2989_v45 }
0x1d08   :  { %v3074_v32 = vpack.c.bf16 %v3073_v35, %v3072_v27  ;;  %v3123_v47 = vpack.c.bf16 %v3122_v38, %v3121_v30  ;;  %v3268_v43 = vpack.c.bf16 %v3267_v23, %v3266_v10  ;;  %v3203_v50 = vpack.c.bf16 %v3202_v12, %v3201_v9 }
0x1d09   :  { %3322 = vmatpush.bf16.msra.mxu1 %v3271_v24  ;;  %v6549_v21 = vpack.c.bf16 %v3070_v22, %v3069_v55  ;;  %v5006_v22 = vld [vmem:[%s6936_s4 + $0x270] sm:$0xff] }
0x1d0a   :  { %v3082_v52 = vsel %vm133_vm2, %v3074_v32, 0  ;;  %v3128_v54 = vsel %vm133_vm2, %v3123_v47, 0  ;;  %v3273_v20 = vsel %vm133_vm2, %v3268_v43, 0  ;;  %v3208_v48 = vsel %vm133_vm2, %v3203_v50, 0  ;;  %v5015_v50 = vld [vmem:[%s6936_s4 + $0x2b8] sm:$0xff] }
0x1d0b   :  { %3091 = vmatpush.bf16.xpose.msrb.mxu2 %v3082_v52  ;;  %3137 = vmatpush.bf16.xpose.msra.mxu3 %v3128_v54  ;;  %v5014_v52 = vld [vmem:[%s6936_s4 + $0x2b0] sm:$0xff]  ;;  %v5013_v54 = vld [vmem:[%s6936_s4 + $0x2a8] sm:$0xff] }
0x1d0c   :  { %3282 = vmatpush.bf16.xpose.msra.mxu0 %v3273_v20  ;;  %v5012_v20 = vld [vmem:[%s6936_s4 + $0x2a0] sm:$0xff] }
0x1d12   :  { %4721 = vmatmul.msk.bf16.vlgmr.msrb.gmra.mxu2 %vm133_vm2, %v6549_v21  ;;  %4722 = vmatmul.msk.bf16.vlgmr.msra.gmra.mxu3 %vm133_vm2, %v6549_v21 }
0x1d13   :  { %3217 = vmatpush.bf16.xpose.msra.mxu2 %v3208_v48  ;;  %3257 = vmatpush.bf16.msrb.mxu3 %v3206_v53  ;;  %v5007_v53 = vld [vmem:[%s6936_s4 + $0x278] sm:$0xff] }
0x1d1b   :  { %3364 = vmatpush.bf16.msrb.mxu2 %v5007_v53 }
0x1d1f   :  { %3365 = vmatpush.bf16.msrb.mxu2 %v5006_v22 }
0x1d22   :  { %4725 = vmatmul.msk.bf16.vlgmr.msra.gmra.mxu2 %vm133_vm2, %v6549_v21 }
0x1d95   :  { %v3093_v26 = vpop.f32.mrf.mxu2  ;;  %v3139_v14 = vpop.f32.mrf.mxu3 }
0x1d96   :  { %v3140_v57 = vadd.f32 %v6560_v33, %v3139_v14  ;;  %v3094_v62 = vadd.f32 %v6560_v33, %v3093_v26 }
0x1d98   :  { %v3144_v59 = vsel %vm410_vm7, %v3140_v57, -inf  ;;  %v3098_v63 = vsel %vm410_vm7, %v3094_v62, -inf }
0x1d99   :  { %3145 = vmax.xlane.f32.xlu2 %v3144_v59 }
0x1d9d   :  { %v3095_v34 = vpop.f32.mrf.mxu2  ;;  %v3141_v19 = vpop.f32.mrf.mxu3 }
0x1d9e   :  { %v3142_v36 = vadd.f32 %v6567_v60, %v3141_v19  ;;  %v3096_v13 = vadd.f32 %v6567_v60, %v3095_v34 }
0x1da0   :  { %v3147_v44 = vsel %vm410_vm7, %v3142_v36, -inf  ;;  %v3101_v58 = vsel %vm410_vm7, %v3096_v13, -inf }
0x1da1   :  { %3148 = vmax.xlane.f32.xlu0 %v3147_v44 }
0x1da5   :  { %v3219_v51 = vpop.f32.mrf.mxu2 }
0x1da6   :  { %v3220_v27 = vadd.f32 %v6560_v33, %v3219_v51 }
0x1da8   :  { %v3224_v10 = vsel %vm410_vm7, %v3220_v27, -inf }
0x1da9   :  { %3099 = vmax.xlane.f32.xlu0 %v3098_v63 }
0x1dad   :  { %v3221_v17 = vpop.f32.mrf.mxu2 }
0x1dae   :  { %v3222_v3 = vadd.f32 %v6567_v60, %v3221_v17 }
0x1db0   :  { %v3227_v4 = vsel %vm410_vm7, %v3222_v3, -inf }
0x1db1   :  { %3228 = vmax.xlane.f32.xlu0 %v3227_v4 }
0x1e0c   :  { %v3146_v5 = vpop.xlane.xlu2 %3145 }
0x1e0d   :  { %v3150_v7 = vsub.f32 %v3140_v57, %v3146_v5  ;;  %v5004_v57 = vld [vmem:[%s6936_s4 + $0x260] sm:$0xff] }
0x1e0f   :  { %v3152_v56 = vmul.f32 1.442695, %v3150_v7 }
0x1e11   :  { %5272 = vpow2.f32 %v3152_v56 }
0x1e14   :  { %v3149_v42 = vpop.xlane.xlu0 %3148 }
0x1e15   :  { %v3151_v46 = vsub.f32 %v3142_v36, %v3149_v42 }
0x1e17   :  { %v5273_v8 = vpop.eup %5272  ;;  %v3154_v11 = vmul.f32 1.442695, %v3151_v46 }
0x1e18   :  { %v3156_v1 = vsel %vm410_vm7, %v5273_v8, 0.0 }
0x1e19   :  { %5274 = vpow2.f32 %v3154_v11  ;;  %3157 = vadd.xlane.f32.xlu1 %v3156_v1 }
0x1e1c   :  { %v3100_v15 = vpop.xlane.xlu0 %3099 }
0x1e1d   :  { %v3104_v16 = vsub.f32 %v3094_v62, %v3100_v15 }
0x1e1f   :  { %v5275_v28 = vpop.eup %5274  ;;  %v3106_v24 = vmul.f32 1.442695, %v3104_v16 }
0x1e20   :  { %v3159_v29 = vsel %vm410_vm7, %v5275_v28, 0.0 }
0x1e21   :  { %5276 = vpow2.f32 %v3106_v24  ;;  %3160 = vadd.xlane.f32.xlu2 %v3159_v29  ;;  %3102 = vmax.xlane.f32.xlu1 %v3101_v58 }
0x1e24   :  { %v3229_v30 = vpop.xlane.xlu0 %3228 }
0x1e25   :  { %v3231_v6 = vsub.f32 %v3222_v3, %v3229_v30 }
0x1e27   :  { %v6580_v35 = vpop.eup %5276  ;;  %v3234_v38 = vmul.f32 1.442695, %v3231_v6 }
0x1e28   :  { %v3110_v23 = vsel %vm410_vm7, %v6580_v35, 0.0 }
0x1e29   :  { %5278 = vpow2.f32 %v3234_v38  ;;  %3225 = vmax.xlane.f32.xlu2 %v3224_v10  ;;  %3111 = vadd.xlane.f32.xlu0 %v3110_v23  ;;  %v5011_v10 = vld [vmem:[%s6936_s4 + $0x298] sm:$0xff]  ;;  %v5010_v23 = vld [vmem:[%s6936_s4 + $0x290] sm:$0xff] }
0x1e2a   :  { %3497 = vmatpush.bf16.msra.mxu3 %v5011_v10 }
0x1e2e   :  { %3498 = vmatpush.bf16.msra.mxu3 %v5010_v23 }
0x1e2f   :  { %v6585_v18 = vpop.eup %5278 }
0x1e30   :  { %v3239_v9 = vsel %vm410_vm7, %v6585_v18, 0.0 }
0x1e31   :  { %3240 = vadd.xlane.f32.xlu0 %v3239_v9  ;;  %v5009_v9 = vld [vmem:[%s6936_s4 + $0x288] sm:$0xff] }
0x1e32   :  { %3499 = vmatpush.bf16.msra.mxu3 %v5009_v9 }
0x1e8c   :  { %v3158_v12 = vpop.xlane.xlu1 %3157 }
0x1e8d   :  { %5280 = vrcp.f32 %v3158_v12  ;;  %v5008_v12 = vld [vmem:[%s6936_s4 + $0x280] sm:$0xff] }
0x1e8e   :  { %3500 = vmatpush.bf16.msra.mxu3 %v5008_v12 }
0x1e93   :  { %v5281_v32 = vpop.eup %5280 }
0x1e94   :  { %v3161_v45 = vpop.xlane.xlu2 %3160  ;;  %v3164_v43 = vmul.f32 %v5281_v32, %v5273_v8  ;;  %v3103_v55 = vpop.xlane.xlu1 %3102 }
0x1e95   :  { %5282 = vrcp.f32 %v3161_v45  ;;  %v3105_v14 = vsub.f32 %v3096_v13, %v3103_v55 }
0x1e97   :  { %v3108_v59 = vmul.f32 1.442695, %v3105_v14 }
0x1e99   :  { %5284 = vpow2.f32 %v3108_v59 }
0x1e9b   :  { %v5283_v47 = vpop.eup %5282 }
0x1e9c   :  { %v3165_v49 = vmul.f32 %v5283_v47, %v5275_v28  ;;  %v3226_v34 = vpop.xlane.xlu2 %3225  ;;  %v3112_v47 = vpop.xlane.xlu0 %3111 }
0x1e9d   :  { %v3230_v44 = vsub.f32 %v3220_v27, %v3226_v34 }
0x1e9e   :  { %v3166_v61 = vpack.c.bf16 %v3165_v49, %v3164_v43 }
0x1e9f   :  { %v3232_v51 = vmul.f32 1.442695, %v3230_v44  ;;  %v5285_v63 = vpop.eup %5284 }
0x1ea0   :  { %4723 = vmatmul.msk.bf16.vlgmr.msrb.gmra.mxu0 %vm410_vm7, %v3166_v61  ;;  %v3113_v5 = vsel %vm410_vm7, %v5285_v63, 0.0 }
0x1ea1   :  { %3536 = vmatpush.bf16.msrb.mxu0 %v5015_v50  ;;  %5286 = vpow2.f32 %v3232_v51 }
0x1ea5   :  { %3537 = vmatpush.bf16.msrb.mxu0 %v5014_v52 }
0x1ea7   :  { %v5287_v7 = vpop.eup %5286 }
0x1ea8   :  { %v3236_v42 = vsel %vm410_vm7, %v5287_v7, 0.0 }
0x1ea9   :  { %3538 = vmatpush.bf16.msrb.mxu0 %v5013_v54 }
0x1ead   :  { %3539 = vmatpush.bf16.msrb.mxu0 %v5012_v20  ;;  %v3241_v20 = vpop.xlane.xlu0 %3240 }
0x1eb0   :  { %4727 = vmatmul.msk.bf16.vlgmr.msra.gmra.mxu0 %vm133_vm2, %v6549_v21  ;;  %v5005_v21 = vld [vmem:[%s6936_s4 + $0x268] sm:$0xff] }
0x1eb1   :  { %3366 = vmatpush.bf16.msrb.mxu2 %v5005_v21 }
0x1eb5   :  { %3367 = vmatpush.bf16.msrb.mxu2 %v5004_v57 }
0x1ec0   :  { %4779 = vmatmul.msk.bf16.vlgmr.msrb.gmra.mxu0 %vm133_vm2, %v6258_v25 }
0x1f1d   :  { %v6606_v48 = vpop.f32.mrf.mxu0 }
0x1f25   :  { %v6614_v26 = vpop.f32.mrf.mxu0 }
0x1f2d   :  { %v3284_v19 = vpop.f32.mrf.mxu0 }
0x1f2e   :  { %v3285_v36 = vadd.f32 %v6560_v33, %v3284_v19  ;;  %v5092_v33 = vld [vmem:[%s6935_s5 + $0x15] ss:$0 sm:$0xff] }
0x1f30   :  { %v3289_v62 = vsel %vm410_vm7, %v3285_v36, -inf }
0x1f31   :  { %3290 = vmax.xlane.f32.xlu1 %v3289_v62 }
0x1f35   :  { %v3286_v17 = vpop.f32.mrf.mxu0 }
0x1f36   :  { %v3287_v3 = vadd.f32 %v6567_v60, %v3286_v17 }
0x1f38   :  { %v3292_v4 = vsel %vm410_vm7, %v3287_v3, -inf }
0x1f39   :  { %3293 = vmax.xlane.f32.xlu2 %v3292_v4  ;;  %3114 = vadd.xlane.f32.xlu1 %v3113_v5  ;;  %v5016_v4 = vld [vmem:[%s6936_s4 + $0x2c0] sm:$0xff] }
0x1f3d   :  { %v3541_v56 = vpop.f32.mrf.mxu0 }
0x1f3e   :  { %v3542_v46 = vadd.f32 %v5092_v33, %v3541_v56 }
0x1f40   :  { %v3588_v60 = vmul.f32 %v5558_v37, %v3542_v46  ;;  %v3637_v1 = vmul.f32 %v5561_v39, %v3542_v46  ;;  %v6634_v13 = vmul.f32 %v5567_v41, %v3542_v46  ;;  %v6637_v15 = vmul.f32 %v5564_v40, %v3542_v46 }
0x1f41   :  { %3237 = vadd.xlane.f32.xlu2 %v3236_v42 }
0x1f45   :  { %v3543_v8 = vpop.f32.mrf.mxu0 }
0x1f46   :  { %v3544_v11 = vadd.f32 %v5092_v33, %v3543_v8 }
0x1f48   :  { %v3589_v16 = vmul.f32 %v5558_v37, %v3544_v11  ;;  %v3638_v28 = vmul.f32 %v5561_v39, %v3544_v11  ;;  %v6642_v24 = vmul.f32 %v5567_v41, %v3544_v11  ;;  %v6645_v29 = vmul.f32 %v5564_v40, %v3544_v11 }
0x1f4a   :  { %v3590_v58 = vpack.c.bf16 %v3589_v16, %v3588_v60  ;;  %v3639_v27 = vpack.c.bf16 %v3638_v28, %v3637_v1  ;;  %v3719_v30 = vpack.c.bf16 %v6642_v24, %v6634_v13  ;;  %v3784_v6 = vpack.c.bf16 %v6645_v29, %v6637_v15 }
0x1f4c   :  { %v3598_v38 = vsel %vm133_vm2, %v3590_v58, 0 }
0x1f4d   :  { %3607 = vmatpush.bf16.xpose.msra.mxu2 %v3598_v38 }
0x1fa4   :  { %v3291_v45 = vpop.xlane.xlu1 %3290 }
0x1fa5   :  { %v3295_v32 = vsub.f32 %v3285_v36, %v3291_v45 }
0x1fa7   :  { %v3297_v43 = vmul.f32 1.442695, %v3295_v32 }
0x1fa9   :  { %5288 = vpow2.f32 %v3297_v43 }
0x1faa   :  { %5290 = vrcp.f32 %v3112_v47 }
0x1fac   :  { %v3294_v49 = vpop.xlane.xlu2 %3293  ;;  %v3115_v50 = vpop.xlane.xlu1 %3114 }
0x1fad   :  { %v3296_v61 = vsub.f32 %v3287_v3, %v3294_v49  ;;  %5292 = vrcp.f32 %v3115_v50  ;;  %v5018_v3 = vld [vmem:[%s6936_s4 + $0x2d0] sm:$0xff] }
0x1faf   :  { %v5289_v52 = vpop.eup %5288  ;;  %v3299_v54 = vmul.f32 1.442695, %v3296_v61 }
0x1fb0   :  { %v3301_v53 = vsel %vm410_vm7, %v5289_v52, 0.0  ;;  %v5291_v22 = vpop.eup %5290 }
0x1fb1   :  { %5294 = vpow2.f32 %v3299_v54  ;;  %3302 = vadd.xlane.f32.xlu1 %v3301_v53  ;;  %v3118_v21 = vmul.f32 %v5291_v22, %v6580_v35  ;;  %v3644_v35 = vsel %vm133_vm2, %v3639_v27, 0 }
0x1fb2   :  { %5296 = vrcp.f32 %v3241_v20 }
0x1fb3   :  { %v5293_v55 = vpop.eup %5292 }
0x1fb4   :  { %v3119_v14 = vmul.f32 %v5293_v55, %v5285_v63  ;;  %v3238_v57 = vpop.xlane.xlu2 %3237  ;;  %v5019_v63 = vld [vmem:[%s6936_s4 + $0x2d8] sm:$0xff] }
0x1fb5   :  { %5298 = vrcp.f32 %v3238_v57 }
0x1fb6   :  { %v3120_v59 = vpack.c.bf16 %v3119_v14, %v3118_v21 }
0x1fb7   :  { %v5295_v34 = vpop.eup %5294 }
0x1fb8   :  { %4724 = vmatmul.msk.bf16.vlgmr.msrb.gmra.mxu1 %vm410_vm7, %v3120_v59  ;;  %v3304_v19 = vsel %vm410_vm7, %v5295_v34, 0.0  ;;  %v5297_v36 = vpop.eup %5296 }
0x1fb9   :  { %3305 = vadd.xlane.f32.xlu2 %v3304_v19  ;;  %v3245_v62 = vmul.f32 %v5297_v36, %v6585_v18  ;;  %3575 = vmatpush.bf16.msrb.mxu1 %v5019_v63  ;;  %v5017_v18 = vld [vmem:[%s6936_s4 + $0x2c8] sm:$0xff] }
0x1fbb   :  { %v5299_v44 = vpop.eup %5298 }
0x1fbc   :  { %v3244_v51 = vmul.f32 %v5299_v44, %v5287_v7 }
0x1fbd   :  { %3576 = vmatpush.bf16.msrb.mxu1 %v5018_v3 }
0x1fbe   :  { %v3246_v17 = vpack.c.bf16 %v3245_v62, %v3244_v51 }
0x1fc0   :  { %4726 = vmatmul.msk.bf16.vlgmr.msrb.gmra.mxu3 %vm410_vm7, %v3246_v17 }
0x1fc1   :  { %3653 = vmatpush.bf16.xpose.msrb.mxu3 %v3644_v35  ;;  %3577 = vmatpush.bf16.msrb.mxu1 %v5017_v18 }
0x1fc5   :  { %3578 = vmatpush.bf16.msrb.mxu1 %v5016_v4 }
0x2024   :  { %v3303_v5 = vpop.xlane.xlu1 %3302 }
0x2025   :  { %5300 = vrcp.f32 %v3303_v5 }
0x202b   :  { %v5301_v56 = vpop.eup %5300 }
0x202c   :  { %v3306_v7 = vpop.xlane.xlu2 %3305  ;;  %v3309_v42 = vmul.f32 %v5301_v56, %v5289_v52 }
0x202d   :  { %5302 = vrcp.f32 %v3306_v7 }
0x2033   :  { %v5303_v33 = vpop.eup %5302 }
0x2034   :  { %v3310_v46 = vmul.f32 %v5303_v33, %v5295_v34 }
0x2035   :  { %v3196_v11 = vpop.f32.mrf.mxu1 }
0x2036   :  { %v3311_v8 = vpack.c.bf16 %v3310_v46, %v3309_v42  ;;  %v3197_v58 = vadd.f32 %v3196_v11, %v6606_v48  ;;  %v5093_v48 = vld [vmem:[%s6935_s5 + $0x16] ss:$0 sm:$0xff] }
0x2038   :  { %4728 = vmatmul.msk.bf16.vlgmr.msra.gmra.mxu1 %vm410_vm7, %v3311_v8 }
0x203d   :  { %v3198_v60 = vpop.f32.mrf.mxu1 }
0x203e   :  { %v3199_v27 = vadd.f32 %v3198_v60, %v6614_v26 }
0x2043   :  { %v3259_v1 = vpop.f32.mrf.mxu3 }
0x2044   :  { %v3264_v38 = vadd.f32 %v3259_v1, %v3197_v58 }
0x2048   :  { %4796 = vmatmul.msk.bf16.vlgmr.msrb.gmra.mxu1 %vm133_vm2, %v6258_v25  ;;  %v3724_v25 = vsel %vm133_vm2, %v3719_v30, 0 }
0x204b   :  { %v3261_v28 = vpop.f32.mrf.mxu3 }
0x204c   :  { %v3265_v10 = vadd.f32 %v3261_v28, %v3199_v27  ;;  %v5095_v27 = vld [vmem:[%s6934_s10 + $0x12] ss:$0 sm:$0xff] }
0x20b5   :  { %v3324_v16 = vpop.f32.mrf.mxu1 }
0x20b6   :  { %v3329_v9 = vadd.f32 %v3324_v16, %v3264_v38 }
0x20bd   :  { %v3326_v23 = vpop.f32.mrf.mxu1 }
0x20be   :  { %v3330_v12 = vadd.f32 %v3326_v23, %v3265_v10 }
0x20c0   :  { %v3331_v45 = vpack.c.bf16 %v3330_v12, %v3329_v9  ;;  %v5096_v9 = vld [vmem:[%s6934_s10 + $0x13] ss:$0 sm:$0xff] }
0x20c2   :  { %4745 = vmatmul.msk.bf16.vlgmr.msrb.gmra.mxu2 %vm133_vm2, %v3331_v45 }
0x20c3   :  { %3733 = vmatpush.bf16.xpose.msrb.mxu2 %v3724_v25 }
0x20c5   :  { %v3580_v32 = vpop.f32.mrf.mxu1 }
0x20c6   :  { %v3581_v26 = vadd.f32 %v5093_v48, %v3580_v32 }
0x20c8   :  { %v3591_v49 = vmul.f32 %v5558_v37, %v3581_v26  ;;  %v3640_v50 = vmul.f32 %v5561_v39, %v3581_v26  ;;  %v6699_v61 = vmul.f32 %v5567_v41, %v3581_v26  ;;  %v3785_v13 = vmul.f32 %v5564_v40, %v3581_v26 }
0x20cd   :  { %v3582_v47 = vpop.f32.mrf.mxu1 }
0x20ce   :  { %v3583_v43 = vadd.f32 %v5093_v48, %v3582_v47 }
0x20d0   :  { %v3592_v24 = vmul.f32 %v5558_v37, %v3583_v43  ;;  %v3641_v30 = vmul.f32 %v5561_v39, %v3583_v43  ;;  %v6705_v52 = vmul.f32 %v5567_v41, %v3583_v43  ;;  %v3786_v54 = vmul.f32 %v5564_v40, %v3583_v43  ;;  %v5094_v39 = vld [vmem:[%s6935_s5 + $0x13] ss:$0 sm:$0xff]  ;;  %v5097_v43 = vld [vmem:[%s6935_s5 + $0x14] ss:$0 sm:$0xff] }
0x20d1   :  { %v3789_v37 = vsel %vm133_vm2, %v3784_v6, 0 }
0x20d2   :  { %v3642_v20 = vpack.c.bf16 %v3641_v30, %v3640_v50  ;;  %v3593_v53 = vpack.c.bf16 %v3592_v24, %v3591_v49  ;;  %v3787_v22 = vpack.c.bf16 %v3786_v54, %v3785_v13  ;;  %v3722_v55 = vpack.c.bf16 %v6705_v52, %v6699_v61 }
0x20d4   :  { %3693 = vmatpush.bf16.msra.mxu0 %v3642_v20  ;;  %3710 = vmatpush.bf16.msra.mxu1 %v3593_v53  ;;  %v6759_v20 = vld [vmem:[%s6937_s1 + $0x20] sm:$0xff] }
0x20d8   :  { %3798 = vmatpush.bf16.xpose.msrb.mxu0 %v3789_v37  ;;  %3838 = vmatpush.bf16.msrb.mxu1 %v3787_v22 }
0x2145   :  { %v3369_v40 = vpop.f32.mrf.mxu2 }
0x2146   :  { %v3370_v41 = vadd.f32 %v5094_v39, %v3369_v40 }
0x2148   :  { %v6718_v21 = vadd.f32 %v3370_v41, %v6458_v0 }
0x214a   :  { %v3378_v14 = vsel %vm133_vm2, %v6718_v21, 0.0 }
0x214b   :  { %3379 = vadd.xlane.f32.xlu0 %v3378_v14 }
0x214d   :  { %v3371_v57 = vpop.f32.mrf.mxu2 }
0x214e   :  { %v3372_v59 = vadd.f32 %v5094_v39, %v3371_v57  ;;  %v6766_v39 = vld [vmem:[%s6937_s1 + $0x28] sm:$0xff] }
0x2150   :  { %v6723_v15 = vadd.f32 %v3372_v59, %v6463_v2 }
0x2152   :  { %v3381_v29 = vsel %vm133_vm2, %v6723_v15, 0.0 }
0x2153   :  { %3382 = vadd.xlane.f32.xlu1 %v3381_v29 }
0x21be   :  { %v3380_v6 = vpop.xlane.xlu0 %3379 }
0x21bf   :  { %v3384_v34 = vmul.f32 %v3380_v6, %v5470_v31 }
0x21c1   :  { %v3386_v19 = vsub.f32 %v6718_v21, %v3384_v34 }
0x21c3   :  { %v3388_v0 = vmul.f32 %v3386_v19, %v3386_v19 }
0x21c5   :  { %v3390_v36 = vsel %vm133_vm2, %v3388_v0, 0.0 }
0x21c6   :  { %v3383_v44 = vpop.xlane.xlu1 %3382  ;;  %3391 = vadd.xlane.f32.xlu2 %v3390_v36 }
0x21c7   :  { %v3385_v62 = vmul.f32 %v3383_v44, %v5470_v31 }
0x21c9   :  { %v3387_v51 = vsub.f32 %v6723_v15, %v3385_v62 }
0x21cb   :  { %v3389_v2 = vmul.f32 %v3387_v51, %v3387_v51 }
0x21cd   :  { %v3393_v17 = vsel %vm133_vm2, %v3389_v2, 0.0 }
0x21ce   :  { %3394 = vadd.xlane.f32.xlu0 %v3393_v17 }
0x2239   :  { %v3392_v35 = vpop.xlane.xlu2 %3391 }
0x223a   :  { %v3396_v63 = vmul.f32 %v3392_v35, %v5470_v31 }
0x223c   :  { %v3398_v3 = vadd.f32 1e-05, %v3396_v63 }
0x223e   :  { %5304 = vrsqrt.f32 %v3398_v3  ;;  %vm3406_vm15 = vweird.f32 %v3398_v3 }
0x2241   :  { %v3395_v18 = vpop.xlane.xlu0 %3394 }
0x2242   :  { %v3397_v4 = vmul.f32 %v3395_v18, %v5470_v31 }
0x2244   :  { %v5305_v5 = vpop.eup %5304  ;;  %v3399_v7 = vadd.f32 1e-05, %v3397_v4 }
0x2245   :  { %v3401_v56 = vmul.f32 %v5305_v5, %v3398_v3  ;;  %vm3407_vm14 = vweird.f32 %v5305_v5 }
0x2246   :  { %5306 = vrsqrt.f32 %v3399_v7  ;;  %vm3408_vm0 = vmor %vm3406_vm15, %vm3407_vm14  ;;  %vm3416_vm3 = vweird.f32 %v3399_v7 }
0x2247   :  { %v3402_v33 = vmul.f32 %v5305_v5, %v3401_v56 }
0x2249   :  { %v3403_v42 = vmul.f32 0.5, %v3402_v33 }
0x224b   :  { %v3404_v46 = vsub.f32 1.5, %v3403_v42 }
0x224c   :  { %v5307_v8 = vpop.eup %5306 }
0x224d   :  { %v3405_v11 = vmul.f32 %v5305_v5, %v3404_v46  ;;  %v3411_v60 = vmul.f32 %v5307_v8, %v3399_v7  ;;  %vm3417_vm1 = vweird.f32 %v5307_v8 }
0x224e   :  { %vm3418_vm4 = vmor %vm3416_vm3, %vm3417_vm1 }
0x224f   :  { %v3412_v1 = vmul.f32 %v5307_v8, %v3411_v60  ;;  %v3409_v16 = vsel %vm3408_vm0, %v5305_v5, %v3405_v11 }
0x2250   :  { %v3420_v38 = vmul.f32 %v3409_v16, %v3386_v19 }
0x2251   :  { %v3413_v28 = vmul.f32 0.5, %v3412_v1 }
0x2252   :  { %v3423_v12 = vmul.f32 %v5095_v27, %v3420_v38 }
0x2253   :  { %v3414_v58 = vsub.f32 1.5, %v3413_v28 }
0x2254   :  { %v3426_v32 = vadd.f32 %v5096_v9, %v3423_v12 }
0x2255   :  { %v3415_v10 = vmul.f32 %v5307_v8, %v3414_v58 }
0x2257   :  { %v3419_v23 = vsel %vm3418_vm4, %v5307_v8, %v3415_v10 }
0x2258   :  { %v3421_v45 = vmul.f32 %v3419_v23, %v3387_v51 }
0x225a   :  { %v3424_v25 = vmul.f32 %v5095_v27, %v3421_v45 }
0x225c   :  { %v3427_v48 = vadd.f32 %v5096_v9, %v3424_v25 }
0x225e   :  { %v3464_v26 = vpack.c.bf16 %v3427_v48, %v3426_v32 }
0x2260   :  { %4762 = vmatmul.msk.bf16.vlgmr.msra.gmra.mxu3 %vm133_vm2, %v3464_v26 }
0x2261   :  { %3773 = vmatpush.bf16.msra.mxu3 %v3722_v55 }
0x22e3   :  { %v3502_v47 = vpop.f32.mrf.mxu3 }
0x22e4   :  { %v3503_v49 = vadd.f32 %v5097_v43, %v3502_v47 }
0x22e6   :  { %v3585_v24 = vmul.f32 0.25, %v3503_v49 }
0x22eb   :  { %v3504_v50 = vpop.f32.mrf.mxu3 }
0x22ec   :  { %v3505_v13 = vadd.f32 %v5097_v43, %v3504_v50 }
0x22ee   :  { %v3586_v30 = vmul.f32 0.25, %v3505_v13 }
0x22f0   :  { %v6748_v54 = vpack.c.bf16 %v3586_v30, %v3585_v24 }
0x22f2   :  { %4797 = vmatmul.msk.bf16.vlgmr.msra.gmra.mxu2 %vm133_vm2, %v6748_v54  ;;  %4798 = vmatmul.msk.bf16.vlgmr.msrb.gmra.mxu3 %vm133_vm2, %v6748_v54 }
0x2302   :  { %4801 = vmatmul.msk.bf16.vlgmr.msrb.gmra.mxu2 %vm133_vm2, %v6748_v54 }
0x2375   :  { %v3609_v61 = vpop.f32.mrf.mxu2  ;;  %v3655_v52 = vpop.f32.mrf.mxu3 }
0x2376   :  { %v3656_v53 = vadd.f32 %v6759_v20, %v3655_v52  ;;  %v3610_v14 = vadd.f32 %v6759_v20, %v3609_v61 }
0x2378   :  { %v3660_v22 = vsel %vm410_vm7, %v3656_v53, -inf  ;;  %v3614_v59 = vsel %vm410_vm7, %v3610_v14, -inf }
0x2379   :  { %3661 = vmax.xlane.f32.xlu1 %v3660_v22 }
0x237d   :  { %v3611_v55 = vpop.f32.mrf.mxu2  ;;  %v3657_v37 = vpop.f32.mrf.mxu3 }
0x237e   :  { %v3658_v40 = vadd.f32 %v6766_v39, %v3657_v37  ;;  %v3612_v35 = vadd.f32 %v6766_v39, %v3611_v55 }
0x2380   :  { %v3663_v41 = vsel %vm410_vm7, %v3658_v40, -inf  ;;  %v3617_v7 = vsel %vm410_vm7, %v3612_v35, -inf }
0x2381   :  { %3664 = vmax.xlane.f32.xlu2 %v3663_v41 }
0x2385   :  { %v3735_v57 = vpop.f32.mrf.mxu2 }
0x2386   :  { %v3736_v56 = vadd.f32 %v6759_v20, %v3735_v57 }
0x2388   :  { %v3740_v11 = vsel %vm410_vm7, %v3736_v56, -inf }
0x2389   :  { %3615 = vmax.xlane.f32.xlu2 %v3614_v59 }
0x238d   :  { %v3737_v29 = vpop.f32.mrf.mxu2 }
0x238e   :  { %v3738_v6 = vadd.f32 %v6766_v39, %v3737_v29 }
0x2390   :  { %v3743_v34 = vsel %vm410_vm7, %v3738_v6, -inf }
0x2391   :  { %3744 = vmax.xlane.f32.xlu2 %v3743_v34 }
0x23ec   :  { %v3662_v19 = vpop.xlane.xlu1 %3661 }
0x23ed   :  { %v3666_v0 = vsub.f32 %v3656_v53, %v3662_v19 }
0x23ef   :  { %v3668_v36 = vmul.f32 1.442695, %v3666_v0 }
0x23f1   :  { %5308 = vpow2.f32 %v3668_v36 }
0x23f4   :  { %v3665_v44 = vpop.xlane.xlu2 %3664 }
0x23f5   :  { %v3667_v62 = vsub.f32 %v3658_v40, %v3665_v44 }
0x23f7   :  { %v5309_v51 = vpop.eup %5308  ;;  %v3670_v2 = vmul.f32 1.442695, %v3667_v62 }
0x23f8   :  { %v3672_v17 = vsel %vm410_vm7, %v5309_v51, 0.0 }
0x23f9   :  { %5310 = vpow2.f32 %v3670_v2  ;;  %3673 = vadd.xlane.f32.xlu0 %v3672_v17 }
0x23fc   :  { %v3616_v63 = vpop.xlane.xlu2 %3615 }
0x23fd   :  { %v3620_v3 = vsub.f32 %v3610_v14, %v3616_v63 }
0x23ff   :  { %v5311_v18 = vpop.eup %5310  ;;  %v3622_v4 = vmul.f32 1.442695, %v3620_v3 }
0x2400   :  { %v3675_v5 = vsel %vm410_vm7, %v5311_v18, 0.0 }
0x2401   :  { %5312 = vpow2.f32 %v3622_v4  ;;  %3676 = vadd.xlane.f32.xlu1 %v3675_v5  ;;  %3618 = vmax.xlane.f32.xlu0 %v3617_v7  ;;  %v5023_v7 = vld [vmem:[%s6936_s4 + $0x2f8] sm:$0xff] }
0x2402   :  { %3880 = vmatpush.bf16.msra.mxu2 %v5023_v7 }
0x2404   :  { %v3745_v33 = vpop.xlane.xlu2 %3744 }
0x2405   :  { %v3747_v42 = vsub.f32 %v3738_v6, %v3745_v33 }
0x2407   :  { %v6779_v46 = vpop.eup %5312  ;;  %v3750_v8 = vmul.f32 1.442695, %v3747_v42 }
0x2408   :  { %v3626_v60 = vsel %vm410_vm7, %v6779_v46, 0.0 }
0x2409   :  { %5314 = vpow2.f32 %v3750_v8  ;;  %3741 = vmax.xlane.f32.xlu1 %v3740_v11  ;;  %3627 = vadd.xlane.f32.xlu2 %v3626_v60  ;;  %v5022_v11 = vld [vmem:[%s6936_s4 + $0x2f0] sm:$0xff]  ;;  %v5021_v60 = vld [vmem:[%s6936_s4 + $0x2e8] sm:$0xff] }
0x240a   :  { %3881 = vmatpush.bf16.msra.mxu2 %v5022_v11 }
0x240e   :  { %3882 = vmatpush.bf16.msra.mxu2 %v5021_v60 }
0x240f   :  { %v6784_v1 = vpop.eup %5314 }
0x2410   :  { %v3755_v16 = vsel %vm410_vm7, %v6784_v1, 0.0 }
0x2411   :  { %3756 = vadd.xlane.f32.xlu2 %v3755_v16 }
0x246c   :  { %v3674_v28 = vpop.xlane.xlu0 %3673 }
0x246d   :  { %5316 = vrcp.f32 %v3674_v28 }
0x2473   :  { %v5317_v27 = vpop.eup %5316 }
0x2474   :  { %v3677_v58 = vpop.xlane.xlu1 %3676  ;;  %v3680_v10 = vmul.f32 %v5317_v27, %v5309_v51  ;;  %v3619_v45 = vpop.xlane.xlu0 %3618 }
0x2475   :  { %5318 = vrcp.f32 %v3677_v58  ;;  %v3621_v32 = vsub.f32 %v3612_v35, %v3619_v45 }
0x2477   :  { %v3624_v48 = vmul.f32 1.442695, %v3621_v32 }
0x2479   :  { %5320 = vpow2.f32 %v3624_v48 }
0x247b   :  { %v5319_v38 = vpop.eup %5318 }
0x247c   :  { %v3681_v23 = vmul.f32 %v5319_v38, %v5311_v18  ;;  %v3742_v26 = vpop.xlane.xlu1 %3741  ;;  %v3628_v37 = vpop.xlane.xlu2 %3627 }
0x247d   :  { %v3746_v49 = vsub.f32 %v3736_v56, %v3742_v26 }
0x247e   :  { %v3682_v9 = vpack.c.bf16 %v3681_v23, %v3680_v10 }
0x247f   :  { %v3748_v13 = vmul.f32 1.442695, %v3746_v49  ;;  %v5321_v24 = vpop.eup %5320 }
0x2480   :  { %4799 = vmatmul.msk.bf16.vlgmr.msra.gmra.mxu0 %vm410_vm7, %v3682_v9  ;;  %v3629_v52 = vsel %vm410_vm7, %v5321_v24, 0.0 }
0x2481   :  { %5322 = vpow2.f32 %v3748_v13 }
0x2484   :  { %v3757_v29 = vpop.xlane.xlu2 %3756 }
0x2487   :  { %v5323_v53 = vpop.eup %5322 }
0x2490   :  { %4803 = vmatmul.msk.bf16.vlgmr.msrb.gmra.mxu0 %vm133_vm2, %v6748_v54 }
0x24fd   :  { %v6791_v12 = vpop.f32.mrf.mxu0 }
0x2505   :  { %v6793_v25 = vpop.f32.mrf.mxu0 }
0x250d   :  { %v3800_v47 = vpop.f32.mrf.mxu0 }
0x250e   :  { %v3801_v43 = vadd.f32 %v6759_v20, %v3800_v47  ;;  %v3752_v20 = vsel %vm410_vm7, %v5323_v53, 0.0 }
0x2510   :  { %v3805_v50 = vsel %vm410_vm7, %v3801_v43, -inf }
0x2511   :  { %3806 = vmax.xlane.f32.xlu0 %v3805_v50 }
0x2515   :  { %v3802_v30 = vpop.f32.mrf.mxu0 }
0x2516   :  { %v3803_v54 = vadd.f32 %v6766_v39, %v3802_v30 }
0x2518   :  { %v3808_v61 = vsel %vm410_vm7, %v3803_v54, -inf }
0x2519   :  { %3809 = vmax.xlane.f32.xlu1 %v3808_v61  ;;  %3630 = vadd.xlane.f32.xlu0 %v3629_v52 }
0x2521   :  { %3753 = vadd.xlane.f32.xlu1 %v3752_v20 }
0x2584   :  { %v3807_v22 = vpop.xlane.xlu0 %3806 }
0x2585   :  { %v3811_v55 = vsub.f32 %v3801_v43, %v3807_v22  ;;  %v5098_v43 = vld [vmem:[%s6935_s5 + $0x17] ss:$0 sm:$0xff] }
0x2587   :  { %v3813_v40 = vmul.f32 1.442695, %v3811_v55 }
0x2589   :  { %5324 = vpow2.f32 %v3813_v40 }
0x258a   :  { %5326 = vrcp.f32 %v3628_v37 }
0x258c   :  { %v3810_v41 = vpop.xlane.xlu1 %3809  ;;  %v3631_v14 = vpop.xlane.xlu0 %3630 }
0x258d   :  { %v3812_v39 = vsub.f32 %v3803_v54, %v3810_v41  ;;  %5328 = vrcp.f32 %v3631_v14  ;;  %v5027_v41 = vld [vmem:[%s6939_s6 + $0x78] sm:$0xff]  ;;  %v5026_v14 = vld [vmem:[%s6939_s6 + $0x70] sm:$0xff] }
0x258e   :  { %4003 = vmatpush.bf16.msrb.mxu3 %v5027_v41 }
0x258f   :  { %v5325_v57 = vpop.eup %5324  ;;  %v3815_v59 = vmul.f32 1.442695, %v3812_v39  ;;  %v5025_v39 = vld [vmem:[%s6939_s6 + $0x68] sm:$0xff] }
0x2590   :  { %v3817_v6 = vsel %vm410_vm7, %v5325_v57, 0.0  ;;  %v5327_v34 = vpop.eup %5326 }
0x2591   :  { %5330 = vpow2.f32 %v3815_v59  ;;  %3818 = vadd.xlane.f32.xlu0 %v3817_v6  ;;  %v3634_v0 = vmul.f32 %v5327_v34, %v6779_v46  ;;  %v5024_v6 = vld [vmem:[%s6939_s6 + $0x60] sm:$0xff]  ;;  %v5035_v34 = vld [vmem:[%s6940_s8 + $0xf8] sm:$0xff] }
0x2592   :  { %5332 = vrcp.f32 %v3757_v29  ;;  %4004 = vmatpush.bf16.msrb.mxu3 %v5026_v14  ;;  %4065 = vmatpush.bf16.msra.mxu0 %v5035_v34  ;;  %v5037_v34 = vld [vmem:[%s6943_s11 + $0x8] sm:$0xff] }
0x2593   :  { %v5329_v19 = vpop.eup %5328 }
0x2594   :  { %v3635_v36 = vmul.f32 %v5329_v19, %v5321_v24  ;;  %v3754_v44 = vpop.xlane.xlu1 %3753 }
0x2595   :  { %5334 = vrcp.f32 %v3754_v44 }
0x2596   :  { %v3636_v62 = vpack.c.bf16 %v3635_v36, %v3634_v0  ;;  %4005 = vmatpush.bf16.msrb.mxu3 %v5025_v39  ;;  %v5034_v36 = vld [vmem:[%s6940_s8 + $0xf0] sm:$0xff] }
0x2597   :  { %v5331_v51 = vpop.eup %5330  ;;  %4066 = vmatpush.bf16.msra.mxu0 %v5034_v36 }
0x2598   :  { %4800 = vmatmul.msk.bf16.vlgmr.msra.gmra.mxu1 %vm410_vm7, %v3636_v62  ;;  %v3820_v2 = vsel %vm410_vm7, %v5331_v51, 0.0  ;;  %v5333_v17 = vpop.eup %5332 }
0x2599   :  { %3821 = vadd.xlane.f32.xlu1 %v3820_v2  ;;  %v3761_v63 = vmul.f32 %v5333_v17, %v6784_v1  ;;  %v5020_v1 = vld [vmem:[%s6936_s4 + $0x2e0] sm:$0xff]  ;;  %v5033_v2 = vld [vmem:[%s6940_s8 + $0xe8] sm:$0xff] }
0x259a   :  { %3883 = vmatpush.bf16.msra.mxu2 %v5020_v1  ;;  %4006 = vmatpush.bf16.msrb.mxu3 %v5024_v6  ;;  %v5100_v1 = vld [vmem:[%s6934_s10 + $0x15] ss:$0 sm:$0xff] }
0x259b   :  { %v5335_v35 = vpop.eup %5334  ;;  %4067 = vmatpush.bf16.msra.mxu0 %v5033_v2  ;;  %v5038_v6 = vld [vmem:[%s6943_s11 + $0x10] sm:$0xff] }
0x259c   :  { %v3760_v3 = vmul.f32 %v5335_v35, %v5323_v53 }
0x259e   :  { %v3762_v18 = vpack.c.bf16 %v3761_v63, %v3760_v3  ;;  %v5032_v63 = vld [vmem:[%s6940_s8 + $0xe0] sm:$0xff] }
0x259f   :  { %4068 = vmatpush.bf16.msra.mxu0 %v5032_v63 }
0x25a0   :  { %4802 = vmatmul.msk.bf16.vlgmr.msra.gmra.mxu3 %vm410_vm7, %v3762_v18 }
0x2604   :  { %v3819_v4 = vpop.xlane.xlu0 %3818 }
0x2605   :  { %5336 = vrcp.f32 %v3819_v4 }
0x260b   :  { %v5337_v56 = vpop.eup %5336 }
0x260c   :  { %v3822_v5 = vpop.xlane.xlu1 %3821  ;;  %v3825_v42 = vmul.f32 %v5337_v56, %v5325_v57 }
0x260d   :  { %5338 = vrcp.f32 %v3822_v5 }
0x2613   :  { %v5339_v33 = vpop.eup %5338 }
0x2614   :  { %v3826_v46 = vmul.f32 %v5339_v33, %v5331_v51 }
0x2615   :  { %v3712_v16 = vpop.f32.mrf.mxu1 }
0x2616   :  { %v3827_v8 = vpack.c.bf16 %v3826_v46, %v3825_v42  ;;  %v3713_v10 = vadd.f32 %v3712_v16, %v6791_v12  ;;  %v5099_v46 = vld [vmem:[%s6934_s10 + $0x14] ss:$0 sm:$0xff] }
0x2618   :  { %4804 = vmatmul.msk.bf16.vlgmr.msrb.gmra.mxu1 %vm410_vm7, %v3827_v8 }
0x261d   :  { %v3714_v28 = vpop.f32.mrf.mxu1 }
0x261e   :  { %v3715_v23 = vadd.f32 %v3714_v28, %v6793_v25 }
0x2623   :  { %v3775_v58 = vpop.f32.mrf.mxu3 }
0x2624   :  { %v3780_v9 = vadd.f32 %v3775_v58, %v3713_v10 }
0x262b   :  { %v3777_v38 = vpop.f32.mrf.mxu3 }
0x262c   :  { %v3781_v45 = vadd.f32 %v3777_v38, %v3715_v23  ;;  %v5031_v23 = vld [vmem:[%s6940_s8 + $0xd8] sm:$0xff] }
0x262d   :  { %4069 = vmatpush.bf16.msra.mxu0 %v5031_v23  ;;  %v5105_v23 = vld [vmem:[%s6942_s12] ss:$0 sm:$0xff] }
0x2695   :  { %v3840_v27 = vpop.f32.mrf.mxu1 }
0x2696   :  { %v3845_v48 = vadd.f32 %v3840_v27, %v3780_v9  ;;  %v5030_v9 = vld [vmem:[%s6940_s8 + $0xd0] sm:$0xff] }
0x2697   :  { %4070 = vmatpush.bf16.msra.mxu0 %v5030_v9 }
0x269d   :  { %v3842_v32 = vpop.f32.mrf.mxu1 }
0x269e   :  { %v3846_v26 = vadd.f32 %v3842_v32, %v3781_v45  ;;  %v5029_v45 = vld [vmem:[%s6940_s8 + $0xc8] sm:$0xff]  ;;  %v5028_v32 = vld [vmem:[%s6940_s8 + $0xc0] sm:$0xff] }
0x269f   :  { %4071 = vmatpush.bf16.msra.mxu0 %v5029_v45 }
0x26a0   :  { %v3847_v47 = vpack.c.bf16 %v3846_v26, %v3845_v48  ;;  %v5101_v26 = vld [vmem:[%s6938_s7 + $0x3] ss:$0 sm:$0xff] }
0x26a2   :  { %4821 = vmatmul.msk.bf16.vlgmr.msra.gmra.mxu2 %vm133_vm2, %v3847_v47 }
0x26a3   :  { %4072 = vmatpush.bf16.msra.mxu0 %v5028_v32 }
0x2725   :  { %v3885_v49 = vpop.f32.mrf.mxu2 }
0x2726   :  { %v3886_v50 = vadd.f32 %v5098_v43, %v3885_v49 }
0x2728   :  { %v6827_v13 = vadd.f32 %v3886_v50, %v6718_v21 }
0x272a   :  { %v3894_v12 = vsel %vm133_vm2, %v6827_v13, 0.0 }
0x272b   :  { %3895 = vadd.xlane.f32.xlu2 %v3894_v12 }
0x272d   :  { %v3887_v25 = vpop.f32.mrf.mxu2 }
0x272e   :  { %v3888_v24 = vadd.f32 %v5098_v43, %v3887_v25 }
0x2730   :  { %v6832_v30 = vadd.f32 %v3888_v24, %v6723_v15  ;;  %v5102_v24 = vld [vmem:[%s6941_s9 + $0x3] ss:$0 sm:$0xff] }
0x2732   :  { %v3897_v54 = vsel %vm133_vm2, %v6832_v30, 0.0 }
0x2733   :  { %3898 = vadd.xlane.f32.xlu0 %v3897_v54 }
0x279e   :  { %v3896_v61 = vpop.xlane.xlu2 %3895 }
0x279f   :  { %v3900_v52 = vmul.f32 %v3896_v61, %v5470_v31 }
0x27a1   :  { %v3902_v53 = vsub.f32 %v6827_v13, %v3900_v52 }
0x27a3   :  { %v3904_v21 = vmul.f32 %v3902_v53, %v3902_v53 }
0x27a5   :  { %v3906_v20 = vsel %vm133_vm2, %v3904_v21, 0.0 }
0x27a6   :  { %v3899_v22 = vpop.xlane.xlu0 %3898  ;;  %3907 = vadd.xlane.f32.xlu1 %v3906_v20 }
0x27a7   :  { %v3901_v55 = vmul.f32 %v3899_v22, %v5470_v31 }
0x27a9   :  { %v3903_v37 = vsub.f32 %v6832_v30, %v3901_v55 }
0x27ab   :  { %v3905_v15 = vmul.f32 %v3903_v37, %v3903_v37 }
0x27ad   :  { %v3909_v40 = vsel %vm133_vm2, %v3905_v15, 0.0 }
0x27ae   :  { %3910 = vadd.xlane.f32.xlu2 %v3909_v40 }
0x2819   :  { %v3908_v57 = vpop.xlane.xlu1 %3907 }
0x281a   :  { %v3912_v59 = vmul.f32 %v3908_v57, %v5470_v31 }
0x281c   :  { %v3914_v29 = vadd.f32 1e-05, %v3912_v59 }
0x281e   :  { %5340 = vrsqrt.f32 %v3914_v29  ;;  %vm3922_vm5 = vweird.f32 %v3914_v29 }
0x2821   :  { %v3911_v19 = vpop.xlane.xlu2 %3910 }
0x2822   :  { %v3913_v0 = vmul.f32 %v3911_v19, %v5470_v31 }
0x2824   :  { %v5341_v44 = vpop.eup %5340  ;;  %v3915_v62 = vadd.f32 1e-05, %v3913_v0 }
0x2825   :  { %v3917_v51 = vmul.f32 %v5341_v44, %v3914_v29  ;;  %vm3923_vm7 = vweird.f32 %v5341_v44 }
0x2826   :  { %5342 = vrsqrt.f32 %v3915_v62  ;;  %vm3924_vm6 = vmor %vm3922_vm5, %vm3923_vm7  ;;  %vm3932_vm9 = vweird.f32 %v3915_v62 }
0x2827   :  { %v3918_v17 = vmul.f32 %v5341_v44, %v3917_v51 }
0x2829   :  { %v3919_v35 = vmul.f32 0.5, %v3918_v17 }
0x282b   :  { %v3920_v3 = vsub.f32 1.5, %v3919_v35 }
0x282c   :  { %v5343_v18 = vpop.eup %5342 }
0x282d   :  { %v3921_v4 = vmul.f32 %v5341_v44, %v3920_v3  ;;  %v3927_v5 = vmul.f32 %v5343_v18, %v3915_v62  ;;  %vm3933_vm8 = vweird.f32 %v5343_v18 }
0x282e   :  { %vm3934_vm10 = vmor %vm3932_vm9, %vm3933_vm8 }
0x282f   :  { %v3928_v7 = vmul.f32 %v5343_v18, %v3927_v5  ;;  %v3925_v56 = vsel %vm3924_vm6, %v5341_v44, %v3921_v4  ;;  %v5036_v44 = vld [vmem:[%s6943_s11] sm:$0xff] }
0x2830   :  { %v3936_v8 = vmul.f32 %v3925_v56, %v3902_v53 }
0x2831   :  { %v3929_v33 = vmul.f32 0.5, %v3928_v7 }
0x2832   :  { %v3939_v16 = vmul.f32 %v5099_v46, %v3936_v8 }
0x2833   :  { %v3930_v42 = vsub.f32 1.5, %v3929_v33 }
0x2834   :  { %v3942_v27 = vadd.f32 %v5100_v1, %v3939_v16 }
0x2835   :  { %v3931_v11 = vmul.f32 %v5343_v18, %v3930_v42 }
0x2837   :  { %v3935_v60 = vsel %vm3934_vm10, %v5343_v18, %v3931_v11 }
0x2838   :  { %v3937_v28 = vmul.f32 %v3935_v60, %v3903_v37 }
0x283a   :  { %v3940_v58 = vmul.f32 %v5099_v46, %v3937_v28 }
0x283c   :  { %v3943_v38 = vadd.f32 %v5100_v1, %v3940_v58  ;;  %v5104_v1 = vld [vmem:[%s6934_s10 + $0x17] ss:$0 sm:$0xff] }
0x283e   :  { %v3970_v10 = vpack.c.bf16 %v3943_v38, %v3942_v27 }
0x2840   :  { %4838 = vmatmul.msk.bf16.vlgmr.msrb.gmra.mxu3 %vm133_vm2, %v3970_v10 }
0x28c3   :  { %v4008_v48 = vpop.f32.mrf.mxu3 }
0x28c4   :  { %v4009_v47 = vadd.f32 %v5101_v26, %v4008_v48 }
0x28c6   :  { %v4013_v50 = vmax.f32 %v4009_v47, 0.0 }
0x28cb   :  { %v4010_v43 = vpop.f32.mrf.mxu3 }
0x28cc   :  { %v4011_v49 = vadd.f32 %v5101_v26, %v4010_v43 }
0x28ce   :  { %v4014_v12 = vmax.f32 %v4011_v49, 0.0 }
0x28d0   :  { %v4015_v25 = vpack.c.bf16 %v4014_v12, %v4013_v50 }
0x28d2   :  { %4073 = vmatmul.bf16.vlgmr.msra.gmra.mxu0 %v4015_v25 }
0x294f   :  { %v4074_v54 = vpop.f32.mrf.mxu0 }
0x2950   :  { %v4075_v61 = vadd.f32 %v5102_v24, %v4074_v54 }
0x2952   :  { %v4079_v52 = vadd.f32 %v4075_v61, %v6827_v13 }
0x2954   :  { %v4083_v53 = vsel %vm133_vm2, %v4079_v52, 0.0 }
0x2955   :  { %4084 = vadd.xlane.f32.xlu0 %v4083_v53 }
0x2957   :  { %v4076_v21 = vpop.f32.mrf.mxu0 }
0x2958   :  { %v4077_v20 = vadd.f32 %v5102_v24, %v4076_v21 }
0x295a   :  { %v4080_v22 = vadd.f32 %v4077_v20, %v6832_v30  ;;  %v5039_v30 = vld [vmem:[%s6943_s11 + $0x18] sm:$0xff] }
0x295b   :  { %4177 = vmatpush.bf16.msra.mxu1 %v5039_v30 }
0x295c   :  { %v4086_v55 = vsel %vm133_vm2, %v4080_v22, 0.0 }
0x295d   :  { %4087 = vadd.xlane.f32.xlu1 %v4086_v55 }
0x295f   :  { %4178 = vmatpush.bf16.msra.mxu1 %v5038_v6 }
0x2963   :  { %4179 = vmatpush.bf16.msra.mxu1 %v5037_v34 }
0x2967   :  { %4180 = vmatpush.bf16.msra.mxu1 %v5036_v44 }
0x29c8   :  { %v4085_v37 = vpop.xlane.xlu0 %4084 }
0x29c9   :  { %v4089_v15 = vmul.f32 %v4085_v37, %v5470_v31 }
0x29cb   :  { %v4091_v40 = vsub.f32 %v4079_v52, %v4089_v15 }
0x29cd   :  { %v4093_v41 = vmul.f32 %v4091_v40, %v4091_v40 }
0x29cf   :  { %v4095_v14 = vsel %vm133_vm2, %v4093_v41, 0.0 }
0x29d0   :  { %v4088_v39 = vpop.xlane.xlu1 %4087  ;;  %4096 = vadd.xlane.f32.xlu2 %v4095_v14 }
0x29d1   :  { %v4090_v13 = vmul.f32 %v4088_v39, %v5470_v31 }
0x29d3   :  { %v4092_v57 = vsub.f32 %v4080_v22, %v4090_v13 }
0x29d5   :  { %v4094_v59 = vmul.f32 %v4092_v57, %v4092_v57 }
0x29d7   :  { %v4098_v29 = vsel %vm133_vm2, %v4094_v59, 0.0 }
0x29d8   :  { %4099 = vadd.xlane.f32.xlu0 %v4098_v29 }
0x2a43   :  { %v4097_v19 = vpop.xlane.xlu2 %4096 }
0x2a44   :  { %v4101_v0 = vmul.f32 %v4097_v19, %v5470_v31 }
0x2a46   :  { %v4103_v36 = vadd.f32 1e-05, %v4101_v0 }
0x2a48   :  { %5344 = vrsqrt.f32 %v4103_v36  ;;  %vm4111_vm12 = vweird.f32 %v4103_v36 }
0x2a4b   :  { %v4100_v62 = vpop.xlane.xlu0 %4099 }
0x2a4c   :  { %v4102_v51 = vmul.f32 %v4100_v62, %v5470_v31  ;;  %v5103_v31 = vld [vmem:[%s6934_s10 + $0x16] ss:$0 sm:$0xff] }
0x2a4e   :  { %v5345_v2 = vpop.eup %5344  ;;  %v4104_v17 = vadd.f32 1e-05, %v4102_v51 }
0x2a4f   :  { %v4106_v35 = vmul.f32 %v5345_v2, %v4103_v36  ;;  %vm4112_vm11 = vweird.f32 %v5345_v2 }
0x2a50   :  { %5346 = vrsqrt.f32 %v4104_v17  ;;  %vm4113_vm13 = vmor %vm4111_vm12, %vm4112_vm11  ;;  %vm4121_vm15 = vweird.f32 %v4104_v17 }
0x2a51   :  { %v4107_v63 = vmul.f32 %v5345_v2, %v4106_v35 }
0x2a53   :  { %v4108_v3 = vmul.f32 0.5, %v4107_v63 }
0x2a55   :  { %v4109_v18 = vsub.f32 1.5, %v4108_v3 }
0x2a56   :  { %v5347_v4 = vpop.eup %5346 }
0x2a57   :  { %v4110_v5 = vmul.f32 %v5345_v2, %v4109_v18  ;;  %v4116_v7 = vmul.f32 %v5347_v4, %v4104_v17  ;;  %vm4122_vm14 = vweird.f32 %v5347_v4 }
0x2a58   :  { %vm4123_vm0 = vmor %vm4121_vm15, %vm4122_vm14 }
0x2a59   :  { %v4117_v56 = vmul.f32 %v5347_v4, %v4116_v7  ;;  %v4114_v33 = vsel %vm4113_vm13, %v5345_v2, %v4110_v5 }
0x2a5a   :  { %v4125_v8 = vmul.f32 %v4114_v33, %v4091_v40 }
0x2a5b   :  { %v4118_v42 = vmul.f32 0.5, %v4117_v56 }
0x2a5c   :  { %v4128_v16 = vmul.f32 %v5103_v31, %v4125_v8 }
0x2a5d   :  { %v4119_v46 = vsub.f32 1.5, %v4118_v42 }
0x2a5e   :  { %v4131_v27 = vadd.f32 %v5104_v1, %v4128_v16 }
0x2a5f   :  { %v4120_v11 = vmul.f32 %v5347_v4, %v4119_v46 }
0x2a61   :  { %v4124_v60 = vsel %vm4123_vm0, %v5347_v4, %v4120_v11 }
0x2a62   :  { %v4126_v28 = vmul.f32 %v4124_v60, %v4092_v57 }
0x2a64   :  { %v4129_v58 = vmul.f32 %v5103_v31, %v4126_v28 }
0x2a66   :  { %v4132_v38 = vadd.f32 %v5104_v1, %v4129_v58 }
0x2a68   :  { %v4133_v10 = vpack.c.bf16 %v4132_v38, %v4131_v27 }
0x2a6a   :  { %4887 = vmatmul.msk.bf16.vlgmr.msra.gmra.mxu1 %vm133_vm2, %v4133_v10 }
0x2ae7   :  { %v4182_v9 = vpop.f32.mrf.mxu1 }
0x2ae8   :  { %v4183_v45 = vadd.f32 %v5105_v23, %v4182_v9 }
0x2aea   :  { %4187 = vst [vmem:[%s6944_s13] sm:$0xff] %v4183_v45 }
0x2aef   :  { %v4184_v32 = vpop.f32.mrf.mxu1 }
0x2af0   :  { %v4185_v48 = vadd.f32 %v5105_v23, %v4184_v32 }
0x2af2   :  { %4188 = vst [vmem:[%s6944_s13 + $0x8] sm:$0xff] %v4185_v48 }

</bundles_post_ra>
